<compile_context>
chip_gen: v5e
topology: v5e:2x2
jax: 0.10.0
libtpu: 0.0.40
codegen_flags: <defaults>
</compile_context>

<pallas_src>
import functools

import jax
import jax.numpy as jnp
from jax.experimental import pallas as pl
from jax.experimental.pallas import tpu as pltpu


def trend_aware_attention_kernel(x_ref, wqkv_ref, bqkv_ref, hs_ref, wfc_ref,
                                 bfc_ref, o_ref, *, num_heads, head_dim,
                                 kernel_size, approx_recip):
    """One grid step == (one batch element, one tile of vertices).

    x_ref:    [1, T, Nt, D]   native layout, not pre-padded
    wqkv_ref: [ks*D, 3D]      fused im2col weight for q|k|v (BN + 1/sqrt(d) folded;
                              value projection lives in the last-tap rows)
    bqkv_ref: [1, 3D]         q|k|v biases (value bias included -> no softmax fold)
    hs_ref:   [D, D]          block-diagonal ones (per-head score summation)
    wfc_ref:  [D, D]          output projection
    bfc_ref:  [1, D]
    o_ref:    [1, T, Nt, D]
    """
    D = num_heads * head_dim
    ks = kernel_size
    pad = ks - 1
    x = x_ref[0]                                        # [T, Nt, D]
    T, Nt, _ = x.shape
    w_dtype = wqkv_ref.dtype

    # ---- causal zero-pad along time (leading, untiled axis -> cheap) + im2col.
    xp = x if pad == 0 else jnp.concatenate(
        [jnp.zeros((pad, Nt, D), x.dtype), x], axis=0)
    im2col = xp if ks == 1 else jnp.concatenate(
        [xp[j:j + T] for j in range(ks)], axis=-1)      # [T, Nt, ks*D]

    # ---- ONE fused MXU matmul for q | k | v (M = T*Nt, K = ks*D, N = 3D).
    qkv = jnp.dot(im2col.reshape(T * Nt, ks * D).astype(w_dtype), wqkv_ref[...],
                  preferred_element_type=jnp.float32) + bqkv_ref[...]
    qkv = qkv.reshape(T, Nt, 3 * D)
    q = qkv[:, :, :D]                                   # BN + 1/sqrt(d) folded
    k = qkv[:, :, D:2 * D]
    v = qkv[:, :, 2 * D:]                               # bias already included

    # ---- all-head attention: q*k lane products summed within each head by one
    # block-diagonal matmul (largest-M matmul, runs in w_dtype on the MXU); each
    # head's score is replicated across its d lanes, so softmax and the PV
    # contraction stay pure leading-axis VPU/EUP work (no per-head loop, no
    # transposes, no width-d lane slices).
    prod = q[:, None, :, :] * k[None, :, :, :]          # [T, S, Nt, D] f32
    s = jnp.dot(prod.reshape(T * T * Nt, D).astype(w_dtype), hs_ref[...],
                preferred_element_type=jnp.float32)
    s = s.reshape(T, T, Nt, D)                          # scores, d-replicated
    m = jnp.max(s, axis=1, keepdims=True)
    p = jnp.exp(s - m)
    denom = jnp.sum(p, axis=1, keepdims=True)
    if approx_recip:
        p = p * pl.reciprocal(denom, approx=True)       # EUP slot, ~free
    else:
        p = p / denom                                   # exact, for parity runs
    o = jnp.sum(p * v[None, :, :, :], axis=1)           # [T, Nt, D] heads concat

    # ---- output FC: single matmul for all heads.
    out = jnp.dot(o.reshape(T * Nt, D).astype(w_dtype), wfc_ref[...],
                  preferred_element_type=jnp.float32) + bfc_ref[...]
    o_ref[0] = out.reshape(T, Nt, D)


def _pick_tile_n(B, T, N, D, vmem_budget_bytes=8 << 20):
    """Default vertex-tile size.

    * B >= 2: take the whole vertex axis (grid is effectively (B,)): maximises
      matmul M and makes each x/o DMA one contiguous block.
    * B == 1: split N so the 'parallel' grid has >= 2 steps (v7x has 2 TCs).
    * Cap against the lane-padded T^2 attention intermediates (~4 live f32
      tensors of T*T*tile_n*ceil(D/128)*128 elements) so big T/N fit v7x's
      64 MiB physical / v5e's scoped VMEM.
    """
    padded_d = pl.cdiv(D, 128) * 128
    per_vertex = 4 * T * T * padded_d * 4
    want = min(N, max(1, vmem_budget_bytes // per_vertex))
    if B == 1 and N > 1:
        want = min(want, pl.cdiv(N, 2))
    candidates = [N] + [t for t in range(8, N, 8) if N % t == 0]
    legal = [t for t in candidates if t <= want] or [min(candidates)]
    return max(legal)


def trend_aware_attention(x, params, *, K, d, kernel_size, tile_n=None,
                          approx_recip=True, vmem_limit_bytes=32 * 1024 * 1024):
    """x: [B, T, N, D] (same convention as the PyTorch module). Returns same."""
    B, T, N, D = x.shape
    assert D == K * d
    ks = kernel_size
    if tile_n is None:
        tile_n = _pick_tile_n(B, T, N, D)
    assert N % tile_n == 0 and (tile_n % 8 == 0 or tile_n == N)
    n_tiles = N // tile_n

    kernel = functools.partial(trend_aware_attention_kernel,
                               num_heads=K, head_dim=d, kernel_size=ks,
                               approx_recip=approx_recip)

    rows = T * N
    flops = B * (2 * rows * (ks * D) * (3 * D)        # fused q|k|v conv matmul
                 + 2 * T * T * N * D * D              # block-diag head-sum matmul
                 + 2 * rows * D * D                   # output FC
                 + 6 * T * T * N * D)                 # softmax / PV elementwise
    w_bytes = sum(int(v.size) * v.dtype.itemsize
                  for v in (params['wqkv'], params['head_sum'], params['wfc']))
    b_bytes = sum(int(v.size) * 4 for v in (params['bqkv'], params['bfc']))
    cost = pl.CostEstimate(
        flops=flops,
        transcendentals=B * T * T * N * K,            # one exp per head score
        bytes_accessed=4 * 2 * B * T * N * D + w_bytes + b_bytes,
    )

    out = pl.pallas_call(
        kernel,
        out_shape=jax.ShapeDtypeStruct((B, T, N, D), jnp.float32),
        grid_spec=pltpu.PrefetchScalarGridSpec(
            num_scalar_prefetch=0,
            grid=(B, n_tiles),
            in_specs=[
                pl.BlockSpec((1, T, tile_n, D), lambda b, n: (b, 0, n, 0)),
                pl.BlockSpec((ks * D, 3 * D), lambda b, n: (0, 0)),
                pl.BlockSpec((1, 3 * D), lambda b, n: (0, 0)),
                pl.BlockSpec((D, D), lambda b, n: (0, 0)),
                pl.BlockSpec((D, D), lambda b, n: (0, 0)),
                pl.BlockSpec((1, D), lambda b, n: (0, 0)),
            ],
            # NOTE: lane-dense [B, T, N*D] out_spec deferred to an on-HW A/B
            # (needs a sublane->lane relayout of the FC result); see header.
            out_specs=pl.BlockSpec((1, T, tile_n, D), lambda b, n: (b, 0, n, 0)),
        ),
        compiler_params=pltpu.CompilerParams(
            dimension_semantics=("parallel", "parallel"),
            vmem_limit_bytes=vmem_limit_bytes),
        cost_estimate=cost,
    )(x, params['wqkv'], params['bqkv'], params['head_sum'], params['wfc'],
      params['bfc'])
    return out


def init_params(key, D, kernel_size, *, d, eps=1e-5, mxu_dtype=jnp.bfloat16):
    """Deterministic synthetic parameters. Returns (raw, kernel_params).

    kernel_params fold eval-mode BN into the conv weights, the 1/sqrt(d)
    attention scale into the query weights, and pack the value projection into
    the last-tap rows of the fused q|k|v weight.  bf16 is the recommended
    mxu_dtype on v5e, v6e and v7x alike (all three run the MXU at full rate in
    bf16; elementwise math stays f32 in the kernel).  Use jnp.float32 for tight
    parity checks against an f32 reference.
    """
    keys = iter(jax.random.split(key, 16))
    nrm = lambda shape, s=0.1: s * jax.random.normal(next(keys), shape, jnp.float32)

    raw = dict(
        # conv weights in (tap, in, out) layout; biases (D,)
        wq=nrm((kernel_size, D, D)), bq=nrm((D,)),
        wk=nrm((kernel_size, D, D)), bk=nrm((D,)),
        wv=nrm((D, D)), bv=nrm((D,)),
        wfc=nrm((D, D)), bfc=nrm((D,)),
        # eval-mode BatchNorm params / running stats
        gq=1.0 + nrm((D,)), betq=nrm((D,)), muq=nrm((D,)), varq=1.0 + jnp.abs(nrm((D,))),
        gk=1.0 + nrm((D,)), betk=nrm((D,)), muk=nrm((D,)), vark=1.0 + jnp.abs(nrm((D,))),
    )

    def fold_bn(w, b, gamma, beta, mean, var):
        scale = gamma / jnp.sqrt(var + eps)
        return w * scale[None, None, :], (b - mean) * scale + beta

    wq_f, bq_f = fold_bn(raw['wq'], raw['bq'], raw['gq'], raw['betq'], raw['muq'], raw['varq'])
    wk_f, bk_f = fold_bn(raw['wk'], raw['bk'], raw['gk'], raw['betk'], raw['muk'], raw['vark'])

    att_scale = d ** (-0.5)                   # fold score scale into q (weights+bias)
    wq_f = wq_f * att_scale
    bq_f = bq_f * att_scale

    ks = kernel_size
    wqkv = jnp.zeros((ks * D, 3 * D), jnp.float32)
    wqkv = wqkv.at[:, :D].set(wq_f.reshape(ks * D, D))
    wqkv = wqkv.at[:, D:2 * D].set(wk_f.reshape(ks * D, D))
    wqkv = wqkv.at[(ks - 1) * D:, 2 * D:].set(raw['wv'])   # value = current-time tap
    bqkv = jnp.concatenate([bq_f, bk_f, raw['bv']])[None, :]

    # block-diagonal per-head summation matrix, passed as a constant input
    ci = jnp.arange(D)[:, None] // d
    cj = jnp.arange(D)[None, :] // d
    head_sum = (ci == cj).astype(jnp.float32)

    kernel_params = dict(
        wqkv=wqkv.astype(mxu_dtype),
        bqkv=bqkv,                                  # f32, added post-matmul
        head_sum=head_sum.astype(mxu_dtype),
        wfc=raw['wfc'].astype(mxu_dtype),
        bfc=raw['bfc'][None, :],
    )
    return raw, kernel_params


def reference_forward(x, raw, *, K, d, kernel_size, eps=1e-5):
    """Pure-JAX mirror of the PyTorch forward (BatchNorm in eval mode)."""
    B, T, N, D = x.shape
    pad = kernel_size - 1
    hp = jax.lax.Precision.HIGHEST

    def conv_bn(w, b, gamma, beta, mean, var):
        xp = jnp.pad(x, ((0, 0), (pad, 0), (0, 0), (0, 0)))
        y = sum(jnp.einsum('btni,io->btno', xp[:, j:j + T], w[j], precision=hp)
                for j in range(kernel_size)) + b
        return (y - mean) / jnp.sqrt(var + eps) * gamma + beta

    q = conv_bn(raw['wq'], raw['bq'], raw['gq'], raw['betq'], raw['muq'], raw['varq'])
    k = conv_bn(raw['wk'], raw['bk'], raw['gk'], raw['betk'], raw['muk'], raw['vark'])
    v = jnp.einsum('btni,io->btno', x, raw['wv'], precision=hp) + raw['bv']

    qh = q.reshape(B, T, N, K, d)
    kh = k.reshape(B, T, N, K, d)
    vh = v.reshape(B, T, N, K, d)
    s = jnp.einsum('btnkd,bsnkd->bnkts', qh, kh, precision=hp) * (d ** -0.5)
    p = jax.nn.softmax(s, axis=-1)
    o = jnp.einsum('bnkts,bsnkd->btnkd', p, vh, precision=hp).reshape(B, T, N, D)
    return jnp.einsum('btni,io->btno', o, raw['wfc'], precision=hp) + raw['bfc']


if __name__ == "__main__":
    K, d, kernel_size = 4, 8, 3
    D = K * d
    B, T, N = 2, 8, 16          # batch, num_step, num_vertex

    key = jax.random.PRNGKey(0)
    kx, kp = jax.random.split(key)
    X = jax.random.normal(kx, (B, T, N, D), jnp.float32)

    # --- f32 parity run (exact softmax division) against the pure-JAX reference.
    raw, kparams_f32 = init_params(kp, D, kernel_size, d=d, mxu_dtype=jnp.float32)
    out = trend_aware_attention(X, kparams_f32, K=K, d=d,
                                kernel_size=kernel_size, approx_recip=False)
    out = jax.block_until_ready(out)
    ref = reference_forward(X, raw, K=K, d=d, kernel_size=kernel_size)
    assert out.shape == (B, T, N, D), out.shape
    max_err = float(jnp.max(jnp.abs(out - ref)))
    assert jnp.allclose(out, ref, atol=1e-2, rtol=1e-2), f"max_err={max_err}"

    # --- bf16 MXU run (recommended perf config on v5e/v6e/v7x), looser tolerance.
    _, kparams_bf16 = init_params(kp, D, kernel_size, d=d, mxu_dtype=jnp.bfloat16)
    out_bf = trend_aware_attention(X, kparams_bf16, K=K, d=d,
                                   kernel_size=kernel_size, approx_recip=True)
    out_bf = jax.block_until_ready(out_bf)
    max_err_bf = float(jnp.max(jnp.abs(out_bf - ref)))
    assert jnp.allclose(out_bf, ref, atol=1e-1, rtol=1e-1), f"max_err_bf16={max_err_bf}"

    print("KERNEL_OK")
</pallas_src>

<mosaic_0001>
module attributes {stable_mosaic.version = 11 : i64} {
  func.func @trend_aware_attention_kernel(%arg0: i32, %arg1: i32, %arg2: memref<1x8x16x32xf32, #tpu.memory_space<vmem>>, %arg3: memref<96x96xf32, #tpu.memory_space<vmem>>, %arg4: memref<1x96xf32, #tpu.memory_space<vmem>>, %arg5: memref<32x32xf32, #tpu.memory_space<vmem>>, %arg6: memref<32x32xf32, #tpu.memory_space<vmem>>, %arg7: memref<1x32xf32, #tpu.memory_space<vmem>>, %arg8: memref<1x8x16x32xf32, #tpu.memory_space<vmem>>) attributes {dimension_semantics = [#tpu.dimension_semantics<parallel>, #tpu.dimension_semantics<parallel>], iteration_bounds = array<i64: 2, 1>, scalar_prefetch = 0 : i64, scratch_operands = 0 : i64, tpu.core_type = #tpu.core_type<tc>, window_params = [{transform_indices = @transform_0, window_bounds = array<i64: 1, 8, 16, 32>}, {pipeline_mode = #tpu.pipeline_mode<synchronous>, transform_indices = @transform_1, window_bounds = array<i64: 96, 96>}, {pipeline_mode = #tpu.pipeline_mode<synchronous>, transform_indices = @transform_2, window_bounds = array<i64: 1, 96>}, {pipeline_mode = #tpu.pipeline_mode<synchronous>, transform_indices = @transform_3, window_bounds = array<i64: 32, 32>}, {pipeline_mode = #tpu.pipeline_mode<synchronous>, transform_indices = @transform_4, window_bounds = array<i64: 32, 32>}, {pipeline_mode = #tpu.pipeline_mode<synchronous>, transform_indices = @transform_5, window_bounds = array<i64: 1, 32>}, {transform_indices = @transform_6, window_bounds = array<i64: 1, 8, 16, 32>}]} {
    %c0 = arith.constant 0 : index
    %c0_0 = arith.constant 0 : index
    %c0_1 = arith.constant 0 : index
    %c0_2 = arith.constant 0 : index
    %0 = vector.load %arg2[%c0, %c0_0, %c0_1, %c0_2] : memref<1x8x16x32xf32, #tpu.memory_space<vmem>>, vector<1x8x16x32xf32>
    %1 = vector.shape_cast %0 : vector<1x8x16x32xf32> to vector<8x16x32xf32>
    %cst = arith.constant 0.000000e+00 : f32
    %2 = vector.broadcast %cst : f32 to vector<2x16x32xf32>
    %3 = tpu.concatenate %2, %1 in 0 : vector<2x16x32xf32>, vector<8x16x32xf32> -> vector<10x16x32xf32>
    %4 = vector.extract_strided_slice %3 {offsets = [0, 0, 0], sizes = [8, 16, 32], strides = [1, 1, 1]} : vector<10x16x32xf32> to vector<8x16x32xf32>
    %5 = vector.extract_strided_slice %3 {offsets = [1, 0, 0], sizes = [8, 16, 32], strides = [1, 1, 1]} : vector<10x16x32xf32> to vector<8x16x32xf32>
    %6 = vector.extract_strided_slice %3 {offsets = [2, 0, 0], sizes = [8, 16, 32], strides = [1, 1, 1]} : vector<10x16x32xf32> to vector<8x16x32xf32>
    %7 = tpu.concatenate %4, %5, %6 in 2 : vector<8x16x32xf32>, vector<8x16x32xf32>, vector<8x16x32xf32> -> vector<8x16x96xf32>
    %8 = vector.shape_cast %7 : vector<8x16x96xf32> to vector<128x96xf32>
    %c0_3 = arith.constant 0 : index
    %c0_4 = arith.constant 0 : index
    %9 = vector.load %arg3[%c0_3, %c0_4] : memref<96x96xf32, #tpu.memory_space<vmem>>, vector<96x96xf32>
    %cst_5 = arith.constant dense<0.000000e+00> : vector<128x96xf32>
    %10 = tpu.matmul %8, %9, %cst_5 {dimension_numbers = #tpu.dot_dimension_numbers<[1], [0], [0], [1], [0, 0, 1, 1], [], []>} : vector<128x96xf32>, vector<96x96xf32>, vector<128x96xf32> -> vector<128x96xf32>
    %c0_6 = arith.constant 0 : index
    %c0_7 = arith.constant 0 : index
    %11 = vector.load %arg4[%c0_6, %c0_7] : memref<1x96xf32, #tpu.memory_space<vmem>>, vector<1x96xf32>
    %12 = vector.broadcast %11 : vector<1x96xf32> to vector<128x96xf32>
    %13 = arith.addf %10, %12 : vector<128x96xf32>
    %14 = vector.shape_cast %13 : vector<128x96xf32> to vector<8x16x96xf32>
    %15 = vector.extract_strided_slice %14 {offsets = [0, 0, 0], sizes = [8, 16, 32], strides = [1, 1, 1]} : vector<8x16x96xf32> to vector<8x16x32xf32>
    %16 = vector.extract_strided_slice %14 {offsets = [0, 0, 32], sizes = [8, 16, 32], strides = [1, 1, 1]} : vector<8x16x96xf32> to vector<8x16x32xf32>
    %17 = vector.extract_strided_slice %14 {offsets = [0, 0, 64], sizes = [8, 16, 32], strides = [1, 1, 1]} : vector<8x16x96xf32> to vector<8x16x32xf32>
    %18 = vector.shape_cast %15 : vector<8x16x32xf32> to vector<8x1x16x32xf32>
    %19 = vector.shape_cast %16 : vector<8x16x32xf32> to vector<1x8x16x32xf32>
    %20 = vector.broadcast %18 : vector<8x1x16x32xf32> to vector<8x8x16x32xf32>
    %21 = vector.broadcast %19 : vector<1x8x16x32xf32> to vector<8x8x16x32xf32>
    %22 = arith.mulf %20, %21 : vector<8x8x16x32xf32>
    %23 = vector.shape_cast %22 : vector<8x8x16x32xf32> to vector<1024x32xf32>
    %c0_8 = arith.constant 0 : index
    %c0_9 = arith.constant 0 : index
    %24 = vector.load %arg5[%c0_8, %c0_9] : memref<32x32xf32, #tpu.memory_space<vmem>>, vector<32x32xf32>
    %cst_10 = arith.constant dense<0.000000e+00> : vector<1024x32xf32>
    %25 = tpu.matmul %23, %24, %cst_10 {dimension_numbers = #tpu.dot_dimension_numbers<[1], [0], [0], [1], [0, 0, 1, 1], [], []>} : vector<1024x32xf32>, vector<32x32xf32>, vector<1024x32xf32> -> vector<1024x32xf32>
    %26 = vector.shape_cast %25 : vector<1024x32xf32> to vector<8x8x16x32xf32>
    %cst_11 = arith.constant dense<0xFF800000> : vector<8x16x32xf32>
    %27 = vector.multi_reduction <maximumf>, %26, %cst_11 [1] : vector<8x8x16x32xf32> to vector<8x16x32xf32>
    %28 = vector.shape_cast %27 : vector<8x16x32xf32> to vector<8x1x16x32xf32>
    %29 = vector.broadcast %28 : vector<8x1x16x32xf32> to vector<8x8x16x32xf32>
    %30 = arith.subf %26, %29 : vector<8x8x16x32xf32>
    %31 = math.exp %30 : vector<8x8x16x32xf32>
    %cst_12 = arith.constant dense<0.000000e+00> : vector<8x16x32xf32>
    %32 = vector.multi_reduction <add>, %31, %cst_12 [1] : vector<8x8x16x32xf32> to vector<8x16x32xf32>
    %33 = vector.shape_cast %32 : vector<8x16x32xf32> to vector<8x1x16x32xf32>
    %34 = vector.broadcast %33 : vector<8x1x16x32xf32> to vector<8x8x16x32xf32>
    %35 = arith.divf %31, %34 : vector<8x8x16x32xf32>
    %36 = vector.shape_cast %17 : vector<8x16x32xf32> to vector<1x8x16x32xf32>
    %37 = vector.broadcast %36 : vector<1x8x16x32xf32> to vector<8x8x16x32xf32>
    %38 = arith.mulf %35, %37 : vector<8x8x16x32xf32>
    %cst_13 = arith.constant dense<0.000000e+00> : vector<8x16x32xf32>
    %39 = vector.multi_reduction <add>, %38, %cst_13 [1] : vector<8x8x16x32xf32> to vector<8x16x32xf32>
    %40 = vector.shape_cast %39 : vector<8x16x32xf32> to vector<128x32xf32>
    %c0_14 = arith.constant 0 : index
    %c0_15 = arith.constant 0 : index
    %41 = vector.load %arg6[%c0_14, %c0_15] : memref<32x32xf32, #tpu.memory_space<vmem>>, vector<32x32xf32>
    %cst_16 = arith.constant dense<0.000000e+00> : vector<128x32xf32>
    %42 = tpu.matmul %40, %41, %cst_16 {dimension_numbers = #tpu.dot_dimension_numbers<[1], [0], [0], [1], [0, 0, 1, 1], [], []>} : vector<128x32xf32>, vector<32x32xf32>, vector<128x32xf32> -> vector<128x32xf32>
    %c0_17 = arith.constant 0 : index
    %c0_18 = arith.constant 0 : index
    %43 = vector.load %arg7[%c0_17, %c0_18] : memref<1x32xf32, #tpu.memory_space<vmem>>, vector<1x32xf32>
    %44 = vector.broadcast %43 : vector<1x32xf32> to vector<128x32xf32>
    %45 = arith.addf %42, %44 : vector<128x32xf32>
    %46 = vector.shape_cast %45 : vector<128x32xf32> to vector<8x16x32xf32>
    %c0_19 = arith.constant 0 : index
    %c0_20 = arith.constant 0 : index
    %c0_21 = arith.constant 0 : index
    %c0_22 = arith.constant 0 : index
    %47 = vector.load %arg8[%c0_19, %c0_20, %c0_21, %c0_22] : memref<1x8x16x32xf32, #tpu.memory_space<vmem>>, vector<1x8x16x32xf32>
    %48 = vector.shape_cast %47 : vector<1x8x16x32xf32> to vector<8x16x32xf32>
    %49 = vector.shape_cast %46 : vector<8x16x32xf32> to vector<1x8x16x32xf32>
    tpu.vector_store %arg8[%c0_19, %c0_20, %c0_21, %c0_22], %49 {strides = array<i32>} : memref<1x8x16x32xf32, #tpu.memory_space<vmem>>, vector<1x8x16x32xf32>,
    return
  }
  func.func @transform_0(%arg0: i32, %arg1: i32) -> (i32, i32, i32, i32) {
    %c0_i32 = arith.constant 0 : i32
    %c0_i32_0 = arith.constant 0 : i32
    %c0_i32_1 = arith.constant 0 : i32
    return %arg0, %c0_i32, %arg1, %c0_i32_0 : i32, i32, i32, i32
  }
  func.func @transform_1(%arg0: i32, %arg1: i32) -> (i32, i32) {
    %c0_i32 = arith.constant 0 : i32
    %c0_i32_0 = arith.constant 0 : i32
    %c0_i32_1 = arith.constant 0 : i32
    return %c0_i32, %c0_i32_0 : i32, i32
  }
  func.func @transform_2(%arg0: i32, %arg1: i32) -> (i32, i32) {
    %c0_i32 = arith.constant 0 : i32
    %c0_i32_0 = arith.constant 0 : i32
    %c0_i32_1 = arith.constant 0 : i32
    return %c0_i32, %c0_i32_0 : i32, i32
  }
  func.func @transform_3(%arg0: i32, %arg1: i32) -> (i32, i32) {
    %c0_i32 = arith.constant 0 : i32
    %c0_i32_0 = arith.constant 0 : i32
    %c0_i32_1 = arith.constant 0 : i32
    return %c0_i32, %c0_i32_0 : i32, i32
  }
  func.func @transform_4(%arg0: i32, %arg1: i32) -> (i32, i32) {
    %c0_i32 = arith.constant 0 : i32
    %c0_i32_0 = arith.constant 0 : i32
    %c0_i32_1 = arith.constant 0 : i32
    return %c0_i32, %c0_i32_0 : i32, i32
  }
  func.func @transform_5(%arg0: i32, %arg1: i32) -> (i32, i32) {
    %c0_i32 = arith.constant 0 : i32
    %c0_i32_0 = arith.constant 0 : i32
    %c0_i32_1 = arith.constant 0 : i32
    return %c0_i32, %c0_i32_0 : i32, i32
  }
  func.func @transform_6(%arg0: i32, %arg1: i32) -> (i32, i32, i32, i32) {
    %c0_i32 = arith.constant 0 : i32
    %c0_i32_0 = arith.constant 0 : i32
    %c0_i32_1 = arith.constant 0 : i32
    return %arg0, %c0_i32, %arg1, %c0_i32_0 : i32, i32, i32, i32
  }
}

</mosaic_0001>

<bundles_post_ra>
// kernel: tpu_custom_call.1
= control target key start
LH: loop header
LB: loop body
LE: loop exit
PB: predicated region body
PF: predicated region fallthrough
CT: control target
= control target key end

     0   :  { %s7856_s0 = inlined_call_operand.hbm [shape: f32[2,8,16,32], index: 0, kind: input, shape index: {}]   ;;  %s7857_s1 = inlined_call_operand.hbm [shape: f32[96,96], index: 1, kind: input, shape index: {}]   ;;  %s7858_s2 = inlined_call_operand.vmem [shape: f32[1,96], index: 2, kind: input, shape index: {}]   ;;  %s7859_s3 = inlined_call_operand.hbm [shape: f32[32,32], index: 3, kind: input, shape index: {}]   ;;  %s7860_s4 = inlined_call_operand.hbm [shape: f32[32,32], index: 4, kind: input, shape index: {}]   ;;  %s7861_s5 = inlined_call_operand.vmem [shape: f32[1,32], index: 5, kind: input, shape index: {}]   ;;  %s7862_s6 = inlined_call_operand.hbm [shape: f32[2,8,16,32], index: 6, kind: output, shape index: {}]  }
   0x1   :  { %8054 = sst [smem:[#allocation123_spill]] %s7857_s1 }
   0x2   :  { %8055 = sst [smem:[#allocation124_spill]] %s7859_s3 }
   0x3   :  { %8056 = sst [smem:[#allocation125_spill]] %s7860_s4 }
   0x4   :  { %11 = vsyncpa [#allocation3], 0 }
   0x5   :  { %13 = vsyncpa [#allocation3 + $0x1], 0 }
   0x6   :  { %14 = vsyncpa [#allocation6], 0 }
   0x7   :  { %15 = vsyncpa [#allocation9], 0 }
   0x8   :  { %16 = vsyncpa [#allocation4], 0 }
   0x9   :  { %18 = vsyncpa [#allocation4 + $0x1], 0  ;;  %s4359_s21 = smov 0   ;;  %s4361_s22 = smov 0  }
   0xa   :  { %s4363_s23 = smov 0   ;;  %s4365_s24 = smov 0  }
   0xb   :  { %s4367_s25 = smov 0   ;;  %s4369_s26 = smov 0  }
   0xc LB: > { %s3515_s27 = sadd.s32 4294967295, %s4311_s26   ;;  %s3516_s28 = sadd.s32 4294967294, %s4311_s26   ;;  %s4311_s26 = sphi %s4369_s26, %s24_s26   ;;  %s4307_s25 = sphi %s4367_s25, %s8532_s25   ;;  %s4303_s24 = sphi %s4365_s24, %s8531_s24   ;;  %s4299_s23 = sphi %s4363_s23, %s8530_s23   ;;  %s4295_s22 = sphi %s4361_s22, %s8529_s22   ;;  %s4291_s21 = sphi %s4359_s21, %s8528_s21  }
   0xd   : > { %p58_p0 = scmp.ne.s32.totalorder %s4295_s22, %s4291_s21  ;;  %p4393_p1 = scmp.eq.s32.totalorder %s3515_s27, 0 }
   0xe   : > { %p4397_p2 = scmp.eq.s32.totalorder %s3515_s27, 1  ;;  %p195_p3 = scmp.eq.s32.totalorder %s3516_s28, 1 }
   0xf   : > { %p4403_p4 = por %p4393_p1, %p58_p0  ;;  %p3517_p5 = scmp.ge.s32.totalorder %s4311_s26, 1 }
  0x10   : > { %p4408_p6 = por %p195_p3, %p58_p0  ;;  %p202_p7 = scmp.lt.s32.totalorder %s4311_s26, 3 }
  0x11   : > { %s8061_s1 = sld [smem:[#allocation123_spill]]  ;;  %s4313_s13 = smov [#allocation5]  }
  0x12   : > { %p4416_p8 = pnand %p3517_p5, %p202_p7  ;;  %s215_s14 = sshll.u32 %s4313_s13, 4  ;;  %s216_s14 = int_to_ptr.vmem [resolvable:$true] %s215_s14 }
  0x13   : > { %p3521_p11 = scmp.ge.s32.totalorder %s4311_s26, 2  ;;  %s8064_s3 = sld [smem:[#allocation124_spill]] }
  0x14   : > { %p3726_p9 = pneg %p4416_p8  ;;  %s7863_s19 = smov 128  }
  0x15   : > { %s7864_s20 = smov 8   ;;  %s4316_s27 = smov [#allocation7]  }
  0x16   : > { %p4424_p10 = pnand %p3726_p9, %p4393_p1  ;;  %s232_s28 = sshll.u32 %s4316_s27, 4  ;;  %s233_s28 = int_to_ptr.vmem [resolvable:$true] %s232_s28 }
  0x17   : > { %s213_s11 = sshll.u32 %s8061_s1, 4  ;;  %s8065_s4 = sld [smem:[#allocation125_spill]]  ;;  %s214_s11 = int_to_ptr.hbm [resolvable:$true] %s213_s11 }
  0x18   : > { %3729 = dma.hbm_to_vmem [thread:$0]  (!%p4424_p10), %s214_s11, 1536, %s216_s14, [#allocation6], %s7863_s19, %s7863_s19, %s7864_s20  }
  0x19   : > { %s230_s18 = sshll.u32 %s8064_s3, 4  ;;  %s4317_s16 = smov [#allocation8]   ;;  %s231_s18 = int_to_ptr.hbm [resolvable:$true] %s230_s18 }
  0x1a   : > { %3732 = dma.hbm_to_vmem [thread:$0]  (!%p4424_p10), %s231_s18, 512, %s233_s28, [#allocation6], %s7863_s19, %s7863_s19, %s7864_s20  }
  0x1b   : > { %s246_s17 = sshll.u32 %s4317_s16, 4  ;;  %s36_s11 = sadd.s32 1, %s4307_s25  ;;  %s247_s17 = int_to_ptr.vmem [resolvable:$true] %s246_s17 }
  0x1c   : > { %p38_p12 = scmp.ge.s32.totalorder %s36_s11, 2  ;;  %s45_s14 = sadd.s32 1, %s4299_s23 }
  0x1d   : > { %s244_s13 = sshll.u32 %s8065_s4, 4  ;;  %p52_p13 = scmp.ne.s32.totalorder %s4299_s23, %s4295_s22  ;;  %s245_s13 = int_to_ptr.hbm [resolvable:$true] %s244_s13 }
  0x1e   : > { %3735 = dma.hbm_to_vmem [thread:$0]  (!%p4424_p10), %s245_s13, 512, %s247_s17, [#allocation9], %s7863_s19, %s7863_s19, %s7864_s20  }
  0x1f   : > { %p53_p0 = scmp.eq.s32.totalorder %s4311_s26, 0  ;;  %s8534_s11 = smov (%p38_p12, %s36_s11), 0 }
  0x20   : > { %8066 = sst [smem:[#allocation15_spill]] %s8534_s11  ;;  %p4463_p5 = por %p4397_p2, %p52_p13 }
  0x21   : > { %p4457_p3 = por %p53_p0, %p52_p13  ;;  %s40_s27 = ssub.s32 %s4307_s25, %s8534_s11 }
  0x22   : > { %p3747_p7 = scmp.lt.s32.totalorder %s4311_s26, 2  ;;  %p43_p9 = scmp.eq.s32.totalorder %s40_s27, 0 }
  0x23   : > { %s263_s28 = sand.u32 1, %s4299_s23   ;;  %s3696_s13 = sshll.u32 %s4307_s25, 7 }
  0x24   : > { %s3522_s9 = sshll.u32 %s263_s28, 7  ;;  %s274_s19 = scalar_lea.hbm %s7856_s0, %s3696_s13 }
  0x25   : > { %s4472_s10 = scalar_select %p43_p9, %s4299_s23, %s45_s14  }
  0x26   : > { %s267_s20 = scalar_lea.vmem [#allocation2], %s3522_s9  ;;  %s275_s30 = sshll.u32 %s274_s19, 4  ;;  %s276_s30 = int_to_ptr.hbm [resolvable:$true] %s275_s30 }
  0x27   : > { %s277_s1 = sshll.u32 %s267_s20, 4  ;;  %p3737_p2 = pnand %p3747_p7, %p4457_p3  ;;  %s278_s1 = int_to_ptr.vmem [resolvable:$true] %s277_s1 }
  0x28   : > { %s264_s3 = scalar_lea.sflag [#allocation3], %s263_s28  ;;  %s8069_s4 = smov 8  }
  0x29   : > { %s8070_s11 = smov 128   ;;  %289 = sbr.rel (%p4416_p8) target bundleno = 1309 (0x51d), region = 44 }
  0x2a   : > { %3739 = dma.hbm_to_vmem [thread:$0]  (!%p3737_p2), %s276_s30, 2048, %s278_s1, %s264_s3, %s8070_s11, %s8070_s11, %s8069_s4  }
  0x2e   : > { %s4486_s14 = sand.u32 1, %s4295_s22  }
  0x2f   : > { %s3526_s19 = sshll.u32 %s4486_s14, 7  ;;  %s292_s20 = scalar_lea.sflag [#allocation3], %s4486_s14 }
  0x30   : > { %s4492_s18 = scalar_lea.vmem [#allocation2], %s3526_s19 }
  0x31   : > { %4274 = dma.done.wait (%p4403_p4), %s292_s20, 2048  }
  0x32   : > { %4276 = vsyncadd (%p4403_p4), %s292_s20, 4294965248 }
  0x33   : > { %4278 = dma.done.wait (%p4393_p1), [#allocation6], 2048  }
  0x34   : > { %4280 = vsyncadd (%p4393_p1), [#allocation6], 4294965248 }
  0x35   : > { %4282 = dma.done.wait (%p4393_p1), [#allocation9], 512  }
  0x36   : > { %4284 = vsyncadd (%p4393_p1), [#allocation9], 4294966784  ;;  %v4318_v0 = vmov 0.0   ;;  %s4319_s1 = smov 32   ;;  %v4508_v1 = vld [vmem:[%s4492_s18 + $0x8] sm:$0xff]  ;;  %v4511_v2 = vld [vmem:[%s4492_s18] sm:$0xff] }
  0x37   : > { %373 = vrot.lane.b32.xlu0 %v4318_v0, %s4319_s1  ;;  %s4320_s3 = smov 64   ;;  %v4516_v3 = vld [vmem:[%s4492_s18 + $0x10] sm:$0xff]  ;;  %v4523_v4 = vld [vmem:[%s4492_s18 + $0x18] sm:$0xff]  ;;  %v4532_v5 = vld [vmem:[%s4492_s18 + $0x20] sm:$0xff]  ;;  %vm468_vm0 = vcmask 261120   ;;  %vm484_vm1 = vcmask 523264  }
  0x38   : > { %422 = vrot.lane.b32.xlu1 %v4508_v1, %s4320_s3  ;;  %424 = vrot.lane.b32.xlu2 %v4516_v3, %s4320_s3  ;;  %v4541_v6 = vld [vmem:[%s4492_s18 + $0x28] sm:$0xff]  ;;  %v4544_v7 = vld [vmem:[%s4492_s18 + $0x30] sm:$0xff]  ;;  %v512_v8 = vld [vmem:[#allocation5 + $0x58] sm:$0xff]  ;;  %vm517_vm2 = vcmask 785408   ;;  %s4321_s7 = smov 96   ;;  %s7468_s27 = scalar_lea.vmem [#allocation10], %s3526_s19 }
  0x39   : > { %v511_v9 = vld [vmem:[#allocation5 + $0x50] sm:$0xff]  ;;  %570 = vmatpush.msra.mxu0 %v512_v8  ;;  %v510_v10 = vld [vmem:[#allocation5 + $0x48] sm:$0xff]  ;;  %v509_v11 = vld [vmem:[#allocation5 + $0x40] sm:$0xff]  ;;  %s3697_s28 = sshll.u32 %s4303_s24, 7  ;;  %s3396_s17 = sshll.u32 %s7468_s27, 4  ;;  %s3397_s17 = int_to_ptr.vmem [resolvable:$true] %s3396_s17 }
  0x3a   : > { %v4553_v12 = vld [vmem:[%s4492_s18 + $0x38] sm:$0xff]  ;;  %v507_v14 = vld [vmem:[#allocation5 + $0x30] sm:$0xff]  ;;  %v506_v15 = vld [vmem:[#allocation5 + $0x28] sm:$0xff]  ;;  %s3395_s16 = scalar_lea.hbm %s7862_s6, %s3697_s28  ;;  %s3382_s24 = scalar_lea.sflag [#allocation4], %s4486_s14 }
  0x3b   : > { %571 = vmatpush.msra.mxu0 %v511_v9  ;;  %v508_v13 = vld [vmem:[#allocation5 + $0x38] sm:$0xff]  ;;  %v4562_v16 = vld [vmem:[%s4492_s18 + $0x40] sm:$0xff]  ;;  %v4565_v17 = vld [vmem:[%s4492_s18 + $0x48] sm:$0xff]  ;;  %s3398_s30 = sshll.u32 %s3395_s16, 4  ;;  %s3399_s30 = int_to_ptr.hbm [resolvable:$true] %s3398_s30 }
  0x3c   : > { %v4574_v18 = vld [vmem:[%s4492_s18 + $0x50] sm:$0xff]  ;;  %v4583_v19 = vld [vmem:[%s4492_s18 + $0x58] sm:$0xff]  ;;  %v354_v20 = vld [vmem:[%s4492_s18 + $0x60] sm:$0xff]  ;;  %s4235_s19 = sshra.s32 %s3399_s30, 4  ;;  %s4236_s19 = int_to_ptr.hbm [resolvable:$true] %s4235_s19 }
  0x3d   : > { %572 = vmatpush.msra.mxu0 %v510_v10  ;;  %v505_v21 = vld [vmem:[#allocation5 + $0x20] sm:$0xff]  ;;  %v504_v22 = vld [vmem:[#allocation5 + $0x18] sm:$0xff]  ;;  %v356_v23 = vld [vmem:[%s4492_s18 + $0x70] sm:$0xff]  ;;  %s4237_s20 = scalar_lea.hbm %s4236_s19, 128  ;;  %p4242_p10 = scmp.lt.s32.totalorder %s4236_s19, %s7862_s6 }
  0x3e   : > { %v503_v24 = vld [vmem:[#allocation5 + $0x10] sm:$0xff]  ;;  %v502_v25 = vld [vmem:[#allocation5 + $0x8] sm:$0xff]  ;;  %v501_v26 = vld [vmem:[#allocation5] sm:$0xff]  ;;  %p4238_p1 = scmp.ne.s32.totalorder %s4236_s19, %s4237_s20 }
  0x3f   : > { %420 = vrot.lane.b32.xlu0 %v4511_v2, %s4320_s3  ;;  %573 = vmatpush.msra.mxu0 %v509_v11  ;;  %v357_v27 = vld [vmem:[%s4492_s18 + $0x78] sm:$0xff]  ;;  %v355_v28 = vld [vmem:[%s4492_s18 + $0x68] sm:$0xff] }
  0x40   : > { %375 = vrot.lane.b32.xlu1 %v4511_v2, %s4319_s1  ;;  %377 = vrot.lane.b32.xlu2 %v4508_v1, %s4319_s1  ;;  %p4239_p4 = pnand %p4238_p1, %p4463_p5 }
  0x41   : > { %574 = vmatpush.msra.mxu0 %v508_v13 }
  0x42   : > { %p4240_p8 = pneg %p4239_p4 }
  0x43   : > { %575 = vmatpush.msra.mxu0 %v507_v14 }
  0x45   : > { %576 = vmatpush.msra.mxu0 %v506_v15 }
  0x47   : > { %426 = vrot.lane.b32.xlu0 %v4523_v4, %s4320_s3  ;;  %577 = vmatpush.msra.mxu0 %v505_v21 }
  0x48   : > { %379 = vrot.lane.b32.xlu1 %v4516_v3, %s4319_s1  ;;  %428 = vrot.lane.b32.xlu2 %v4532_v5, %s4320_s3 }
  0x49   : > { %578 = vmatpush.msra.mxu0 %v504_v22 }
  0x4b   : > { %579 = vmatpush.msra.mxu0 %v503_v24 }
  0x4d   : > { %580 = vmatpush.msra.mxu0 %v502_v25 }
  0x4f   : > { %381 = vrot.lane.b32.xlu0 %v4523_v4, %s4319_s1  ;;  %581 = vmatpush.msra.mxu0 %v501_v26 }
  0x50   : > { %430 = vrot.lane.b32.xlu1 %v4541_v6, %s4320_s3  ;;  %383 = vrot.lane.b32.xlu2 %v4532_v5, %s4319_s1 }
  0x57   : > { %432 = vrot.lane.b32.xlu0 %v4544_v7, %s4320_s3 }
  0x58   : > { %385 = vrot.lane.b32.xlu1 %v4541_v6, %s4319_s1  ;;  %434 = vrot.lane.b32.xlu2 %v4553_v12, %s4320_s3 }
  0x5f   : > { %387 = vrot.lane.b32.xlu0 %v4544_v7, %s4319_s1 }
  0x60   : > { %436 = vrot.lane.b32.xlu1 %v4562_v16, %s4320_s3  ;;  %389 = vrot.lane.b32.xlu2 %v4553_v12, %s4319_s1 }
  0x67   : > { %438 = vrot.lane.b32.xlu0 %v4565_v17, %s4320_s3 }
  0x68   : > { %391 = vrot.lane.b32.xlu1 %v4562_v16, %s4319_s1  ;;  %440 = vrot.lane.b32.xlu2 %v4574_v18, %s4320_s3 }
  0x6f   : > { %393 = vrot.lane.b32.xlu0 %v4565_v17, %s4319_s1 }
  0x70   : > { %442 = vrot.lane.b32.xlu1 %v4583_v19, %s4320_s3  ;;  %395 = vrot.lane.b32.xlu2 %v4574_v18, %s4319_s1 }
  0x77   : > { %444 = vrot.lane.b32.xlu0 %v354_v20, %s4320_s3 }
  0x78   : > { %397 = vrot.lane.b32.xlu1 %v4583_v19, %s4319_s1  ;;  %446 = vrot.lane.b32.xlu2 %v355_v28, %s4320_s3 }
  0x7f   : > { %399 = vrot.lane.b32.xlu0 %v354_v20, %s4319_s1 }
  0x80   : > { %448 = vrot.lane.b32.xlu1 %v356_v23, %s4320_s3  ;;  %401 = vrot.lane.b32.xlu2 %v355_v28, %s4319_s1 }
  0x87   : > { %450 = vrot.lane.b32.xlu0 %v357_v27, %s4320_s3 }
  0x92   : > { %v425_v34 = vpop.permute.xlu2 %424 }
  0x9a   : > { %v378_v39 = vpop.permute.xlu2 %377 }
  0x9b   : > { %v471_v40 = vsel %vm468_vm0, 0.0, %v378_v39 }
  0xa2   : > { %v429_v45 = vpop.permute.xlu2 %428 }
  0xa9   : > { %v374_v29 = vpop.permute.xlu0 %373 }
  0xaa   : > { %v469_v30 = vsel %vm468_vm0, 0.0, %v374_v29  ;;  %v423_v32 = vpop.permute.xlu1 %422  ;;  %v384_v51 = vpop.permute.xlu2 %383 }
  0xab   : > { %v486_v35 = vsel %vm484_vm1, %v469_v30, %v423_v32  ;;  %v474_v52 = vsel %vm468_vm0, %v4516_v3, %v384_v51  ;;  %v826_v51 = vld [vmem:[#allocation7 + $0x18] sm:$0xff] }
  0xac   : > { %1223 = vmatpush.msrb.mxu0 %v826_v51  ;;  %3698 = vmatpush.msra.mxu1 %v826_v51 }
  0xad   : > { %3700 = vmatpush.msra.mxu3 %v826_v51  ;;  %3699 = vmatpush.msra.mxu2 %v826_v51 }
  0xb1   : > { %v421_v31 = vpop.permute.xlu0 %420 }
  0xb2   : > { %v485_v33 = vsel %vm484_vm1, %v469_v30, %v421_v31  ;;  %v376_v36 = vpop.permute.xlu1 %375  ;;  %v435_v57 = vpop.permute.xlu2 %434 }
  0xb3   : > { %3531 = vmatmul.msk.f32.vlgmr.msra.gmra.mxu0 %vm517_vm2, %v485_v33  ;;  %v470_v37 = vsel %vm468_vm0, 0.0, %v376_v36  ;;  %v3811_v33 = vld [vmem:[%s7858_s2] ss:$0 sm:$0xff] }
  0xb4   : > { %v487_v38 = vsel %vm484_vm1, %v470_v37, %v425_v34 }
  0xb9   : > { %v427_v41 = vpop.permute.xlu0 %426 }
  0xba   : > { %v488_v42 = vsel %vm484_vm1, %v471_v40, %v427_v41  ;;  %v380_v43 = vpop.permute.xlu1 %379  ;;  %v390_v63 = vpop.permute.xlu2 %389 }
  0xbb   : > { %3532 = vmatmul.msk.f32.gmra.mxu0 %vm517_vm2, %v486_v35  ;;  %v472_v44 = vsel %vm468_vm0, %v4511_v2, %v380_v43  ;;  %v477_v0 = vsel %vm468_vm0, %v4541_v6, %v390_v63 }
  0xbc   : > { %v489_v46 = vsel %vm484_vm1, %v472_v44, %v429_v45 }
  0xc1   : > { %v382_v47 = vpop.permute.xlu0 %381 }
  0xc2   : > { %v473_v48 = vsel %vm468_vm0, %v4508_v1, %v382_v47  ;;  %v431_v49 = vpop.permute.xlu1 %430  ;;  %v441_v8 = vpop.permute.xlu2 %440 }
  0xc3   : > { %3533 = vmatmul.msk.f32.gmra.mxu0 %vm517_vm2, %v487_v38  ;;  %v490_v50 = vsel %vm484_vm1, %v473_v48, %v431_v49 }
  0xc9   : > { %v433_v53 = vpop.permute.xlu0 %432 }
  0xca   : > { %v491_v54 = vsel %vm484_vm1, %v474_v52, %v433_v53  ;;  %v386_v55 = vpop.permute.xlu1 %385  ;;  %v396_v13 = vpop.permute.xlu2 %395 }
  0xcb   : > { %3534 = vmatmul.msk.f32.gmra.mxu0 %vm517_vm2, %v488_v42  ;;  %v475_v56 = vsel %vm468_vm0, %v4523_v4, %v386_v55  ;;  %v480_v14 = vsel %vm468_vm0, %v4562_v16, %v396_v13  ;;  %v825_v55 = vld [vmem:[#allocation7 + $0x10] sm:$0xff] }
  0xcc   : > { %v492_v58 = vsel %vm484_vm1, %v475_v56, %v435_v57  ;;  %3701 = vmatpush.msra.mxu1 %v825_v55  ;;  %3703 = vmatpush.msra.mxu3 %v825_v55 }
  0xcd   : > { %1224 = vmatpush.msrb.mxu0 %v825_v55  ;;  %3702 = vmatpush.msra.mxu2 %v825_v55 }
  0xd1   : > { %v388_v59 = vpop.permute.xlu0 %387 }
  0xd2   : > { %v476_v60 = vsel %vm468_vm0, %v4532_v5, %v388_v59  ;;  %v437_v61 = vpop.permute.xlu1 %436  ;;  %v447_v22 = vpop.permute.xlu2 %446 }
  0xd3   : > { %3535 = vmatmul.msk.f32.gmra.mxu0 %vm517_vm2, %v489_v46  ;;  %v493_v62 = vsel %vm484_vm1, %v476_v60, %v437_v61  ;;  %v824_v60 = vld [vmem:[#allocation7 + $0x8] sm:$0xff]  ;;  %v823_v61 = vld [vmem:[#allocation7] sm:$0xff] }
  0xd4   : > { %3704 = vmatpush.msra.mxu1 %v824_v60  ;;  %3706 = vmatpush.msra.mxu3 %v824_v60 }
  0xd5   : > { %1225 = vmatpush.msrb.mxu0 %v824_v60  ;;  %3705 = vmatpush.msra.mxu2 %v824_v60 }
  0xd6   : > { %3707 = vmatpush.msra.mxu1 %v823_v61  ;;  %3709 = vmatpush.msra.mxu3 %v823_v61 }
  0xd7   : > { %1226 = vmatpush.msrb.mxu0 %v823_v61  ;;  %3708 = vmatpush.msra.mxu2 %v823_v61 }
  0xd9   : > { %v439_v1 = vpop.permute.xlu0 %438 }
  0xda   : > { %v494_v2 = vsel %vm484_vm1, %v477_v0, %v439_v1  ;;  %v392_v3 = vpop.permute.xlu1 %391  ;;  %v402_v26 = vpop.permute.xlu2 %401 }
  0xdb   : > { %3536 = vmatmul.msk.f32.gmra.mxu0 %vm517_vm2, %v490_v50  ;;  %v478_v4 = vsel %vm468_vm0, %v4544_v7, %v392_v3  ;;  %v483_v27 = vsel %vm468_vm0, %v4583_v19, %v402_v26 }
  0xdc   : > { %v495_v5 = vsel %vm484_vm1, %v478_v4, %v441_v8 }
  0xe1   : > { %v394_v9 = vpop.permute.xlu0 %393 }
  0xe2   : > { %v479_v10 = vsel %vm468_vm0, %v4553_v12, %v394_v9  ;;  %v443_v11 = vpop.permute.xlu1 %442 }
  0xe3   : > { %3537 = vmatmul.msk.f32.gmra.mxu0 %vm517_vm2, %v491_v54  ;;  %v496_v6 = vsel %vm484_vm1, %v479_v10, %v443_v11 }
  0xe9   : > { %v445_v15 = vpop.permute.xlu0 %444 }
  0xea   : > { %v497_v7 = vsel %vm484_vm1, %v480_v14, %v445_v15  ;;  %v398_v20 = vpop.permute.xlu1 %397 }
  0xeb   : > { %3538 = vmatmul.msk.f32.gmra.mxu0 %vm517_vm2, %v492_v58  ;;  %v481_v21 = vsel %vm468_vm0, %v4565_v17, %v398_v20 }
  0xec   : > { %v498_v12 = vsel %vm484_vm1, %v481_v21, %v447_v22 }
  0xf1   : > { %v400_v23 = vpop.permute.xlu0 %399 }
  0xf2   : > { %v482_v24 = vsel %vm468_vm0, %v4574_v18, %v400_v23  ;;  %v449_v25 = vpop.permute.xlu1 %448 }
  0xf3   : > { %3539 = vmatmul.msk.f32.gmra.mxu0 %vm517_vm2, %v493_v62  ;;  %v499_v16 = vsel %vm484_vm1, %v482_v24, %v449_v25 }
  0xf9   : > { %v451_v28 = vpop.permute.xlu0 %450 }
  0xfa   : > { %v500_v17 = vsel %vm484_vm1, %v483_v27, %v451_v28 }
  0xfb   : > { %3540 = vmatmul.msk.f32.gmra.mxu0 %vm517_vm2, %v494_v2 }
 0x103   : > { %3541 = vmatmul.msk.f32.gmra.mxu0 %vm517_vm2, %v495_v5 }
 0x10b   : > { %3542 = vmatmul.msk.f32.gmra.mxu0 %vm517_vm2, %v496_v6 }
 0x113   : > { %3543 = vmatmul.msk.f32.gmra.mxu0 %vm517_vm2, %v497_v7 }
 0x11b   : > { %3544 = vmatmul.msk.f32.gmra.mxu0 %vm517_vm2, %v498_v12 }
 0x123   : > { %3545 = vmatmul.msk.f32.gmra.mxu0 %vm517_vm2, %v499_v16 }
 0x12b   : > { %3546 = vmatmul.msk.f32.gmra.mxu0 %vm517_vm2, %v500_v17 }
 0x130   : > { %v583_v29 = vpop.f32.mrf.mxu0 }
 0x131   : > { %v4703_v53 = vadd.f32 %v3811_v33, %v583_v29 }
 0x138   : > { %v586_v30 = vpop.f32.mrf.mxu0 }
 0x139   : > { %v4711_v57 = vadd.f32 %v3811_v33, %v586_v30 }
 0x140   : > { %v4660_v31 = vpop.f32.mrf.mxu0 }
 0x141   : > { %v4724_v62 = vadd.f32 %v3811_v33, %v4660_v31 }
 0x148   : > { %v592_v32 = vpop.f32.mrf.mxu0 }
 0x149   : > { %v4713_v58 = vadd.f32 %v3811_v33, %v592_v32 }
 0x150   : > { %v4662_v18 = vpop.f32.mrf.mxu0 }
 0x151   : > { %v4727_v63 = vadd.f32 %v3811_v33, %v4662_v18 }
 0x158   : > { %v598_v34 = vpop.f32.mrf.mxu0 }
 0x159   : > { %v4667_v35 = vadd.f32 %v3811_v33, %v598_v34 }
 0x15b   : > { %657 = vrot.lane.b32.xlu1 %v4667_v35, %s4321_s7 }
 0x160   : > { %v601_v19 = vpop.f32.mrf.mxu0 }
 0x161   : > { %v4671_v36 = vadd.f32 %v3811_v33, %v601_v19 }
 0x163   : > { %659 = vrot.lane.b32.xlu2 %v4671_v36, %s4321_s7 }
 0x168   : > { %v604_v37 = vpop.f32.mrf.mxu0 }
 0x169   : > { %v4675_v38 = vadd.f32 %v3811_v33, %v604_v37 }
 0x16b   : > { %661 = vrot.lane.b32.xlu0 %v4675_v38, %s4321_s7 }
 0x170   : > { %v607_v39 = vpop.f32.mrf.mxu0 }
 0x171   : > { %v4679_v40 = vadd.f32 %v3811_v33, %v607_v39 }
 0x173   : > { %663 = vrot.lane.b32.xlu1 %v4679_v40, %s4321_s7 }
 0x178   : > { %v610_v41 = vpop.f32.mrf.mxu0 }
 0x179   : > { %v4683_v42 = vadd.f32 %v3811_v33, %v610_v41 }
 0x17b   : > { %665 = vrot.lane.b32.xlu2 %v4683_v42, %s4321_s7 }
 0x180   : > { %v613_v43 = vpop.f32.mrf.mxu0 }
 0x181   : > { %v4687_v44 = vadd.f32 %v3811_v33, %v613_v43 }
 0x183   : > { %667 = vrot.lane.b32.xlu0 %v4687_v44, %s4321_s7 }
 0x188   : > { %v616_v45 = vpop.f32.mrf.mxu0 }
 0x189   : > { %v4691_v46 = vadd.f32 %v3811_v33, %v616_v45 }
 0x18b   : > { %669 = vrot.lane.b32.xlu1 %v4691_v46, %s4321_s7 }
 0x190   : > { %v619_v47 = vpop.f32.mrf.mxu0 }
 0x191   : > { %v4695_v48 = vadd.f32 %v3811_v33, %v619_v47 }
 0x193   : > { %671 = vrot.lane.b32.xlu2 %v4695_v48, %s4321_s7 }
 0x198   : > { %v622_v49 = vpop.f32.mrf.mxu0 }
 0x199   : > { %v4699_v50 = vadd.f32 %v3811_v33, %v622_v49 }
 0x19b   : > { %673 = vrot.lane.b32.xlu0 %v4699_v50, %s4321_s7 }
 0x1a0   : > { %v625_v52 = vpop.f32.mrf.mxu0 }
 0x1a1   : > { %v4705_v54 = vadd.f32 %v3811_v33, %v625_v52 }
 0x1a3   : > { %647 = vrot.lane.b32.xlu0 %v4703_v53, %s4321_s7  ;;  %675 = vrot.lane.b32.xlu1 %v4705_v54, %s4321_s7 }
 0x1a8   : > { %v628_v56 = vpop.f32.mrf.mxu0 }
 0x1a9   : > { %v4715_v59 = vadd.f32 %v3811_v33, %v628_v56 }
 0x1ab   : > { %653 = vrot.lane.b32.xlu0 %v4713_v58, %s4321_s7  ;;  %649 = vrot.lane.b32.xlu1 %v4711_v57, %s4321_s7 }
 0x1ac   : > { %677 = vrot.lane.b32.xlu2 %v4715_v59, %s4321_s7 }
 0x1b3   : > { %2832 = vrot.lane.b32.xlu0 %v4724_v62, %s4320_s3  ;;  %655 = vrot.lane.b32.xlu1 %v4727_v63, %s4321_s7 }
 0x1b4   : > { %651 = vrot.lane.b32.xlu2 %v4724_v62, %s4321_s7 }
 0x1bb   : > { %2844 = vrot.lane.b32.xlu0 %v4679_v40, %s4320_s3  ;;  %2836 = vrot.lane.b32.xlu1 %v4727_v63, %s4320_s3 }
 0x1bc   : > { %2828 = vrot.lane.b32.xlu2 %v4703_v53, %s4320_s3 }
 0x1bd   : > { %v4758_v2 = vpop.permute.xlu2 %659 }
 0x1be   : > { %v717_v3 = vmul.f32 %v4758_v2, %v4724_v62 }
 0x1c3   : > { %2848 = vrot.lane.b32.xlu0 %v4687_v44, %s4320_s3  ;;  %2830 = vrot.lane.b32.xlu1 %v4711_v57, %s4320_s3 }
 0x1c4   : > { %2840 = vrot.lane.b32.xlu2 %v4671_v36, %s4320_s3 }
 0x1cb   : > { %2842 = vrot.lane.b32.xlu0 %v4675_v38, %s4320_s3  ;;  %2838 = vrot.lane.b32.xlu1 %v4667_v35, %s4320_s3 }
 0x1cc   : > { %2834 = vrot.lane.b32.xlu2 %v4713_v58, %s4320_s3 }
 0x1cd   : > { %v4753_v0 = vpop.permute.xlu1 %657 }
 0x1ce   : > { %v716_v1 = vmul.f32 %v4753_v0, %v4713_v58 }
 0x1d0   : > { %3568 = vmatmul.msk.f32.vlgmr.msra.gmra.mxu1 %vm468_vm0, %v716_v1 }
 0x1d3   : > { %2850 = vrot.lane.b32.xlu0 %v4691_v46, %s4320_s3  ;;  %2856 = vrot.lane.b32.xlu1 %v4705_v54, %s4320_s3 }
 0x1d4   : > { %2852 = vrot.lane.b32.xlu2 %v4695_v48, %s4320_s3 }
 0x1d5   : > { %v4791_v6 = vpop.permute.xlu2 %665 }
 0x1d6   : > { %v720_v13 = vmul.f32 %v4791_v6, %v4713_v58  ;;  %v784_v14 = vmul.f32 %v4791_v6, %v4691_v46 }
 0x1d8   : > { %3569 = vmatmul.msk.f32.gmra.mxu1 %vm468_vm0, %v717_v3 }
 0x1db   : > { %2854 = vrot.lane.b32.xlu1 %v4699_v50, %s4320_s3 }
 0x1dc   : > { %2846 = vrot.lane.b32.xlu2 %v4683_v42, %s4320_s3 }
 0x1dd   : > { %v4773_v4 = vpop.permute.xlu0 %661 }
 0x1de   : > { %v718_v8 = vmul.f32 %v4773_v4, %v4713_v58  ;;  %v782_v5 = vmul.f32 %v4773_v4, %v4691_v46 }
 0x1e0   : > { %3570 = vmatmul.msk.f32.gmra.mxu1 %vm468_vm0, %v718_v8  ;;  %3634 = vmatmul.msk.f32.vlgmr.msra.gmra.mxu3 %vm468_vm0, %v782_v5 }
 0x1e4   : > { %2858 = vrot.lane.b32.xlu2 %v4715_v59, %s4320_s3  ;;  %s4241_s3 = scalar_lea.hbm %s7862_s6, 256 }
 0x1e5   : > { %v4783_v9 = vpop.permute.xlu1 %663  ;;  %p4243_p12 = scmp.lt.s32.totalorder %s4241_s3, %s4237_s20 }
 0x1e6   : > { %v719_v10 = vmul.f32 %v4783_v9, %v4724_v62  ;;  %v783_v11 = vmul.f32 %v4783_v9, %v4687_v44 }
 0x1e7   : > { %p4244_p13 = por %p4243_p12, %p4242_p10 }
 0x1e8   : > { %3571 = vmatmul.msk.f32.gmra.mxu1 %vm468_vm0, %v719_v10  ;;  %3635 = vmatmul.msk.f32.gmra.mxu3 %vm468_vm0, %v783_v11  ;;  %v700_v10 = vmul.f32 %v4753_v0, %v4711_v57 }
 0x1e9   : > { %p4245_p0 = pnand %p4244_p13, %p4240_p8 }
 0x1ed   : > { %v4815_v23 = vpop.permute.xlu2 %671 }
 0x1ee   : > { %v723_v24 = vmul.f32 %v4815_v23, %v4724_v62  ;;  %v787_v25 = vmul.f32 %v4815_v23, %v4687_v44 }
 0x1f0   : > { %3572 = vmatmul.msk.f32.gmra.mxu1 %vm468_vm0, %v720_v13  ;;  %3636 = vmatmul.msk.f32.gmra.mxu3 %vm468_vm0, %v784_v14 }
 0x1f5   : > { %v4799_v15 = vpop.permute.xlu0 %667 }
 0x1f6   : > { %v721_v7 = vmul.f32 %v4799_v15, %v4724_v62  ;;  %v785_v20 = vmul.f32 %v4799_v15, %v4687_v44 }
 0x1f8   : > { %3573 = vmatmul.msk.f32.gmra.mxu1 %vm468_vm0, %v721_v7  ;;  %3637 = vmatmul.msk.f32.gmra.mxu3 %vm468_vm0, %v785_v20  ;;  %v701_v7 = vmul.f32 %v4758_v2, %v4703_v53 }
 0x1fd   : > { %v4807_v21 = vpop.permute.xlu1 %669 }
 0x1fe   : > { %v722_v22 = vmul.f32 %v4807_v21, %v4713_v58  ;;  %v786_v12 = vmul.f32 %v4807_v21, %v4691_v46 }
 0x200   : > { %3574 = vmatmul.msk.f32.gmra.mxu1 %vm468_vm0, %v722_v22  ;;  %3638 = vmatmul.msk.f32.gmra.mxu3 %vm468_vm0, %v786_v12 }
 0x206   : > { %v4845_v18 = vpop.permute.xlu2 %677 }
 0x207   : > { %v726_v19 = vmul.f32 %v4845_v18, %v4713_v58  ;;  %v758_v37 = vmul.f32 %v4845_v18, %v4675_v38  ;;  %v790_v39 = vmul.f32 %v4845_v18, %v4691_v46 }
 0x208   : > { %3575 = vmatmul.msk.f32.gmra.mxu1 %vm468_vm0, %v723_v24  ;;  %3639 = vmatmul.msk.f32.gmra.mxu3 %vm468_vm0, %v787_v25  ;;  %v702_v25 = vmul.f32 %v4773_v4, %v4711_v57 }
 0x20d   : > { %v4823_v16 = vpop.permute.xlu0 %673 }
 0x20e   : > { %v724_v26 = vmul.f32 %v4823_v16, %v4713_v58  ;;  %v788_v27 = vmul.f32 %v4823_v16, %v4691_v46  ;;  %v4863_v41 = vpop.permute.xlu2 %651 }
 0x20f   : > { %v697_v43 = vmul.f32 %v4863_v41, %v4703_v53  ;;  %v729_v3 = vmul.f32 %v4863_v41, %v4727_v63  ;;  %v761_v8 = vmul.f32 %v4863_v41, %v4679_v40  ;;  %v793_v5 = vmul.f32 %v4863_v41, %v4695_v48 }
 0x210   : > { %3576 = vmatmul.msk.f32.gmra.mxu1 %vm468_vm0, %v724_v26  ;;  %3640 = vmatmul.msk.f32.gmra.mxu3 %vm468_vm0, %v788_v27  ;;  %v732_v26 = vmul.f32 %v4753_v0, %v4667_v35  ;;  %v764_v27 = vmul.f32 %v4753_v0, %v4683_v42 }
 0x215   : > { %v4831_v28 = vpop.permute.xlu1 %675  ;;  %v4833_v17 = vpop.permute.xlu0 %647 }
 0x216   : > { %v695_v29 = vmul.f32 %v4833_v17, %v4703_v53  ;;  %v725_v30 = vmul.f32 %v4831_v28, %v4724_v62  ;;  %v757_v31 = vmul.f32 %v4831_v28, %v4671_v36  ;;  %v789_v32 = vmul.f32 %v4831_v28, %v4687_v44 }
 0x217   : > { %v727_v45 = vmul.f32 %v4833_v17, %v4727_v63  ;;  %v759_v47 = vmul.f32 %v4833_v17, %v4679_v40  ;;  %v791_v49 = vmul.f32 %v4833_v17, %v4695_v48 }
 0x218   : > { %3547 = vmatmul.msk.f32.vlgmr.msrb.gmra.mxu0 %vm468_vm0, %v695_v29  ;;  %3577 = vmatmul.msk.f32.gmra.mxu1 %vm468_vm0, %v725_v30  ;;  %v796_v29 = vmul.f32 %v4753_v0, %v4699_v50 }
 0x219   : > { %3609 = vmatmul.msk.f32.vlgmr.msra.gmra.mxu2 %vm468_vm0, %v757_v31  ;;  %3641 = vmatmul.msk.f32.gmra.mxu3 %vm468_vm0, %v789_v32  ;;  %v703_v31 = vmul.f32 %v4783_v9, %v4703_v53  ;;  %v733_v32 = vmul.f32 %v4758_v2, %v4727_v63 }
 0x21d   : > { %v4849_v33 = vpop.permute.xlu1 %649  ;;  %v4877_v51 = vpop.permute.xlu0 %653 }
 0x21e   : > { %v696_v34 = vmul.f32 %v4849_v33, %v4711_v57  ;;  %v698_v52 = vmul.f32 %v4877_v51, %v4711_v57  ;;  %v728_v55 = vmul.f32 %v4849_v33, %v4667_v35  ;;  %v760_v56 = vmul.f32 %v4849_v33, %v4683_v42 }
 0x21f   : > { %v792_v60 = vmul.f32 %v4849_v33, %v4699_v50  ;;  %v730_v11 = vmul.f32 %v4877_v51, %v4667_v35  ;;  %v762_v13 = vmul.f32 %v4877_v51, %v4683_v42  ;;  %v794_v14 = vmul.f32 %v4877_v51, %v4699_v50 }
 0x220   : > { %3548 = vmatmul.msk.f32.gmra.mxu0 %vm468_vm0, %v696_v34  ;;  %3578 = vmatmul.msk.f32.gmra.mxu1 %vm468_vm0, %v726_v19  ;;  %v765_v34 = vmul.f32 %v4758_v2, %v4679_v40  ;;  %v797_v19 = vmul.f32 %v4758_v2, %v4695_v48 }
 0x221   : > { %3610 = vmatmul.msk.f32.gmra.mxu2 %vm468_vm0, %v758_v37  ;;  %3642 = vmatmul.msk.f32.gmra.mxu3 %vm468_vm0, %v790_v39  ;;  %v704_v39 = vmul.f32 %v4791_v6, %v4711_v57 }
 0x225   : > { %v4891_v61 = vpop.permute.xlu1 %655 }
 0x226   : > { %v699_v1 = vmul.f32 %v4891_v61, %v4703_v53  ;;  %v731_v20 = vmul.f32 %v4891_v61, %v4727_v63  ;;  %v763_v22 = vmul.f32 %v4891_v61, %v4679_v40  ;;  %v795_v12 = vmul.f32 %v4891_v61, %v4695_v48 }
 0x228   : > { %3549 = vmatmul.msk.f32.gmra.mxu0 %vm468_vm0, %v697_v43  ;;  %3579 = vmatmul.msk.f32.gmra.mxu1 %vm468_vm0, %v727_v45  ;;  %v734_v43 = vmul.f32 %v4773_v4, %v4667_v35  ;;  %v766_v45 = vmul.f32 %v4773_v4, %v4683_v42 }
 0x229   : > { %3611 = vmatmul.msk.f32.gmra.mxu2 %vm468_vm0, %v759_v47  ;;  %3643 = vmatmul.msk.f32.gmra.mxu3 %vm468_vm0, %v791_v49  ;;  %v798_v47 = vmul.f32 %v4773_v4, %v4699_v50 }
 0x230   : > { %3550 = vmatmul.msk.f32.gmra.mxu0 %vm468_vm0, %v698_v52  ;;  %3580 = vmatmul.msk.f32.gmra.mxu1 %vm468_vm0, %v728_v55  ;;  %v705_v55 = vmul.f32 %v4799_v15, %v4703_v53 }
 0x231   : > { %3612 = vmatmul.msk.f32.gmra.mxu2 %vm468_vm0, %v760_v56  ;;  %3644 = vmatmul.msk.f32.gmra.mxu3 %vm468_vm0, %v792_v60  ;;  %v735_v56 = vmul.f32 %v4783_v9, %v4727_v63  ;;  %v767_v60 = vmul.f32 %v4783_v9, %v4679_v40 }
 0x238   : > { %3551 = vmatmul.msk.f32.gmra.mxu0 %vm468_vm0, %v699_v1  ;;  %3581 = vmatmul.msk.f32.gmra.mxu1 %vm468_vm0, %v729_v3  ;;  %v799_v1 = vmul.f32 %v4783_v9, %v4695_v48 }
 0x239   : > { %3613 = vmatmul.msk.f32.gmra.mxu2 %vm468_vm0, %v761_v8  ;;  %3645 = vmatmul.msk.f32.gmra.mxu3 %vm468_vm0, %v793_v5  ;;  %v706_v5 = vmul.f32 %v4807_v21, %v4711_v57 }
 0x240   : > { %3552 = vmatmul.msk.f32.gmra.mxu0 %vm468_vm0, %v700_v10  ;;  %3582 = vmatmul.msk.f32.gmra.mxu1 %vm468_vm0, %v730_v11  ;;  %v736_v10 = vmul.f32 %v4791_v6, %v4667_v35  ;;  %v768_v11 = vmul.f32 %v4791_v6, %v4683_v42 }
 0x241   : > { %3614 = vmatmul.msk.f32.gmra.mxu2 %vm468_vm0, %v762_v13  ;;  %3646 = vmatmul.msk.f32.gmra.mxu3 %vm468_vm0, %v794_v14  ;;  %v800_v13 = vmul.f32 %v4791_v6, %v4699_v50 }
 0x248   : > { %3553 = vmatmul.msk.f32.gmra.mxu0 %vm468_vm0, %v701_v7  ;;  %3583 = vmatmul.msk.f32.gmra.mxu1 %vm468_vm0, %v731_v20  ;;  %v707_v20 = vmul.f32 %v4815_v23, %v4703_v53 }
 0x249   : > { %3615 = vmatmul.msk.f32.gmra.mxu2 %vm468_vm0, %v763_v22  ;;  %3647 = vmatmul.msk.f32.gmra.mxu3 %vm468_vm0, %v795_v12  ;;  %v737_v22 = vmul.f32 %v4799_v15, %v4727_v63  ;;  %v769_v12 = vmul.f32 %v4799_v15, %v4679_v40 }
 0x24d   : > { %v4929_v24 = vpop.f32.mrf.mxu1 }
 0x24e   : > { %8071 = vst [vmem:[#allocation16_spill] sm:$0xff] %v4929_v24 }
 0x250   : > { %3554 = vmatmul.msk.f32.gmra.mxu0 %vm468_vm0, %v702_v25  ;;  %3584 = vmatmul.msk.f32.gmra.mxu1 %vm468_vm0, %v732_v26  ;;  %v801_v25 = vmul.f32 %v4799_v15, %v4695_v48 }
 0x251   : > { %3616 = vmatmul.msk.f32.gmra.mxu2 %vm468_vm0, %v764_v27  ;;  %3648 = vmatmul.msk.f32.gmra.mxu3 %vm468_vm0, %v796_v29  ;;  %v708_v29 = vmul.f32 %v4823_v16, %v4711_v57 }
 0x255   : > { %v4943_v30 = vpop.f32.mrf.mxu1 }
 0x256   : > { %8072 = vst [vmem:[#allocation17_spill] sm:$0xff] %v4943_v30 }
 0x258   : > { %3555 = vmatmul.msk.f32.gmra.mxu0 %vm468_vm0, %v703_v31  ;;  %3585 = vmatmul.msk.f32.gmra.mxu1 %vm468_vm0, %v733_v32  ;;  %v738_v31 = vmul.f32 %v4807_v21, %v4667_v35  ;;  %v770_v32 = vmul.f32 %v4807_v21, %v4683_v42 }
 0x259   : > { %3617 = vmatmul.msk.f32.gmra.mxu2 %vm468_vm0, %v765_v34  ;;  %3649 = vmatmul.msk.f32.gmra.mxu3 %vm468_vm0, %v797_v19  ;;  %v802_v34 = vmul.f32 %v4807_v21, %v4699_v50 }
 0x25d   : > { %v4957_v37 = vpop.f32.mrf.mxu1 }
 0x25e   : > { %8073 = vst [vmem:[#allocation18_spill] sm:$0xff] %v4957_v37 }
 0x260   : > { %3556 = vmatmul.msk.f32.gmra.mxu0 %vm468_vm0, %v704_v39  ;;  %3586 = vmatmul.msk.f32.gmra.mxu1 %vm468_vm0, %v734_v43  ;;  %v709_v43 = vmul.f32 %v4831_v28, %v4703_v53 }
 0x261   : > { %3618 = vmatmul.msk.f32.gmra.mxu2 %vm468_vm0, %v766_v45  ;;  %3650 = vmatmul.msk.f32.gmra.mxu3 %vm468_vm0, %v798_v47  ;;  %v739_v45 = vmul.f32 %v4815_v23, %v4727_v63  ;;  %v771_v47 = vmul.f32 %v4815_v23, %v4679_v40 }
 0x263   : > { %v4971_v49 = vpop.f32.mrf.mxu3 }
 0x264   : > { %8074 = vst [vmem:[#allocation19_spill] sm:$0xff] %v4971_v49 }
 0x265   : > { %v4973_v52 = vpop.f32.mrf.mxu1 }
 0x266   : > { %8075 = vst [vmem:[#allocation20_spill] sm:$0xff] %v4973_v52 }
 0x268   : > { %3557 = vmatmul.msk.f32.gmra.mxu0 %vm468_vm0, %v705_v55  ;;  %3587 = vmatmul.msk.f32.gmra.mxu1 %vm468_vm0, %v735_v56  ;;  %v803_v55 = vmul.f32 %v4815_v23, %v4695_v48 }
 0x269   : > { %3619 = vmatmul.msk.f32.gmra.mxu2 %vm468_vm0, %v767_v60  ;;  %3651 = vmatmul.msk.f32.gmra.mxu3 %vm468_vm0, %v799_v1  ;;  %v710_v60 = vmul.f32 %v4845_v18, %v4711_v57  ;;  %v740_v1 = vmul.f32 %v4823_v16, %v4667_v35 }
 0x26b   : > { %v4987_v3 = vpop.f32.mrf.mxu3 }
 0x26c   : > { %8076 = vst [vmem:[#allocation21_spill] sm:$0xff] %v4987_v3 }
 0x26d   : > { %v4989_v8 = vpop.f32.mrf.mxu1 }
 0x26e   : > { %8077 = vst [vmem:[#allocation22_spill] sm:$0xff] %v4989_v8 }
 0x270   : > { %3558 = vmatmul.msk.f32.gmra.mxu0 %vm468_vm0, %v706_v5  ;;  %3588 = vmatmul.msk.f32.gmra.mxu1 %vm468_vm0, %v736_v10  ;;  %v772_v5 = vmul.f32 %v4823_v16, %v4683_v42  ;;  %v804_v10 = vmul.f32 %v4823_v16, %v4699_v50 }
 0x271   : > { %3620 = vmatmul.msk.f32.gmra.mxu2 %vm468_vm0, %v768_v11  ;;  %3652 = vmatmul.msk.f32.gmra.mxu3 %vm468_vm0, %v800_v13 }
 0x273   : > { %v5003_v14 = vpop.f32.mrf.mxu3 }
 0x274   : > { %8078 = vst [vmem:[#allocation23_spill] sm:$0xff] %v5003_v14 }
 0x275   : > { %v5005_v7 = vpop.f32.mrf.mxu1 }
 0x276   : > { %8079 = vst [vmem:[#allocation24_spill] sm:$0xff] %v5005_v7 }
 0x278   : > { %3559 = vmatmul.msk.f32.gmra.mxu0 %vm468_vm0, %v707_v20  ;;  %3589 = vmatmul.msk.f32.gmra.mxu1 %vm468_vm0, %v737_v22  ;;  %v711_v20 = vmul.f32 %v4833_v17, %v4724_v62  ;;  %v741_v22 = vmul.f32 %v4831_v28, %v4727_v63 }
 0x279   : > { %3621 = vmatmul.msk.f32.gmra.mxu2 %vm468_vm0, %v769_v12  ;;  %3653 = vmatmul.msk.f32.gmra.mxu3 %vm468_vm0, %v801_v25  ;;  %v773_v12 = vmul.f32 %v4831_v28, %v4679_v40  ;;  %v805_v25 = vmul.f32 %v4831_v28, %v4695_v48  ;;  %v712_v40 = vmul.f32 %v4849_v33, %v4713_v58 }
 0x27a   : > { %v742_v48 = vmul.f32 %v4845_v18, %v4667_v35 }
 0x27b   : > { %v5019_v26 = vpop.f32.mrf.mxu3 }
 0x27c   : > { %8080 = vst [vmem:[#allocation25_spill] sm:$0xff] %v5019_v26 }
 0x27d   : > { %v5021_v27 = vpop.f32.mrf.mxu1 }
 0x27e   : > { %8081 = vst [vmem:[#allocation26_spill] sm:$0xff] %v5021_v27 }
 0x280   : > { %3560 = vmatmul.msk.f32.gmra.mxu0 %vm468_vm0, %v708_v29  ;;  %3590 = vmatmul.msk.f32.gmra.mxu1 %vm468_vm0, %v738_v31 }
 0x281   : > { %3622 = vmatmul.msk.f32.gmra.mxu2 %vm468_vm0, %v770_v32  ;;  %3654 = vmatmul.msk.f32.gmra.mxu3 %vm468_vm0, %v802_v34  ;;  %v774_v34 = vmul.f32 %v4845_v18, %v4683_v42  ;;  %v713_v42 = vmul.f32 %v4863_v41, %v4724_v62 }
 0x283   : > { %v5035_v19 = vpop.f32.mrf.mxu3 }
 0x284   : > { %8082 = vst [vmem:[#allocation27_spill] sm:$0xff] %v5035_v19 }
 0x285   : > { %v5037_v39 = vpop.f32.mrf.mxu1 }
 0x286   : > { %8083 = vst [vmem:[#allocation28_spill] sm:$0xff] %v5037_v39 }
 0x288   : > { %3561 = vmatmul.msk.f32.gmra.mxu0 %vm468_vm0, %v709_v43  ;;  %3591 = vmatmul.msk.f32.gmra.mxu1 %vm468_vm0, %v739_v45  ;;  %v806_v43 = vmul.f32 %v4845_v18, %v4699_v50  ;;  %v743_v50 = vmul.f32 %v4833_v17, %v4671_v36 }
 0x289   : > { %3623 = vmatmul.msk.f32.gmra.mxu2 %vm468_vm0, %v771_v47  ;;  %3655 = vmatmul.msk.f32.gmra.mxu3 %vm468_vm0, %v803_v55 }
 0x28b   : > { %v5051_v56 = vpop.f32.mrf.mxu3 }
 0x28c   : > { %8084 = vst [vmem:[#allocation29_spill] sm:$0xff] %v5051_v56 }
 0x28d   : > { %v5053_v53 = vpop.f32.mrf.mxu1 }
 0x28e   : > { %8085 = vst [vmem:[#allocation30_spill] sm:$0xff] %v5053_v53 }
 0x290   : > { %3562 = vmatmul.msk.f32.gmra.mxu0 %vm468_vm0, %v710_v60  ;;  %3592 = vmatmul.msk.f32.gmra.mxu1 %vm468_vm0, %v740_v1  ;;  %v775_v60 = vmul.f32 %v4833_v17, %v4687_v44  ;;  %v807_v1 = vmul.f32 %v4833_v17, %v4705_v54  ;;  %v744_v17 = vmul.f32 %v4849_v33, %v4675_v38 }
 0x291   : > { %3624 = vmatmul.msk.f32.gmra.mxu2 %vm468_vm0, %v772_v5  ;;  %3656 = vmatmul.msk.f32.gmra.mxu3 %vm468_vm0, %v804_v10 }
 0x293   : > { %v5067_v11 = vpop.f32.mrf.mxu3 }
 0x294   : > { %8086 = vst [vmem:[#allocation31_spill] sm:$0xff] %v5067_v11 }
 0x295   : > { %v5069_v57 = vpop.f32.mrf.mxu0  ;;  %v5071_v13 = vpop.f32.mrf.mxu1 }
 0x296   : > { %8087 = vst [vmem:[#allocation32_spill] sm:$0xff] %v5071_v13 }
 0x298   : > { %3563 = vmatmul.msk.f32.gmra.mxu0 %vm468_vm0, %v711_v20  ;;  %3593 = vmatmul.msk.f32.gmra.mxu1 %vm468_vm0, %v741_v22 }
 0x299   : > { %3625 = vmatmul.msk.f32.gmra.mxu2 %vm468_vm0, %v773_v12  ;;  %3657 = vmatmul.msk.f32.gmra.mxu3 %vm468_vm0, %v805_v25  ;;  %v714_v12 = vmul.f32 %v4877_v51, %v4713_v58  ;;  %v776_v25 = vmul.f32 %v4849_v33, %v4691_v46 }
 0x29c   : > { %v5085_v29 = vpop.f32.mrf.mxu2  ;;  %v5087_v31 = vpop.f32.mrf.mxu3 }
 0x29d   : > { %8088 = vst [vmem:[#allocation33_spill] sm:$0xff] %v5085_v29  ;;  %v5089_v32 = vpop.f32.mrf.mxu0  ;;  %v5091_v63 = vpop.f32.mrf.mxu1 }
 0x29e   : > { %8089 = vst [vmem:[#allocation34_spill] sm:$0xff] %v5087_v31 }
 0x29f   : > { %8090 = vst [vmem:[#allocation35_spill] sm:$0xff] %v5091_v63 }
 0x2a0   : > { %3564 = vmatmul.msk.f32.gmra.mxu0 %vm468_vm0, %v712_v40  ;;  %3594 = vmatmul.msk.f32.gmra.mxu1 %vm468_vm0, %v742_v48  ;;  %v808_v40 = vmul.f32 %v4849_v33, %v4715_v59  ;;  %v3247_v48 = vld [vmem:[#allocation8 + $0x18] sm:$0xff]  ;;  %v715_v33 = vmul.f32 %v4891_v61, %v4724_v62 }
 0x2a1   : > { %3626 = vmatmul.msk.f32.gmra.mxu2 %vm468_vm0, %v774_v34  ;;  %3658 = vmatmul.msk.f32.gmra.mxu3 %vm468_vm0, %v806_v43 }
 0x2a2   : > { %3312 = vmatpush.msrb.mxu2 %v3247_v48  ;;  %v810_v48 = vmul.f32 %v4877_v51, %v4715_v59 }
 0x2a4   : > { %v5105_v45 = vpop.f32.mrf.mxu2  ;;  %v5107_v47 = vpop.f32.mrf.mxu3 }
 0x2a5   : > { %8091 = vst [vmem:[#allocation36_spill] sm:$0xff] %v5105_v45  ;;  %v5109_v55 = vpop.f32.mrf.mxu0  ;;  %v5111_v35 = vpop.f32.mrf.mxu1 }
 0x2a6   : > { %8092 = vst [vmem:[#allocation37_spill] sm:$0xff] %v5107_v47  ;;  %v747_v47 = vmul.f32 %v4891_v61, %v4671_v36 }
 0x2a7   : > { %8093 = vst [vmem:[#allocation38_spill] sm:$0xff] %v5111_v35 }
 0x2a8   : > { %3565 = vmatmul.msk.f32.gmra.mxu0 %vm468_vm0, %v713_v42  ;;  %3595 = vmatmul.msk.f32.gmra.mxu1 %vm468_vm0, %v743_v50  ;;  %v745_v50 = vmul.f32 %v4863_v41, %v4671_v36 }
 0x2a9   : > { %3627 = vmatmul.msk.f32.gmra.mxu2 %vm468_vm0, %v775_v60  ;;  %3659 = vmatmul.msk.f32.gmra.mxu3 %vm468_vm0, %v807_v1  ;;  %v777_v60 = vmul.f32 %v4863_v41, %v4687_v44  ;;  %v809_v1 = vmul.f32 %v4863_v41, %v4705_v54  ;;  %v778_v41 = vmul.f32 %v4877_v51, %v4691_v46 }
 0x2ac   : > { %v5125_v5 = vpop.f32.mrf.mxu2  ;;  %v5127_v10 = vpop.f32.mrf.mxu3 }
 0x2ad   : > { %v5129_v20 = vpop.f32.mrf.mxu0  ;;  %v5131_v22 = vpop.f32.mrf.mxu1 }
 0x2ae   : > { %8094 = vst [vmem:[#allocation39_spill] sm:$0xff] %v5131_v22 }
 0x2b0   : > { %3566 = vmatmul.msk.f32.gmra.mxu0 %vm468_vm0, %v714_v12  ;;  %3596 = vmatmul.msk.f32.gmra.mxu1 %vm468_vm0, %v744_v17 }
 0x2b1   : > { %3628 = vmatmul.msk.f32.gmra.mxu2 %vm468_vm0, %v776_v25  ;;  %3660 = vmatmul.msk.f32.gmra.mxu3 %vm468_vm0, %v808_v40  ;;  %v746_v40 = vmul.f32 %v4877_v51, %v4675_v38  ;;  %v779_v51 = vmul.f32 %v4891_v61, %v4687_v44 }
 0x2b4   : > { %v5145_v58 = vpop.f32.mrf.mxu2  ;;  %v5147_v34 = vpop.f32.mrf.mxu3 }
 0x2b5   : > { %8095 = vst [vmem:[#allocation40_spill] sm:$0xff] %v5145_v58  ;;  %v5149_v43 = vpop.f32.mrf.mxu0  ;;  %v5151_v42 = vpop.f32.mrf.mxu1 }
 0x2b6   : > { %8096 = vst [vmem:[#allocation41_spill] sm:$0xff] %v5147_v34 }
 0x2b7   : > { %8097 = vst [vmem:[#allocation42_spill] sm:$0xff] %v5151_v42 }
 0x2b8   : > { %3567 = vmatmul.msk.f32.gmra.mxu0 %vm468_vm0, %v715_v33  ;;  %3597 = vmatmul.msk.f32.gmra.mxu1 %vm468_vm0, %v745_v50 }
 0x2b9   : > { %3629 = vmatmul.msk.f32.gmra.mxu2 %vm468_vm0, %v777_v60  ;;  %3661 = vmatmul.msk.f32.gmra.mxu3 %vm468_vm0, %v809_v1 }
 0x2bc   : > { %v5165_v12 = vpop.f32.mrf.mxu2  ;;  %v5167_v62 = vpop.f32.mrf.mxu3 }
 0x2bd   : > { %v5169_v17 = vpop.f32.mrf.mxu0  ;;  %v5171_v25 = vpop.f32.mrf.mxu1 }
 0x2be   : > { %8098 = vst [vmem:[#allocation43_spill] sm:$0xff] %v5171_v25  ;;  %v815_v25 = vmul.f32 %v4783_v9, %v4705_v54 }
 0x2c0   : > { %3598 = vmatmul.msk.f32.gmra.mxu1 %vm468_vm0, %v746_v40  ;;  %v811_v40 = vmul.f32 %v4891_v61, %v4705_v54  ;;  %v780_v61 = vmul.f32 %v4753_v0, %v4691_v46  ;;  %v749_v46 = vmul.f32 %v4758_v2, %v4671_v36 }
 0x2c1   : > { %3630 = vmatmul.msk.f32.gmra.mxu2 %vm468_vm0, %v778_v41  ;;  %3662 = vmatmul.msk.f32.gmra.mxu3 %vm468_vm0, %v810_v48 }
 0x2c4   : > { %v5182_v33 = vpop.f32.mrf.mxu2  ;;  %v5184_v50 = vpop.f32.mrf.mxu3 }
 0x2c5   : > { %8099 = vst [vmem:[#allocation44_spill] sm:$0xff] %v5182_v33  ;;  %v5186_v60 = vpop.f32.mrf.mxu0  ;;  %v5188_v1 = vpop.f32.mrf.mxu1  ;;  %v3246_v33 = vld [vmem:[#allocation8 + $0x10] sm:$0xff] }
 0x2c6   : > { %8100 = vst [vmem:[#allocation45_spill] sm:$0xff] %v5184_v50  ;;  %v748_v50 = vmul.f32 %v4753_v0, %v4675_v38  ;;  %3313 = vmatpush.msrb.mxu2 %v3246_v33 }
 0x2c7   : > { %8101 = vst [vmem:[#allocation46_spill] sm:$0xff] %v5188_v1 }
 0x2c8   : > { %3599 = vmatmul.msk.f32.gmra.mxu1 %vm468_vm0, %v747_v47  ;;  %v812_v47 = vmul.f32 %v4753_v0, %v4715_v59  ;;  %v781_v0 = vmul.f32 %v4758_v2, %v4687_v44  ;;  %v750_v44 = vmul.f32 %v4773_v4, %v4675_v38 }
 0x2c9   : > { %3631 = vmatmul.msk.f32.gmra.mxu2 %vm468_vm0, %v779_v51  ;;  %3663 = vmatmul.msk.f32.gmra.mxu3 %vm468_vm0, %v811_v40 }
 0x2cc   : > { %v5199_v41 = vpop.f32.mrf.mxu2  ;;  %v5201_v48 = vpop.f32.mrf.mxu3 }
 0x2cd   : > { %8102 = vst [vmem:[#allocation47_spill] sm:$0xff] %v5199_v41  ;;  %v5203_v45 = vpop.f32.mrf.mxu0  ;;  %v5205_v63 = vpop.f32.mrf.mxu1 }
 0x2ce   : > { %8103 = vst [vmem:[#allocation48_spill] sm:$0xff] %v5205_v63 }
 0x2d0   : > { %3600 = vmatmul.msk.f32.gmra.mxu1 %vm468_vm0, %v748_v50  ;;  %v813_v50 = vmul.f32 %v4758_v2, %v4705_v54  ;;  %v814_v2 = vmul.f32 %v4773_v4, %v4715_v59  ;;  %v1673_v4 = vsel %vm468_vm0, %v5151_v42, -inf }
 0x2d1   : > { %3632 = vmatmul.msk.f32.gmra.mxu2 %vm468_vm0, %v780_v61  ;;  %3664 = vmatmul.msk.f32.gmra.mxu3 %vm468_vm0, %v812_v47 }
 0x2d4   : > { %v5216_v51 = vpop.f32.mrf.mxu2  ;;  %v5218_v40 = vpop.f32.mrf.mxu3 }
 0x2d5   : > { %8104 = vst [vmem:[#allocation49_spill] sm:$0xff] %v5216_v51  ;;  %v5220_v63 = vpop.f32.mrf.mxu0  ;;  %v5222_v41 = vpop.f32.mrf.mxu1 }
 0x2d6   : > { %8105 = vst [vmem:[#allocation50_spill] sm:$0xff] %v5218_v40  ;;  %v1677_v42 = vsel %vm468_vm0, %v5222_v41, -inf }
 0x2d8   : > { %3601 = vmatmul.msk.f32.gmra.mxu1 %vm468_vm0, %v749_v46 }
 0x2d9   : > { %3633 = vmatmul.msk.f32.gmra.mxu2 %vm468_vm0, %v781_v0  ;;  %3665 = vmatmul.msk.f32.gmra.mxu3 %vm468_vm0, %v813_v50 }
 0x2dc   : > { %v5233_v61 = vpop.f32.mrf.mxu2  ;;  %v5235_v47 = vpop.f32.mrf.mxu3 }
 0x2dd   : > { %8106 = vst [vmem:[#allocation51_spill] sm:$0xff] %v5233_v61  ;;  %v5237_v40 = vpop.f32.mrf.mxu0  ;;  %v5239_v51 = vpop.f32.mrf.mxu1 }
 0x2de   : > { %8107 = vst [vmem:[#allocation52_spill] sm:$0xff] %v5237_v40  ;;  %v1672_v40 = vsel %vm468_vm0, %v5111_v35, -inf }
 0x2df   : > { %8108 = vst [vmem:[#allocation53_spill] sm:$0xff] %v5239_v51  ;;  %v751_v51 = vmul.f32 %v4783_v9, %v4671_v36  ;;  %v1675_v9 = vsel %vm468_vm0, %v5188_v1, -inf  ;;  %v1674_v33 = vmax.f32 %v1672_v40, %v1673_v4 }
 0x2e0   : > { %3602 = vmatmul.msk.f32.gmra.mxu1 %vm468_vm0, %v750_v44 }
 0x2e1   : > { %3666 = vmatmul.msk.f32.gmra.mxu3 %vm468_vm0, %v814_v2 }
 0x2e4   : > { %v5247_v46 = vpop.f32.mrf.mxu2  ;;  %v5249_v0 = vpop.f32.mrf.mxu3 }
 0x2e5   : > { %8109 = vst [vmem:[#allocation54_spill] sm:$0xff] %v5247_v46  ;;  %v5251_v50 = vpop.f32.mrf.mxu0  ;;  %v5253_v61 = vpop.f32.mrf.mxu1 }
 0x2e6   : > { %8110 = vst [vmem:[#allocation55_spill] sm:$0xff] %v5249_v0 }
 0x2e8   : > { %3603 = vmatmul.msk.f32.gmra.mxu1 %vm468_vm0, %v751_v51  ;;  %v816_v51 = vmul.f32 %v4791_v6, %v4715_v59 }
 0x2e9   : > { %3667 = vmatmul.msk.f32.gmra.mxu3 %vm468_vm0, %v815_v25  ;;  %v752_v25 = vmul.f32 %v4791_v6, %v4675_v38 }
 0x2ec   : > { %v5263_v44 = vpop.f32.mrf.mxu2  ;;  %v5265_v2 = vpop.f32.mrf.mxu3 }
 0x2ed   : > { %8111 = vst [vmem:[#allocation56_spill] sm:$0xff] %v5263_v44  ;;  %v5267_v0 = vpop.f32.mrf.mxu0  ;;  %v5269_v46 = vpop.f32.mrf.mxu1  ;;  %v1676_v44 = vmax.f32 %v1674_v33, %v1675_v9  ;;  %v753_v9 = vmul.f32 %v4799_v15, %v4671_v36  ;;  %v5312_v33 = vmul.f32 %v4815_v23, %v4671_v36  ;;  %v5331_v36 = vmul.f32 %v4831_v28, %v4705_v54 }
 0x2ee   : > { %8112 = vst [vmem:[#allocation57_spill] sm:$0xff] %v5267_v0  ;;  %v5355_v28 = vsel %vm468_vm0, %v4971_v49, -inf }
 0x2ef   : > { %8113 = vst [vmem:[#allocation58_spill] sm:$0xff] %v5269_v46  ;;  %v1679_v46 = vsel %vm468_vm0, %v5253_v61, -inf  ;;  %v1678_v35 = vmax.f32 %v1676_v44, %v1677_v42  ;;  %v817_v44 = vmul.f32 %v4799_v15, %v4705_v54  ;;  %v818_v15 = vmul.f32 %v4807_v21, %v4715_v59 }
 0x2f0   : > { %3604 = vmatmul.msk.f32.gmra.mxu1 %vm468_vm0, %v752_v25  ;;  %v5323_v42 = vmul.f32 %v4823_v16, %v4675_v38  ;;  %8117 = vst [vmem:[#allocation62_spill] sm:$0xff] %v5355_v28 }
 0x2f1   : > { %3668 = vmatmul.msk.f32.gmra.mxu3 %vm468_vm0, %v816_v51  ;;  %v5289_v40 = vmax.f32 %v1678_v35, %v1679_v46  ;;  %v1613_v35 = vsel %vm468_vm0, %v5109_v55, -inf  ;;  %v754_v46 = vmul.f32 %v4807_v21, %v4675_v38  ;;  %v5316_v51 = vmul.f32 %v4815_v23, %v4705_v54 }
 0x2f2   : > { %v5335_v23 = vsel %vm468_vm0, %v4929_v24, -inf  ;;  %v1615_v21 = vsel %vm468_vm0, %v5149_v43, -inf  ;;  %v5343_v38 = vmul.f32 %v4845_v18, %v4715_v59  ;;  %v5351_v54 = vsel %vm468_vm0, %v4957_v37, -inf }
 0x2f3   : > { %8114 = vst [vmem:[#allocation59_spill] sm:$0xff] %v5335_v23  ;;  %v5359_v23 = vsel %vm468_vm0, %v4973_v52, -inf  ;;  %v5367_v18 = vsel %vm468_vm0, %v4989_v8, -inf  ;;  %v5393_v8 = vsel %vm468_vm0, %v5021_v27, -inf  ;;  %v1733_v27 = vsel %vm468_vm0, %v5165_v12, -inf }
 0x2f4   : > { %v5285_v1 = vpop.f32.mrf.mxu2  ;;  %v5287_v0 = vpop.f32.mrf.mxu3  ;;  %8116 = vst [vmem:[#allocation61_spill] sm:$0xff] %v5351_v54 }
 0x2f5   : > { %v5291_v4 = vpop.f32.mrf.mxu0  ;;  %v5293_v6 = vpop.f32.mrf.mxu1  ;;  %8118 = vst [vmem:[#allocation63_spill] sm:$0xff] %v5359_v23 }
 0x2f6   : > { %v5297_v25 = vsel %vm468_vm0, %v5293_v6, -inf  ;;  %8120 = vst [vmem:[#allocation65_spill] sm:$0xff] %v5367_v18  ;;  %v8134_v18 = vld [vmem:[#allocation43_spill] sm:$0xff] }
 0x2f7   : > { %8124 = vst [vmem:[#allocation69_spill] sm:$0xff] %v5393_v8 }
 0x2f8   : > { %3605 = vmatmul.msk.f32.gmra.mxu1 %vm468_vm0, %v753_v9  ;;  %v5327_v9 = vmul.f32 %v4823_v16, %v4715_v59  ;;  %v5347_v16 = vsel %vm468_vm0, %v4943_v30, -inf  ;;  %v5363_v59 = vsel %vm468_vm0, %v4987_v3, -inf  ;;  %v1617_v30 = vsel %vm468_vm0, %v5186_v60, -inf }
 0x2f9   : > { %3669 = vmatmul.msk.f32.gmra.mxu3 %vm468_vm0, %v817_v44  ;;  %v1612_v44 = vsel %vm468_vm0, %v5069_v57, -inf  ;;  %8115 = vst [vmem:[#allocation60_spill] sm:$0xff] %v5347_v16  ;;  %v5385_v3 = vsel %vm468_vm0, %v5019_v26, -inf  ;;  %v1619_v26 = vsel %vm468_vm0, %v5220_v63, -inf }
 0x2fa   : > { %v1614_v24 = vmax.f32 %v1612_v44, %v1613_v35  ;;  %8119 = vst [vmem:[#allocation64_spill] sm:$0xff] %v5363_v59  ;;  %v5377_v35 = vsel %vm468_vm0, %v5003_v14, -inf  ;;  %v5381_v44 = vsel %vm468_vm0, %v5005_v7, -inf  ;;  %v5397_v14 = vsel %vm468_vm0, %v5035_v19, -inf }
 0x2fb   : > { %8121 = vst [vmem:[#allocation66_spill] sm:$0xff] %v5377_v35  ;;  %v5401_v35 = vsel %vm468_vm0, %v5037_v39, -inf  ;;  %v5423_v39 = vsel %vm468_vm0, %v5085_v29, -inf  ;;  %v5461_v7 = vsel %vm468_vm0, %v5147_v34, -inf  ;;  %v1799_v34 = vsel %vm468_vm0, %v5265_v2, -inf }
 0x2fc   : > { %v5371_v37 = vpop.f32.mrf.mxu2  ;;  %v5373_v49 = vpop.f32.mrf.mxu3  ;;  %8122 = vst [vmem:[#allocation67_spill] sm:$0xff] %v5381_v44  ;;  %v1616_v59 = vmax.f32 %v1614_v24, %v1615_v21  ;;  %v5407_v24 = vsel %vm468_vm0, %v5051_v56, -inf  ;;  %v5411_v21 = vsel %vm468_vm0, %v5053_v53, -inf  ;;  %v1628_v56 = vsel %vm468_vm0, %v5129_v20, -inf }
 0x2fd   : > { %8123 = vst [vmem:[#allocation68_spill] sm:$0xff] %v5385_v3  ;;  %v5387_v28 = vpop.f32.mrf.mxu0  ;;  %v5389_v52 = vpop.f32.mrf.mxu1  ;;  %v5415_v3 = vsel %vm468_vm0, %v5067_v11, -inf  ;;  %v5432_v11 = vsel %vm468_vm0, %v5087_v31, -inf  ;;  %v1630_v31 = vsel %vm468_vm0, %v5169_v17, -inf }
 0x2fe   : > { %8125 = vst [vmem:[#allocation70_spill] sm:$0xff] %v5397_v14  ;;  %v1618_v19 = vmax.f32 %v1616_v59, %v1617_v30  ;;  %v5419_v14 = vsel %vm468_vm0, %v5071_v13, -inf  ;;  %v1627_v30 = vsel %vm468_vm0, %v5089_v32, -inf  ;;  %v1793_v59 = vsel %vm468_vm0, %v5167_v62, -inf }
 0x2ff   : > { %8126 = vst [vmem:[#allocation71_spill] sm:$0xff] %v5401_v35  ;;  %v5451_v13 = vsel %vm468_vm0, %v5131_v22, -inf }
 0x300   : > { %8127 = vst [vmem:[#allocation72_spill] sm:$0xff] %v5407_v24  ;;  %v1621_v24 = vsel %vm468_vm0, %v5251_v50, -inf  ;;  %3606 = vmatmul.msk.f32.gmra.mxu1 %vm468_vm0, %v754_v46  ;;  %v1620_v29 = vmax.f32 %v1618_v19, %v1619_v26  ;;  %v1792_v46 = vsel %vm468_vm0, %v5127_v10, -inf  ;;  %v1795_v26 = vsel %vm468_vm0, %v5201_v48, -inf }
 0x301   : > { %8128 = vst [vmem:[#allocation73_spill] sm:$0xff] %v5411_v21  ;;  %3670 = vmatmul.msk.f32.gmra.mxu3 %vm468_vm0, %v818_v15  ;;  %v5457_v15 = vsel %vm468_vm0, %v5145_v58, -inf  ;;  %v8136_v58 = vld [vmem:[#allocation57_spill] sm:$0xff] }
 0x302   : > { %8129 = vst [vmem:[#allocation74_spill] sm:$0xff] %v5415_v3  ;;  %v1629_v3 = vmax.f32 %v1627_v30, %v1628_v56  ;;  %v1622_v19 = vmax.f32 %v1620_v29, %v1621_v24  ;;  %v1632_v56 = vsel %vm468_vm0, %v5203_v45, -inf  ;;  %v1797_v24 = vsel %vm468_vm0, %v5235_v47, -inf }
 0x303   : > { %8130 = vst [vmem:[#allocation75_spill] sm:$0xff] %v5419_v14  ;;  %v1794_v14 = vmax.f32 %v1792_v46, %v1793_v59  ;;  %v8133_v46 = vld [vmem:[#allocation52_spill] sm:$0xff]  ;;  %v1636_v22 = vsel %vm468_vm0, %v8136_v58, -inf }
 0x304   : > { %8131 = vst [vmem:[#allocation76_spill] sm:$0xff] %v5423_v39  ;;  %v5441_v39 = vsel %vm468_vm0, %v5125_v5, -inf  ;;  %v5465_v30 = vpop.f32.mrf.mxu2  ;;  %v5467_v53 = vpop.f32.mrf.mxu3  ;;  %v1631_v29 = vmax.f32 %v1629_v3, %v1630_v31  ;;  %v1634_v23 = vsel %vm468_vm0, %v8133_v46, -inf  ;;  %v1688_v3 = vsel %vm468_vm0, %v8134_v18, -inf  ;;  %v8141_v18 = vld [vmem:[#allocation49_spill] sm:$0xff] }
 0x305   : > { %8132 = vst [vmem:[#allocation77_spill] sm:$0xff] %v5432_v11  ;;  %v1623_v11 = vsel %vm468_vm0, %v5291_v4, -inf  ;;  %v5473_v44 = vpop.f32.mrf.mxu0  ;;  %v5475_v21 = vpop.f32.mrf.mxu1  ;;  %v1796_v59 = vmax.f32 %v1794_v14, %v1795_v26  ;;  %v1734_v14 = vmax.f32 %v5441_v39, %v1733_v27  ;;  %v1689_v39 = vmax.f32 %v5451_v13, %v1688_v3  ;;  %v8140_v13 = vld [vmem:[#allocation48_spill] sm:$0xff] }
 0x306   : > { %v1624_v35 = vmax.f32 %v1622_v19, %v1623_v11  ;;  %v1625_v8 = vsel %vm468_vm0, %v5473_v44, -inf  ;;  %v1683_v16 = vsel %vm468_vm0, %v5475_v21, -inf  ;;  %v1633_v31 = vmax.f32 %v1631_v29, %v1632_v56 }
 0x307   : > { %v8135_v11 = vmax.f32 %v5289_v40, %v5297_v25  ;;  %v1798_v26 = vmax.f32 %v1796_v59, %v1797_v24  ;;  %v8137_v25 = vld [vmem:[#allocation44_spill] sm:$0xff]  ;;  %v8138_v24 = vld [vmem:[#allocation45_spill] sm:$0xff]  ;;  %v8139_v59 = vld [vmem:[#allocation47_spill] sm:$0xff]  ;;  %v1690_v3 = vsel %vm468_vm0, %v8140_v13, -inf }
 0x308   : > { %v5485_v54 = vmax.f32 %v1624_v35, %v1625_v8  ;;  %3607 = vmatmul.msk.f32.gmra.mxu1 %vm468_vm0, %v5312_v33  ;;  %v1635_v56 = vmax.f32 %v1633_v31, %v1634_v23  ;;  %v1801_v33 = vsel %vm468_vm0, %v5373_v49, -inf }
 0x309   : > { %v5490_v19 = vmax.f32 %v8135_v11, %v1683_v16  ;;  %3671 = vmatmul.msk.f32.gmra.mxu3 %vm468_vm0, %v5316_v51  ;;  %v1748_v16 = vsel %vm468_vm0, %v8137_v25, -inf  ;;  %v1800_v23 = vmax.f32 %v1798_v26, %v1799_v34  ;;  %v1735_v51 = vsel %vm468_vm0, %v8139_v59, -inf }
 0x30a   : > { %v1852_v8 = vsub.f32 %v5069_v57, %v5485_v54  ;;  %v1854_v40 = vsub.f32 %v5109_v55, %v5485_v54  ;;  %v1856_v27 = vsub.f32 %v5149_v43, %v5485_v54  ;;  %v1638_v57 = vsel %vm468_vm0, %v5387_v28, -inf }
 0x30b   : > { %v1637_v35 = vmax.f32 %v1635_v56, %v1636_v22  ;;  %v1808_v43 = vsel %vm468_vm0, %v8138_v24, -inf  ;;  %v1858_v31 = vsub.f32 %v5186_v60, %v5485_v54  ;;  %v1802_v34 = vmax.f32 %v1800_v23, %v1801_v33 }
 0x30c   : > { %v1980_v55 = vmul.f32 1.442695, %v1852_v8  ;;  %v1984_v29 = vmul.f32 1.442695, %v1854_v40  ;;  %v5522_v11 = vpop.f32.mrf.mxu2  ;;  %v5524_v25 = vpop.f32.mrf.mxu3  ;;  %v1988_v26 = vmul.f32 1.442695, %v1856_v27  ;;  %v1749_v8 = vmax.f32 %v5457_v15, %v1748_v16 }
 0x30d   : > { %v1639_v22 = vmax.f32 %v1637_v35, %v1638_v57  ;;  %v5526_v56 = vpop.f32.mrf.mxu0  ;;  %v1803_v40 = vsel %vm468_vm0, %v5524_v25, -inf  ;;  %v5533_v60 = vpop.f32.mrf.mxu1  ;;  %v1809_v13 = vmax.f32 %v5461_v7, %v1808_v43  ;;  %v1750_v33 = vsel %vm468_vm0, %v8141_v18, -inf  ;;  %v8144_v43 = vld [vmem:[#allocation53_spill] sm:$0xff] }
 0x30e   : > { %3813 = vpow2.f32 %v1980_v55  ;;  %v1640_v24 = vsel %vm468_vm0, %v5526_v56, -inf  ;;  %v5538_v57 = vmax.f32 %v1802_v34, %v1803_v40  ;;  %v1736_v23 = vmax.f32 %v1734_v14, %v1735_v51 }
 0x30f   : > { %3815 = vpow2.f32 %v1984_v29  ;;  %v5540_v27 = vmax.f32 %v1639_v22, %v1640_v24  ;;  %v5542_v15 = vmax.f32 %v1689_v39, %v1690_v3  ;;  %v1860_v16 = vsub.f32 %v5220_v63, %v5485_v54  ;;  %v8142_v63 = vld [vmem:[#allocation50_spill] sm:$0xff]  ;;  %v8143_v24 = vld [vmem:[#allocation51_spill] sm:$0xff] }
 0x310   : > { %v1992_v35 = vmul.f32 1.442695, %v1858_v31  ;;  %3608 = vmatmul.msk.f32.gmra.mxu1 %vm468_vm0, %v5323_v42  ;;  %3817 = vpow2.f32 %v1988_v26  ;;  %v5556_v14 = vmax.f32 %v1749_v8, %v1750_v33  ;;  %v1810_v39 = vsel %vm468_vm0, %v8142_v63, -inf }
 0x311   : > { %v1853_v7 = vsub.f32 %v5089_v32, %v5540_v27  ;;  %v1855_v55 = vsub.f32 %v5129_v20, %v5540_v27  ;;  %v1857_v29 = vsub.f32 %v5169_v17, %v5540_v27  ;;  %3672 = vmatmul.msk.f32.gmra.mxu3 %vm468_vm0, %v5327_v9  ;;  %v1737_v42 = vsel %vm468_vm0, %v8143_v24, -inf  ;;  %v8146_v20 = vld [vmem:[#allocation56_spill] sm:$0xff] }
 0x312   : > { %v5564_v32 = vsel %vm468_vm0, %v8144_v43, -inf  ;;  %v1739_v17 = vsel %vm468_vm0, %v8146_v20, -inf  ;;  %v1862_v9 = vsub.f32 %v5251_v50, %v5485_v54  ;;  %v1864_v3 = vsub.f32 %v5291_v4, %v5485_v54 }
 0x313   : > { %v1982_v31 = vmul.f32 1.442695, %v1853_v7  ;;  %3819 = vpow2.f32 %v1992_v35  ;;  %v1996_v22 = vmul.f32 1.442695, %v1860_v16  ;;  %v1986_v8 = vmul.f32 1.442695, %v1855_v55 }
 0x314   : > { %v5566_v51 = vpop.eup %3813  ;;  %v5578_v40 = vpop.f32.mrf.mxu2  ;;  %v1859_v50 = vsub.f32 %v5203_v45, %v5540_v27  ;;  %v1990_v63 = vmul.f32 1.442695, %v1857_v29  ;;  %v5584_v4 = vmax.f32 %v1809_v13, %v1810_v39  ;;  %v1738_v7 = vmax.f32 %v1736_v23, %v1737_v42  ;;  %v8149_v55 = vld [vmem:[#allocation54_spill] sm:$0xff]  ;;  %v8150_v39 = vld [vmem:[#allocation55_spill] sm:$0xff] }
 0x315   : > { %8145 = vst [vmem:[#allocation52_spill] sm:$0xff] %v5566_v51  ;;  %v5574_v34 = vpop.eup %3815  ;;  %v2236_v26 = vsel %vm468_vm0, %v5566_v51, 0.0  ;;  %3821 = vpow2.f32 %v1982_v31  ;;  %v5592_v51 = vsel %vm468_vm0, %v8149_v55, -inf  ;;  %v2000_v18 = vmul.f32 1.442695, %v1862_v9  ;;  %v5598_v29 = vpop.f32.mrf.mxu1 }
 0x316   : > { %8147 = vst [vmem:[#allocation57_spill] sm:$0xff] %v5574_v34  ;;  %v2237_v33 = vsel %vm468_vm0, %v5574_v34, 0.0  ;;  %3823 = vpow2.f32 %v1986_v8  ;;  %v5588_v35 = vpop.eup %3817  ;;  %v1741_v34 = vsel %vm468_vm0, %v5371_v37, -inf  ;;  %v1740_v31 = vmax.f32 %v1738_v7, %v1739_v17 }
 0x317   : > { %8148 = vst [vmem:[#allocation47_spill] sm:$0xff] %v5588_v35  ;;  %v2238_v45 = vadd.f32 %v2237_v33, %v2236_v26  ;;  %3825 = vpow2.f32 %v1996_v22  ;;  %v2004_v13 = vmul.f32 1.442695, %v1864_v3  ;;  %v1861_v23 = vsub.f32 %v8133_v46, %v5540_v27 }
 0x318   : > { %v5602_v42 = vsel %vm468_vm0, %v8150_v39, -inf  ;;  %v1866_v8 = vsub.f32 %v5473_v44, %v5485_v54  ;;  %3827 = vpow2.f32 %v1990_v63  ;;  %v1994_v16 = vmul.f32 1.442695, %v1859_v50 }
 0x319   : > { %3673 = vmatmul.msk.f32.gmra.mxu3 %vm468_vm0, %v5331_v36  ;;  %v5608_v17 = vpop.eup %3819  ;;  %v1742_v46 = vmax.f32 %v1740_v31, %v1741_v34  ;;  %v2239_v3 = vsel %vm468_vm0, %v5588_v35, 0.0  ;;  %v1743_v22 = vsel %vm468_vm0, %v5522_v11, -inf  ;;  %3829 = vpow2.f32 %v2000_v18 }
 0x31a   : > { %8151 = vst [vmem:[#allocation51_spill] sm:$0xff] %v5608_v17  ;;  %v2240_v54 = vadd.f32 %v2239_v3, %v2238_v45  ;;  %v1863_v44 = vsub.f32 %v8136_v58, %v5540_v27  ;;  %v1685_v36 = vsel %vm468_vm0, %v5598_v29, -inf  ;;  %3831 = vpow2.f32 %v2004_v13 }
 0x31b   : > { %v5616_v26 = vpop.eup %3821  ;;  %v1998_v34 = vmul.f32 1.442695, %v1861_v23  ;;  %v5627_v50 = vmax.f32 %v5490_v19, %v1685_v36  ;;  %v2008_v7 = vmul.f32 1.442695, %v1866_v8  ;;  %v1744_v31 = vmax.f32 %v1742_v46, %v1743_v22  ;;  %v8155_v8 = vld [vmem:[#allocation38_spill] sm:$0xff] }
 0x31c   : > { %8152 = vst [vmem:[#allocation53_spill] sm:$0xff] %v5616_v26  ;;  %v5622_v63 = vpop.eup %3823  ;;  %v2251_v33 = vsel %vm468_vm0, %v5616_v26, 0.0  ;;  %3833 = vpow2.f32 %v1994_v16  ;;  %v5631_v58 = vpop.f32.mrf.mxu2  ;;  %v2241_v13 = vsel %vm468_vm0, %v5608_v17, 0.0  ;;  %v1865_v23 = vsub.f32 %v5387_v28, %v5540_v27  ;;  %v8157_v36 = vld [vmem:[#allocation42_spill] sm:$0xff] }
 0x31d   : > { %8153 = vst [vmem:[#allocation56_spill] sm:$0xff] %v5622_v63  ;;  %v2252_v18 = vsel %vm468_vm0, %v5622_v63, 0.0  ;;  %v5633_v45 = vpop.eup %3825  ;;  %v1867_v19 = vsub.f32 %v5526_v56, %v5540_v27  ;;  %v1884_v46 = vsub.f32 %v8155_v8, %v5627_v50  ;;  %v2242_v3 = vadd.f32 %v2241_v13, %v2240_v54  ;;  %v8158_v63 = vld [vmem:[#allocation46_spill] sm:$0xff] }
 0x31e   : > { %8154 = vst [vmem:[#allocation54_spill] sm:$0xff] %v5633_v45  ;;  %v5643_v16 = vpop.eup %3827  ;;  %v2253_v22 = vadd.f32 %v2252_v18, %v2251_v33  ;;  %v1886_v9 = vsub.f32 %v8157_v36, %v5627_v50  ;;  %v1888_v26 = vsub.f32 %v8158_v63, %v5627_v50  ;;  %3835 = vpow2.f32 %v1998_v34 }
 0x31f   : > { %8156 = vst [vmem:[#allocation55_spill] sm:$0xff] %v5643_v16  ;;  %v2002_v17 = vmul.f32 1.442695, %v1863_v44  ;;  %v1892_v28 = vsub.f32 %v5253_v61, %v5627_v50  ;;  %v1745_v56 = vsel %vm468_vm0, %v5631_v58, -inf  ;;  %v5653_v27 = vpop.eup %3829  ;;  %v1890_v54 = vsub.f32 %v5222_v41, %v5627_v50 }
 0x320   : > { %v1894_v33 = vsub.f32 %v5293_v6, %v5627_v50  ;;  %v1896_v18 = vsub.f32 %v5475_v21, %v5627_v50  ;;  %v1898_v44 = vsub.f32 %v5598_v29, %v5627_v50  ;;  %v5665_v61 = vpop.eup %3831  ;;  %3837 = vpow2.f32 %v2008_v7  ;;  %v8159_v29 = vld [vmem:[#allocation58_spill] sm:$0xff] }
 0x321   : > { %3674 = vmatmul.msk.f32.gmra.mxu3 %vm468_vm0, %v5343_v38  ;;  %v2243_v63 = vsel %vm468_vm0, %v5633_v45, 0.0  ;;  %v2254_v41 = vsel %vm468_vm0, %v5643_v16, 0.0  ;;  %v2044_v34 = vmul.f32 1.442695, %v1884_v46  ;;  %v2048_v8 = vmul.f32 1.442695, %v1886_v9 }
 0x322   : > { %v5671_v6 = vpop.eup %3833  ;;  %v2244_v13 = vadd.f32 %v2243_v63, %v2242_v3  ;;  %v2255_v21 = vadd.f32 %v2254_v41, %v2253_v22  ;;  %v2052_v36 = vmul.f32 1.442695, %v1888_v26  ;;  %v1694_v50 = vsel %vm468_vm0, %v8159_v29, -inf }
 0x323   : > { %3839 = vpow2.f32 %v2002_v17  ;;  %v2006_v38 = vmul.f32 1.442695, %v1865_v23  ;;  %v5675_v35 = vmax.f32 %v1744_v31, %v1745_v56  ;;  %v1754_v7 = vsel %vm468_vm0, %v5285_v1, -inf  ;;  %v5687_v23 = vpop.f32.mrf.mxu3 }
 0x324   : > { %v1814_v16 = vsel %vm468_vm0, %v5287_v0, -inf  ;;  %3841 = vpow2.f32 %v2044_v34  ;;  %v2056_v46 = vmul.f32 1.442695, %v1890_v54  ;;  %v5681_v45 = vpop.eup %3835  ;;  %v2245_v9 = vsel %vm468_vm0, %v5653_v27, 0.0 }
 0x325   : > { %v2010_v26 = vmul.f32 1.442695, %v1867_v19  ;;  %v2256_v17 = vsel %vm468_vm0, %v5671_v6, 0.0  ;;  %3843 = vpow2.f32 %v2048_v8  ;;  %v2246_v31 = vadd.f32 %v2245_v9, %v2244_v13 }
 0x326   : > { %v2257_v3 = vadd.f32 %v2256_v17, %v2255_v21  ;;  %3845 = vpow2.f32 %v2052_v36  ;;  %v2060_v22 = vmul.f32 1.442695, %v1892_v28  ;;  %v5689_v56 = vpop.eup %3837  ;;  %v1813_v54 = vmax.f32 %v5584_v4, %v5602_v42 }
 0x327   : > { %3847 = vpow2.f32 %v2006_v38  ;;  %v1916_v63 = vsub.f32 %v5125_v5, %v5675_v35  ;;  %v1918_v19 = vsub.f32 %v5165_v12, %v5675_v35  ;;  %v8160_v41 = vmax.f32 %v5542_v15, %v5564_v32 }
 0x328   : > { %v8161_v28 = vmax.f32 %v5556_v14, %v5592_v51  ;;  %3849 = vpow2.f32 %v2056_v46  ;;  %v2064_v21 = vmul.f32 1.442695, %v1894_v33  ;;  %v5709_v42 = vmax.f32 %v1813_v54, %v1814_v16 }
 0x329   : > { %v5700_v34 = vmax.f32 %v8160_v41, %v1694_v50  ;;  %v5707_v4 = vpop.eup %3839  ;;  %v2247_v5 = vsel %vm468_vm0, %v5665_v61, 0.0  ;;  %3851 = vpow2.f32 %v2010_v26  ;;  %v2258_v12 = vsel %vm468_vm0, %v5681_v45, 0.0 }
 0x32a   : > { %v5705_v13 = vmax.f32 %v8161_v28, %v1754_v7  ;;  %v5715_v15 = vpop.eup %3841  ;;  %v2248_v32 = vadd.f32 %v2247_v5, %v2246_v31  ;;  %v2259_v8 = vadd.f32 %v2258_v12, %v2257_v3  ;;  %3853 = vpow2.f32 %v2060_v22 }
 0x32b   : > { %8162 = vst [vmem:[#allocation38_spill] sm:$0xff] %v5715_v15  ;;  %v2068_v14 = vmul.f32 1.442695, %v1896_v18  ;;  %v5717_v51 = vpop.eup %3843  ;;  %v2296_v33 = vsel %vm468_vm0, %v5715_v15, 0.0  ;;  %v1920_v16 = vsub.f32 %v8139_v59, %v5675_v35  ;;  %v2108_v36 = vmul.f32 1.442695, %v1916_v63  ;;  %v5749_v41 = vpop.f32.mrf.mxu3 }
 0x32c   : > { %8163 = vst [vmem:[#allocation42_spill] sm:$0xff] %v5717_v51  ;;  %v2112_v50 = vmul.f32 1.442695, %v1918_v19  ;;  %v5723_v38 = vpop.eup %3845  ;;  %v5727_v7 = vsel %vm468_vm0, %v5389_v52, -inf  ;;  %3855 = vpow2.f32 %v2064_v21  ;;  %v2072_v46 = vmul.f32 1.442695, %v1898_v44 }
 0x32d   : > { %8164 = vst [vmem:[#allocation46_spill] sm:$0xff] %v5723_v38  ;;  %v1922_v18 = vsub.f32 %v8143_v24, %v5675_v35  ;;  %v5731_v9 = vpop.eup %3847  ;;  %v2249_v26 = vsel %vm468_vm0, %v5689_v56, 0.0  ;;  %v2297_v59 = vsel %vm468_vm0, %v5717_v51, 0.0  ;;  %v1924_v17 = vsub.f32 %v8146_v20, %v5675_v35 }
 0x32e   : > { %3857 = vpow2.f32 %v2108_v36  ;;  %v5739_v31 = vpop.eup %3849  ;;  %v5741_v3 = vadd.f32 %v2249_v26, %v2248_v32  ;;  %v2260_v44 = vsel %vm468_vm0, %v5707_v4, 0.0  ;;  %v2298_v24 = vadd.f32 %v2297_v59, %v2296_v33 }
 0x32f   : > { %8165 = vst [vmem:[#allocation58_spill] sm:$0xff] %v5739_v31  ;;  %3859 = vpow2.f32 %v2068_v14  ;;  %v5745_v22 = vpop.eup %3851  ;;  %v2261_v54 = vadd.f32 %v2260_v44, %v2259_v8  ;;  %v2299_v63 = vsel %vm468_vm0, %v5723_v38, 0.0  ;;  %v2116_v19 = vmul.f32 1.442695, %v1920_v16 }
 0x330   : > { %3861 = vpow2.f32 %v2112_v50  ;;  %v5751_v20 = vpop.eup %3853  ;;  %v2300_v28 = vadd.f32 %v2299_v63, %v2298_v24  ;;  %v1926_v21 = vsub.f32 %v5371_v37, %v5675_v35  ;;  %v2120_v5 = vmul.f32 1.442695, %v1922_v18 }
 0x331   : > { %8166 = vst [vmem:[#allocation78_spill] sm:$0xff] %v5751_v20  ;;  %3863 = vpow2.f32 %v2072_v46  ;;  %v2301_v12 = vsel %vm468_vm0, %v5739_v31, 0.0  ;;  %v1928_v32 = vsub.f32 %v5522_v11, %v5675_v35  ;;  %v2124_v8 = vmul.f32 1.442695, %v1924_v17 }
 0x332   : > { %3865 = vpow2.f32 %v2116_v19  ;;  %v5759_v14 = vpop.eup %3855  ;;  %v2262_v33 = vsel %vm468_vm0, %v5731_v9, 0.0  ;;  %v2302_v16 = vadd.f32 %v2301_v12, %v2300_v28  ;;  %v1805_v36 = vsel %vm468_vm0, %v5749_v41, -inf }
 0x333   : > { %8167 = vst [vmem:[#allocation79_spill] sm:$0xff] %v5759_v14  ;;  %3867 = vpow2.f32 %v2120_v5  ;;  %v5769_v50 = vsel %vm468_vm0, %v5465_v30, -inf  ;;  %v2263_v11 = vadd.f32 %v2262_v33, %v2261_v54  ;;  %v2303_v46 = vsel %vm468_vm0, %v5751_v20, 0.0 }
 0x334   : > { %v5765_v37 = vpop.eup %3857  ;;  %3869 = vrcp.f32 %v5741_v3  ;;  %v2304_v26 = vadd.f32 %v2303_v46, %v2302_v16  ;;  %v1930_v59 = vsub.f32 %v5631_v58, %v5675_v35  ;;  %v2128_v17 = vmul.f32 1.442695, %v1926_v21 }
 0x335   : > { %8168 = vst [vmem:[#allocation80_spill] sm:$0xff] %v5765_v37  ;;  %v5774_v18 = vpop.eup %3859  ;;  %3871 = vpow2.f32 %v2124_v8  ;;  %v2305_v24 = vsel %vm468_vm0, %v5759_v14, 0.0  ;;  %v2132_v63 = vmul.f32 1.442695, %v1928_v32  ;;  %v2356_v54 = vsel %vm468_vm0, %v5765_v37, 0.0 }
 0x336   : > { %8169 = vst [vmem:[#allocation81_spill] sm:$0xff] %v5774_v18  ;;  %v5778_v44 = vpop.eup %3861  ;;  %v5785_v19 = vmax.f32 %v5538_v57, %v1805_v36  ;;  %v1697_v5 = vmax.f32 %v5700_v34, %v5727_v7  ;;  %v1816_v35 = vsel %vm468_vm0, %v5467_v53, -inf  ;;  %v2306_v58 = vadd.f32 %v2305_v24, %v2304_v26 }
 0x337   : > { %8170 = vst [vmem:[#allocation82_spill] sm:$0xff] %v5778_v44  ;;  %v5787_v28 = vpop.eup %3863  ;;  %v2357_v21 = vsel %vm468_vm0, %v5778_v44, 0.0  ;;  %v1757_v32 = vmax.f32 %v5705_v13, %v5769_v50  ;;  %v2264_v57 = vsel %vm468_vm0, %v5745_v22, 0.0  ;;  %v2307_v8 = vsel %vm468_vm0, %v5774_v18, 0.0  ;;  %v8268_v18 = vld [vmem:[#allocation30_spill] sm:$0xff] }
 0x338   : > { %v5795_v12 = vpop.eup %3865  ;;  %v2358_v33 = vadd.f32 %v2357_v21, %v2356_v54  ;;  %v5805_v7 = vadd.f32 %v2264_v57, %v2263_v11  ;;  %v2308_v16 = vadd.f32 %v2307_v8, %v2306_v58  ;;  %3873 = vpow2.f32 %v2128_v17 }
 0x339   : > { %8171 = vst [vmem:[#allocation83_spill] sm:$0xff] %v5795_v12  ;;  %v5803_v34 = vpop.eup %3867  ;;  %v2359_v36 = vsel %vm468_vm0, %v5795_v12, 0.0  ;;  %v2309_v13 = vsel %vm468_vm0, %v5787_v28, 0.0  ;;  %3875 = vpow2.f32 %v2132_v63  ;;  %v2136_v50 = vmul.f32 1.442695, %v1930_v59 }
 0x33a   : > { %8172 = vst [vmem:[#allocation84_spill] sm:$0xff] %v5803_v34  ;;  %v5809_v46 = vpop.eup %3869  ;;  %v2360_v26 = vadd.f32 %v2359_v36, %v2358_v33  ;;  %v5815_v54 = vadd.f32 %v2309_v13, %v2308_v16  ;;  %v2361_v11 = vsel %vm468_vm0, %v5803_v34, 0.0  ;;  %v1948_v17 = vsub.f32 %v5127_v10, %v5785_v19 }
 0x33b   : > { %v5813_v24 = vpop.eup %3871  ;;  %v1958_v58 = vsub.f32 %v5373_v49, %v5785_v19  ;;  %v1950_v57 = vsub.f32 %v5167_v62, %v5785_v19  ;;  %v1952_v59 = vsub.f32 %v5201_v48, %v5785_v19  ;;  %v1960_v63 = vsub.f32 %v5524_v25, %v5785_v19 }
 0x33c   : > { %8173 = vst [vmem:[#allocation85_spill] sm:$0xff] %v5813_v24  ;;  %v2362_v21 = vadd.f32 %v2361_v11, %v2360_v26  ;;  %v2477_v8 = vmul.f32 %v5809_v46, %v5741_v3  ;;  %v1698_v33 = vsel %vm468_vm0, %v5533_v60, -inf  ;;  %3877 = vrcp.f32 %v5815_v54  ;;  %v5850_v11 = vpop.f32.mrf.mxu1 }
 0x33d   : > { %v1954_v49 = vsub.f32 %v5235_v47, %v5785_v19  ;;  %v1817_v10 = vmax.f32 %v5709_v42, %v1816_v35  ;;  %3879 = vpow2.f32 %v2136_v50  ;;  %v2363_v62 = vsel %vm468_vm0, %v5813_v24, 0.0 }
 0x33e   : > { %v1956_v48 = vsub.f32 %v5265_v2, %v5785_v19  ;;  %v5841_v25 = vpop.eup %3873  ;;  %v1758_v16 = vsel %vm468_vm0, %v5578_v40, -inf  ;;  %v2364_v36 = vadd.f32 %v2363_v62, %v2362_v21  ;;  %v1962_v13 = vsub.f32 %v5749_v41, %v5785_v19 }
 0x33f   : > { %8174 = vst [vmem:[#allocation86_spill] sm:$0xff] %v5841_v25  ;;  %v2172_v26 = vmul.f32 1.442695, %v1948_v17  ;;  %v5847_v47 = vpop.eup %3875  ;;  %3881 = vrcp.f32 %v5805_v7  ;;  %v1699_v42 = vmax.f32 %v1697_v5, %v1698_v33  ;;  %v2176_v35 = vmul.f32 1.442695, %v1950_v57 }
 0x340   : > { %8175 = vst [vmem:[#allocation87_spill] sm:$0xff] %v5847_v47  ;;  %v2180_v50 = vmul.f32 1.442695, %v1952_v59  ;;  %v2478_v2 = vsub.f32 1.0, %v2477_v8  ;;  %v1818_v24 = vsel %vm468_vm0, %v5687_v23, -inf  ;;  %v5854_v21 = vmax.f32 %v1757_v32, %v1758_v16 }
 0x341   : > { %3883 = vpow2.f32 %v2172_v26  ;;  %v2184_v34 = vmul.f32 1.442695, %v1954_v49  ;;  %v2365_v41 = vsel %vm468_vm0, %v5841_v25, 0.0  ;;  %v2188_v19 = vmul.f32 1.442695, %v1956_v48 }
 0x342   : > { %3885 = vpow2.f32 %v2176_v35  ;;  %v3878_v17 = vpop.eup %3877  ;;  %v2573_v5 = vand.u32 2147483647, %v5815_v54  ;;  %v2366_v57 = vadd.f32 %v2365_v41, %v2364_v36  ;;  %v1700_v59 = vsel %vm468_vm0, %v5850_v11, -inf  ;;  %v5877_v35 = vpop.f32.mrf.mxu2 }
 0x343   : > { %3887 = vpow2.f32 %v2180_v50  ;;  %v5861_v8 = vpop.eup %3879  ;;  %v5863_v33 = vmax.f32 %v1817_v10, %v1818_v24  ;;  %v2565_v32 = vmul.f32 %v3878_v17, %v5815_v54  ;;  %v2192_v49 = vmul.f32 1.442695, %v1958_v58 }
 0x344   : > { %3889 = vpow2.f32 %v2184_v34  ;;  %v5867_v62 = vmul.f32 %v5809_v46, %v2478_v2  ;;  %vm2569_vm3 = vweird.f32 %v5815_v54  ;;  %v2575_v48 = vand.u32 2147483648, %v5815_v54 }
 0x345   : > { %v5871_v16 = vmax.f32 %v1699_v42, %v1700_v59  ;;  %v5873_v36 = vpop.eup %3881  ;;  %v2566_v26 = vsub.f32 1.0, %v2565_v32  ;;  %v2367_v24 = vsel %vm468_vm0, %v5847_v47, 0.0  ;;  %3891 = vpow2.f32 %v2188_v19 }
 0x346   : > { %v2196_v10 = vmul.f32 1.442695, %v1960_v63  ;;  %vm5881_vm4 = vcmp.eq.f32.partialorder %v2573_v5, 8.507059e+37  ;;  %v2368_v50 = vadd.f32 %v2367_v24, %v2366_v57  ;;  %v2369_v42 = vsel %vm468_vm0, %v5861_v8, 0.0  ;;  %v8181_v57 = vld [vmem:[#allocation39_spill] sm:$0xff] }
 0x347   : > { %v5879_v34 = vpop.eup %3883  ;;  %v2200_v2 = vmul.f32 1.442695, %v1962_v13  ;;  %v2567_v59 = vmul.f32 %v3878_v17, %v2566_v26  ;;  %vm2570_vm5 = vweird.f32 %v3878_v17  ;;  %3893 = vpow2.f32 %v2192_v49  ;;  %v5901_v26 = vpop.f32.mrf.mxu0 }
 0x348   : > { %8176 = vst [vmem:[#allocation88_spill] sm:$0xff] %v5879_v34  ;;  %v5887_v41 = vpop.eup %3885  ;;  %v2416_v63 = vsel %vm468_vm0, %v5879_v34, 0.0  ;;  %v2576_v32 = vor.u32 1.1754944e-38, %v2575_v48  ;;  %v1885_v24 = vsub.f32 %v8181_v57, %v5871_v16  ;;  %v1760_v13 = vsel %vm468_vm0, %v5877_v35, -inf  ;;  %v8183_v34 = vld [vmem:[#allocation43_spill] sm:$0xff]  ;;  %vm2571_vm6 = vmor %vm2569_vm3, %vm2570_vm5 }
 0x349   : > { %8179 = vst [vmem:[#allocation89_spill] sm:$0xff] %v5887_v41  ;;  %v5891_v19 = vpop.eup %3887  ;;  %v2417_v5 = vsel %vm468_vm0, %v5887_v41, 0.0  ;;  %v2568_v49 = vadd.f32 %v3878_v17, %v2567_v59  ;;  %3895 = vpow2.f32 %v2196_v10  ;;  %v1887_v12 = vsub.f32 %v8183_v34, %v5871_v16  ;;  %v8184_v41 = vld [vmem:[#allocation48_spill] sm:$0xff] }
 0x34a   : > { %8180 = vst [vmem:[#allocation90_spill] sm:$0xff] %v5891_v19  ;;  %v5899_v47 = vpop.eup %3889  ;;  %v2418_v25 = vadd.f32 %v2417_v5, %v2416_v63  ;;  %v5907_v48 = vadd.f32 %v2369_v42, %v2368_v50  ;;  %3897 = vpow2.f32 %v2200_v2  ;;  %v2419_v57 = vsel %vm468_vm0, %v5891_v19, 0.0 }
 0x34b   : > { %8182 = vst [vmem:[#allocation39_spill] sm:$0xff] %v5899_v47  ;;  %v1889_v44 = vsub.f32 %v8184_v41, %v5871_v16  ;;  %v5913_v37 = vpop.eup %3891  ;;  %v2572_v59 = vsel %vm2571_vm6, %v3878_v17, %v2568_v49  ;;  %v1891_v63 = vsub.f32 %v8144_v43, %v5871_v16  ;;  %v1899_v54 = vsub.f32 %v5850_v11, %v5871_v16 }
 0x34c   : > { %8185 = vst [vmem:[#allocation43_spill] sm:$0xff] %v5913_v37  ;;  %v2420_v10 = vadd.f32 %v2419_v57, %v2418_v25  ;;  %v5921_v34 = vsel %vm5881_vm4, %v2576_v32, %v2572_v59  ;;  %v2421_v50 = vsel %vm468_vm0, %v5899_v47, 0.0  ;;  %v1893_v42 = vsub.f32 %v8159_v29, %v5871_v16 }
 0x34d   : > { %8186 = vst [vmem:[#allocation48_spill] sm:$0xff] %v5921_v34  ;;  %v2046_v2 = vmul.f32 1.442695, %v1885_v24  ;;  %v5927_v41 = vpop.eup %3893  ;;  %vm2481_vm7 = vweird.f32 %v5741_v3  ;;  %v5932_v43 = vmul.f32 %v5787_v28, %v5921_v34  ;;  %v1895_v11 = vsub.f32 %v5389_v52, %v5871_v16  ;;  %v8283_v34 = vld [vmem:[#allocation32_spill] sm:$0xff] }
 0x34e   : > { %8187 = vst [vmem:[#allocation91_spill] sm:$0xff] %v5927_v41  ;;  %v2422_v25 = vadd.f32 %v2421_v50, %v2420_v10  ;;  %v2050_v17 = vmul.f32 1.442695, %v1887_v12  ;;  %v2423_v58 = vsel %vm468_vm0, %v5913_v37, 0.0  ;;  %v1897_v29 = vsub.f32 %v5533_v60, %v5871_v16 }
 0x34f   : > { %8188 = vst [vmem:[#allocation92_spill] sm:$0xff] %v5932_v43  ;;  %3899 = vpow2.f32 %v2046_v2  ;;  %v2054_v32 = vmul.f32 1.442695, %v1889_v44  ;;  %v5940_v5 = vpop.eup %3895  ;;  %v2492_v24 = vmul.f32 %v5873_v36, %v5805_v7  ;;  %v2058_v49 = vmul.f32 1.442695, %v1891_v63 }
 0x350   : > { %8189 = vst [vmem:[#allocation93_spill] sm:$0xff] %v5940_v5  ;;  %v2424_v28 = vadd.f32 %v2423_v58, %v2422_v25  ;;  %3901 = vpow2.f32 %v2050_v17  ;;  %v5944_v57 = vpop.eup %3897  ;;  %v2425_v52 = vsel %vm468_vm0, %v5927_v41, 0.0  ;;  %v2062_v12 = vmul.f32 1.442695, %v1893_v42  ;;  %v5959_v42 = vpop.f32.mrf.mxu0  ;;  %v8191_v58 = vld [vmem:[#allocation40_spill] sm:$0xff] }
 0x351   : > { %3903 = vpow2.f32 %v2054_v32  ;;  %v5949_v59 = vmax.f32 %v5854_v21, %v1760_v13  ;;  %v2485_v60 = vand.u32 2147483647, %v5741_v3  ;;  %v2066_v16 = vmul.f32 1.442695, %v1895_v11 }
 0x352   : > { %3905 = vrcp.f32 %v5907_v48  ;;  %v2426_v44 = vadd.f32 %v2425_v52, %v2424_v28  ;;  %v2487_v10 = vand.u32 2147483648, %v5741_v3  ;;  %v2427_v63 = vsel %vm468_vm0, %v5940_v5, 0.0  ;;  %v5975_v52 = vpop.f32.mrf.mxu3 }
 0x353   : > { %3907 = vpow2.f32 %v2058_v49  ;;  %v2070_v50 = vmul.f32 1.442695, %v1897_v29  ;;  %v2480_v2 = vadd.f32 %v5809_v46, %v5867_v62  ;;  %vm2482_vm8 = vweird.f32 %v5809_v46 }
 0x354   : > { %v2493_v21 = vsub.f32 1.0, %v2492_v24  ;;  %v2428_v13 = vadd.f32 %v2427_v63, %v2426_v44  ;;  %v2429_v11 = vsel %vm468_vm0, %v5944_v57, 0.0  ;;  %3909 = vpow2.f32 %v2062_v12  ;;  %v8193_v24 = vld [vmem:[#allocation44_spill] sm:$0xff]  ;;  %vm5983_vm9 = vmor %vm2481_vm7, %vm2482_vm8  ;;  %v8197_v63 = vld [vmem:[#allocation49_spill] sm:$0xff] }
 0x355   : > { %v5961_v25 = vpop.eup %3899  ;;  %v2074_v17 = vmul.f32 1.442695, %v1899_v54  ;;  %v1917_v32 = vsub.f32 %v8191_v58, %v5949_v59  ;;  %3911 = vpow2.f32 %v2066_v16  ;;  %v1919_v49 = vsub.f32 %v8193_v24, %v5949_v59 }
 0x356   : > { %8190 = vst [vmem:[#allocation94_spill] sm:$0xff] %v5961_v25  ;;  %v5967_v29 = vpop.eup %3901  ;;  %v5969_v28 = vadd.f32 %v2429_v11, %v2428_v13  ;;  %v2311_v62 = vsel %vm468_vm0, %v5961_v25, 0.0  ;;  %v5989_v12 = vsel %vm468_vm0, %v5901_v26, -inf  ;;  %3913 = vpow2.f32 %v2070_v50 }
 0x357   : > { %8192 = vst [vmem:[#allocation40_spill] sm:$0xff] %v5967_v29  ;;  %v5977_v44 = vpop.eup %3903  ;;  %v2312_v16 = vsel %vm468_vm0, %v5967_v29, 0.0  ;;  %v1921_v13 = vsub.f32 %v8197_v63, %v5949_v59  ;;  %v2484_v3 = vsel %vm5983_vm9, %v5809_v46, %v2480_v2  ;;  %vm6000_vm10 = vcmp.eq.f32.partialorder %v2485_v60, 8.507059e+37  ;;  %v8208_v29 = vld [vmem:[#allocation45_spill] sm:$0xff] }
 0x358   : > { %8194 = vst [vmem:[#allocation44_spill] sm:$0xff] %v5977_v44  ;;  %v5995_v11 = vpop.eup %3905  ;;  %v2488_v24 = vor.u32 1.1754944e-38, %v2487_v10  ;;  %3915 = vrcp.f32 %v5969_v28  ;;  %v2494_v5 = vmul.f32 %v5873_v36, %v2493_v21  ;;  %v2313_v41 = vadd.f32 %v2312_v16, %v2311_v62 }
 0x359   : > { %v6005_v50 = vpop.eup %3907  ;;  %v2110_v37 = vmul.f32 1.442695, %v1917_v32  ;;  %v1820_v63 = vsel %vm468_vm0, %v5975_v52, -inf  ;;  %3917 = vpow2.f32 %v2074_v17  ;;  %v2314_v46 = vsel %vm468_vm0, %v5977_v44, 0.0 }
 0x35a   : > { %8200 = vst [vmem:[#allocation49_spill] sm:$0xff] %v6005_v50  ;;  %v1923_v60 = vsub.f32 %v8149_v55, %v5949_v59  ;;  %v2114_v2 = vmul.f32 1.442695, %v1919_v49  ;;  %v6014_v10 = vpop.eup %3909  ;;  %v6018_v54 = vmul.f32 %v5995_v11, %v5907_v48  ;;  %v2315_v21 = vadd.f32 %v2314_v46, %v2313_v41  ;;  %v6036_v46 = vpop.permute.xlu1 %2836 }
 0x35b   : > { %8201 = vst [vmem:[#allocation95_spill] sm:$0xff] %v6014_v10  ;;  %3919 = vpow2.f32 %v2110_v37  ;;  %v2118_v32 = vmul.f32 1.442695, %v1921_v13  ;;  %v6020_v62 = vpop.eup %3911  ;;  %v2316_v47 = vsel %vm468_vm0, %v6005_v50, 0.0  ;;  %v6030_v49 = vsel %vm6000_vm10, %v2488_v24, %v2484_v3  ;;  %v6200_v43 = vpop.f32.mrf.mxu3 }
 0x35c   : > { %8202 = vst [vmem:[#allocation96_spill] sm:$0xff] %v6020_v62  ;;  %3921 = vpow2.f32 %v2114_v2  ;;  %v6026_v55 = vpop.eup %3913  ;;  %v6033_v41 = vadd.f32 %v5873_v36, %v2494_v5  ;;  %vm2497_vm11 = vweird.f32 %v5873_v36  ;;  %v2317_v37 = vadd.f32 %v2316_v47, %v2315_v21  ;;  %v6046_v5 = vpop.f32.mrf.mxu0 }
 0x35d   : > { %8203 = vst [vmem:[#allocation97_spill] sm:$0xff] %v6026_v55  ;;  %vm2496_vm12 = vweird.f32 %v5805_v7  ;;  %v2318_v2 = vsel %vm468_vm0, %v6014_v10, 0.0  ;;  %v1925_v17 = vsub.f32 %v5285_v1, %v5949_v59  ;;  %v2122_v58 = vmul.f32 1.442695, %v1923_v60 }
 0x35e   : > { %v3916_v13 = vpop.eup %3915  ;;  %8204 = vst [vmem:[#allocation98_spill] sm:$0xff] %v6036_v46  ;;  %v6044_v3 = vmax.f32 %v5863_v33, %v1820_v63  ;;  %v2654_v24 = vsub.f32 1.0, %v6018_v54  ;;  %v2319_v21 = vadd.f32 %v2318_v2, %v2317_v37  ;;  %3923 = vpow2.f32 %v2118_v32  ;;  %v8206_v32 = vld [vmem:[#allocation41_spill] sm:$0xff]  ;;  %vm6089_vm1 = vmor %vm2496_vm12, %vm2497_vm11 }
 0x35f   : > { %v2741_v47 = vmul.f32 %v3916_v13, %v5969_v28  ;;  %v6050_v16 = vpop.eup %3917  ;;  %v2749_v19 = vand.u32 2147483647, %v5969_v28  ;;  %v2751_v10 = vand.u32 2147483648, %v5969_v28  ;;  %v2320_v1 = vsel %vm468_vm0, %v6020_v62, 0.0  ;;  %8232 = vst [vmem:[#allocation110_spill] sm:$0xff] %v6200_v43 }
 0x360   : > { %v1927_v33 = vsub.f32 %v5465_v30, %v5949_v59  ;;  %v2321_v54 = vadd.f32 %v2320_v1, %v2319_v21  ;;  %v2322_v37 = vsel %vm468_vm0, %v6026_v55, 0.0  ;;  %v1949_v2 = vsub.f32 %v8206_v32, %v6044_v3  ;;  %v6072_v1 = vpop.f32.mrf.mxu1 }
 0x361   : > { %v6058_v63 = vpop.eup %3919  ;;  %v2742_v60 = vsub.f32 1.0, %v2741_v47  ;;  %3925 = vpow2.f32 %v2122_v58  ;;  %v2126_v44 = vmul.f32 1.442695, %v1925_v17  ;;  %v1951_v30 = vsub.f32 %v8208_v29, %v6044_v3  ;;  %8209 = vst [vmem:[#allocation45_spill] sm:$0xff] %v6072_v1 }
 0x362   : > { %8205 = vst [vmem:[#allocation99_spill] sm:$0xff] %v6058_v63  ;;  %v6064_v50 = vpop.eup %3921  ;;  %v2371_v62 = vsel %vm468_vm0, %v6058_v63, 0.0  ;;  %vm2746_vm13 = vweird.f32 %v3916_v13  ;;  %v2323_v47 = vadd.f32 %v2322_v37, %v2321_v54  ;;  %vm2745_vm14 = vweird.f32 %v5969_v28 }
 0x363   : > { %8207 = vst [vmem:[#allocation41_spill] sm:$0xff] %v6064_v50  ;;  %v2743_v25 = vmul.f32 %v3916_v13, %v2742_v60  ;;  %v2372_v21 = vsel %vm468_vm0, %v6064_v50, 0.0  ;;  %v2324_v58 = vsel %vm468_vm0, %v6050_v16, 0.0  ;;  %v1929_v17 = vsub.f32 %v5578_v40, %v5949_v59  ;;  %vm2747_vm15 = vmor %vm2745_vm14, %vm2746_vm13 }
 0x364   : > { %v2130_v32 = vmul.f32 1.442695, %v1927_v33  ;;  %v6079_v63 = vpop.eup %3923  ;;  %v6081_v60 = vadd.f32 %v2324_v58, %v2323_v47  ;;  %v2373_v54 = vadd.f32 %v2372_v21, %v2371_v62  ;;  %v2174_v37 = vmul.f32 1.442695, %v1949_v2  ;;  %v8213_v62 = vld [vmem:[#allocation50_spill] sm:$0xff] }
 0x365   : > { %8210 = vst [vmem:[#allocation100_spill] sm:$0xff] %v6079_v63  ;;  %v2744_v29 = vadd.f32 %v3916_v13, %v2743_v25  ;;  %v2752_v50 = vor.u32 1.1754944e-38, %v2751_v10  ;;  %v1931_v55 = vsub.f32 %v5877_v35, %v5949_v59  ;;  %3927 = vpow2.f32 %v2126_v44  ;;  %v6098_v35 = vpop.permute.xlu1 %2830 }
 0x366   : > { %v2178_v28 = vmul.f32 1.442695, %v1951_v30  ;;  %vm2750_vm2 = vcmp.eq.f32.partialorder %v2749_v19, 8.507059e+37  ;;  %3929 = vrcp.f32 %v6081_v60  ;;  %v1953_v10 = vsub.f32 %v8213_v62, %v6044_v3 }
 0x367   : > { %v2748_v25 = vsel %vm2747_vm15, %v3916_v13, %v2744_v29  ;;  %v6096_v33 = vpop.eup %3925  ;;  %v2499_v59 = vsel %vm6089_vm1, %v5873_v36, %v6033_v41  ;;  %3931 = vpow2.f32 %v2130_v32  ;;  %v2374_v19 = vsel %vm468_vm0, %v6079_v63, 0.0  ;;  %v6108_v13 = vpop.f32.mrf.mxu0 }
 0x368   : > { %8214 = vst [vmem:[#allocation50_spill] sm:$0xff] %v6096_v33  ;;  %v6104_v44 = vsel %vm2750_vm2, %v2752_v50, %v2748_v25  ;;  %v2134_v30 = vmul.f32 1.442695, %v1929_v17  ;;  %v2375_v47 = vadd.f32 %v2374_v19, %v2373_v54  ;;  %3933 = vpow2.f32 %v2174_v37  ;;  %v6141_v40 = vpop.f32.mrf.mxu1 }
 0x369   : > { %8215 = vst [vmem:[#allocation101_spill] sm:$0xff] %v6104_v44  ;;  %v6112_v2 = vmul.f32 %v5944_v57, %v6104_v44  ;;  %v8217_v21 = vand.u32 2147483648, %v5805_v7  ;;  %v2655_v36 = vmul.f32 %v5995_v11, %v2654_v24  ;;  %v2138_v50 = vmul.f32 1.442695, %v1931_v55 }
 0x36a   : > { %3935 = vpow2.f32 %v2178_v28  ;;  %v6119_v41 = vmul.f32 %v5689_v56, %v6030_v49  ;;  %v8218_v32 = vand.u32 2147483647, %v5805_v7  ;;  %v1955_v57 = vsub.f32 %v8150_v39, %v6044_v3  ;;  %v6139_v28 = vpop.f32.mrf.mxu2  ;;  %8221 = vst [vmem:[#allocation105_spill] sm:$0xff] %v6141_v40 }
 0x36b   : > { %8216 = vst [vmem:[#allocation102_spill] sm:$0xff] %v6112_v2  ;;  %v2503_v58 = vor.u32 1.1754944e-38, %v8217_v21  ;;  %v2182_v17 = vmul.f32 1.442695, %v1953_v10  ;;  %v6125_v29 = vpop.eup %3927  ;;  %v2661_v37 = vand.u32 2147483647, %v5907_v48  ;;  %vm2657_vm4 = vweird.f32 %v5907_v48 }
 0x36c   : > { %vm2501_vm3 = vcmp.eq.f32.partialorder %v8218_v32, 8.507059e+37  ;;  %8219 = vst [vmem:[#allocation103_spill] sm:$0xff] %v6125_v29  ;;  %v1657_v55 = vsel %vm468_vm0, %v5959_v42, -inf  ;;  %v2376_v56 = vsel %vm468_vm0, %v6096_v33, 0.0  ;;  %v6134_v24 = vpop.eup %3929  ;;  %vm2658_vm5 = vweird.f32 %v5995_v11  ;;  %v8240_v33 = vld [vmem:[#allocation60_spill] sm:$0xff] }
 0x36d   : > { %v6127_v54 = vsel %vm2501_vm3, %v2503_v58, %v2499_v59  ;;  %3937 = vpow2.f32 %v2134_v30  ;;  %v2377_v7 = vadd.f32 %v2376_v56, %v2375_v47  ;;  %8220 = vst [vmem:[#allocation104_spill] sm:$0xff] %v6139_v28  ;;  %v6143_v25 = vpop.eup %3931  ;;  %v6146_v62 = vadd.f32 %v5995_v11, %v2655_v36  ;;  %v6168_v2 = vpop.permute.xlu1 %2838  ;;  %vm6208_vm11 = vmor %vm2657_vm4, %vm2658_vm5 }
 0x36e   : > { %8222 = vst [vmem:[#allocation106_spill] sm:$0xff] %v6143_v25  ;;  %v2580_v10 = vmul.f32 %v6134_v24, %v6081_v60  ;;  %3939 = vpow2.f32 %v2138_v50  ;;  %v1957_v59 = vsub.f32 %v5287_v0, %v6044_v3  ;;  %v6152_v19 = vpop.eup %3933  ;;  %v1959_v30 = vsub.f32 %v5467_v53, %v6044_v3 }
 0x36f   : > { %8223 = vst [vmem:[#allocation107_spill] sm:$0xff] %v6152_v19  ;;  %3941 = vpow2.f32 %v2182_v17  ;;  %v2186_v47 = vmul.f32 1.442695, %v1955_v57  ;;  %v1658_v21 = vsel %vm468_vm0, %v6108_v13, -inf  ;;  %v2588_v32 = vand.u32 2147483647, %v6081_v60 }
 0x370   : > { %v6158_v58 = vpop.eup %3935  ;;  %v2581_v36 = vsub.f32 1.0, %v2580_v10  ;;  %v2378_v50 = vsel %vm468_vm0, %v6125_v29, 0.0  ;;  %v1659_v56 = vmax.f32 %v1657_v55, %v1658_v21  ;;  %v2590_v0 = vand.u32 2147483648, %v6081_v60  ;;  %v3245_v17 = vld [vmem:[#allocation8 + $0x8] sm:$0xff] }
 0x371   : > { %8224 = vst [vmem:[#allocation108_spill] sm:$0xff] %v6158_v58  ;;  %v2379_v39 = vadd.f32 %v2378_v50, %v2377_v7  ;;  %v1961_v53 = vsub.f32 %v5687_v23, %v6044_v3  ;;  %v1643_v57 = vsel %vm468_vm0, %v6046_v5, -inf  ;;  %vm6170_vm6 = vcmp.eq.f32.partialorder %v2661_v37, 8.507059e+37  ;;  %v6180_v7 = vpop.f32.mrf.mxu0  ;;  %3314 = vmatpush.msrb.mxu2 %v3245_v17  ;;  %v3244_v50 = vld [vmem:[#allocation8] sm:$0xff] }
 0x372   : > { %v2582_v44 = vmul.f32 %v6134_v24, %v2581_v36  ;;  %vm2585_vm7 = vweird.f32 %v6134_v24  ;;  %v2431_v55 = vsel %vm468_vm0, %v6152_v19, 0.0  ;;  %v2432_v23 = vsel %vm468_vm0, %v6158_v58, 0.0  ;;  %v8230_v58 = vld [vmem:[#allocation59_spill] sm:$0xff] }
 0x373   : > { %v6182_v21 = vpop.eup %3937  ;;  %vm2584_vm8 = vweird.f32 %v6081_v60  ;;  %v2380_v37 = vsel %vm468_vm0, %v6143_v25, 0.0  ;;  %3943 = vpow2.f32 %v2186_v47  ;;  %v2190_v36 = vmul.f32 1.442695, %v1957_v59  ;;  %3315 = vmatpush.msrb.mxu2 %v3244_v50  ;;  %v6224_v50 = vpop.f32.mrf.mxu2 }
 0x374   : > { %8227 = vst [vmem:[#allocation109_spill] sm:$0xff] %v6182_v21  ;;  %v6187_v29 = vpop.eup %3939  ;;  %v2583_v19 = vadd.f32 %v6134_v24, %v2582_v44  ;;  %vm6190_vm9 = vcmp.eq.f32.partialorder %v2588_v32, 8.507059e+37  ;;  %v1644_v17 = vmax.f32 %v5989_v12, %v1643_v57  ;;  %v1661_v63 = vmax.f32 %v1659_v56, %v8230_v58  ;;  %vm2586_vm10 = vmor %vm2584_vm8, %vm2585_vm7  ;;  %v8235_v56 = vld [vmem:[#allocation61_spill] sm:$0xff] }
 0x375   : > { %v6196_v60 = vpop.eup %3941  ;;  %v2591_v59 = vor.u32 1.1754944e-38, %v2590_v0  ;;  %v2194_v47 = vmul.f32 1.442695, %v1959_v30  ;;  %v2433_v25 = vadd.f32 %v2432_v23, %v2431_v55  ;;  %v1645_v44 = vsel %vm468_vm0, %v6180_v7, -inf }
 0x376   : > { %8231 = vst [vmem:[#allocation59_spill] sm:$0xff] %v6196_v60  ;;  %v2587_v58 = vsel %vm2586_vm10, %v6134_v24, %v2583_v19  ;;  %v2381_v32 = vadd.f32 %v2380_v37, %v2379_v39  ;;  %v1663_v0 = vmax.f32 %v1661_v63, %v8235_v56  ;;  %v1646_v30 = vmax.f32 %v1644_v17, %v1645_v44  ;;  %v6226_v24 = vpop.f32.mrf.mxu1 }
 0x377   : > { %v2660_v57 = vsel %vm6208_vm11, %v5995_v11, %v6146_v62  ;;  %v6220_v55 = vsel %vm6190_vm9, %v2591_v59, %v2587_v58  ;;  %v1963_v23 = vsub.f32 %v5975_v52, %v6044_v3  ;;  %3945 = vpow2.f32 %v2190_v36  ;;  %8237 = vst [vmem:[#allocation111_spill] sm:$0xff] %v6226_v24  ;;  %v8239_v11 = vld [vmem:[#allocation65_spill] sm:$0xff]  ;;  %v8244_v58 = vld [vmem:[#allocation63_spill] sm:$0xff] }
 0x378   : > { %8236 = vst [vmem:[#allocation61_spill] sm:$0xff] %v6220_v55  ;;  %v6230_v63 = vmul.f32 %v6050_v16, %v6220_v55  ;;  %v2434_v39 = vsel %vm468_vm0, %v6196_v60, 0.0  ;;  %v1665_v62 = vmax.f32 %v1663_v0, %v8239_v11  ;;  %v1648_v19 = vmax.f32 %v1646_v30, %v8240_v33  ;;  %v8243_v16 = vld [vmem:[#allocation69_spill] sm:$0xff]  ;;  %v6244_v60 = vpop.permute.xlu2 %2828  ;;  %v8246_v0 = vld [vmem:[#allocation35_spill] sm:$0xff]  ;;  %v8247_v11 = vld [vmem:[#allocation36_spill] sm:$0xff] }
 0x379   : > { %v6236_v37 = vpop.eup %3943  ;;  %v8242_v52 = vand.u32 2147483648, %v5907_v48  ;;  %v2382_v36 = vsel %vm468_vm0, %v6182_v21, 0.0  ;;  %v2198_v17 = vmul.f32 1.442695, %v1961_v53  ;;  %v2435_v59 = vadd.f32 %v2434_v39, %v2433_v25  ;;  %8245 = vst [vmem:[#allocation60_spill] sm:$0xff] %v6244_v60  ;;  %v6256_v53 = vpop.permute.xlu1 %2856 }
 0x37a   : > { %8238 = vst [vmem:[#allocation112_spill] sm:$0xff] %v6230_v63  ;;  %v2383_v44 = vadd.f32 %v2382_v36, %v2381_v32  ;;  %3947 = vpow2.f32 %v2194_v47  ;;  %v1667_v12 = vmax.f32 %v1665_v62, %v8243_v16  ;;  %v1650_v56 = vmax.f32 %v1648_v19, %v8244_v58  ;;  %v8251_v47 = vld [vmem:[#allocation37_spill] sm:$0xff] }
 0x37b   : > { %8241 = vst [vmem:[#allocation65_spill] sm:$0xff] %v6236_v37  ;;  %v2664_v3 = vor.u32 1.1754944e-38, %v8242_v52  ;;  %v1670_v30 = vsel %vm468_vm0, %v8246_v0, -inf  ;;  %v6250_v48 = vsel %vm468_vm0, %v8247_v11, -inf  ;;  %v2202_v25 = vmul.f32 1.442695, %v1963_v23 }
 0x37c   : > { %8248 = vst [vmem:[#allocation69_spill] sm:$0xff] %v6250_v48  ;;  %v6260_v32 = vsel %vm468_vm0, %v8251_v47, -inf  ;;  %v2436_v39 = vsel %vm468_vm0, %v6236_v37, 0.0  ;;  %v8252_v62 = vld [vmem:[#allocation73_spill] sm:$0xff]  ;;  %v8253_v52 = vld [vmem:[#allocation67_spill] sm:$0xff]  ;;  %v6270_v10 = vmul.f32 %v6256_v53, %v6119_v41  ;;  %v2384_v23 = vsel %vm468_vm0, %v6187_v29, 0.0 }
 0x37d   : > { %v6254_v33 = vsel %vm6170_vm6, %v2664_v3, %v2660_v57  ;;  %8250 = vst [vmem:[#allocation35_spill] sm:$0xff] %v6256_v53  ;;  %v1669_v19 = vmax.f32 %v1667_v12, %v8252_v62  ;;  %v1652_v36 = vmax.f32 %v1650_v56, %v8253_v52  ;;  %v6266_v16 = vpop.eup %3945  ;;  %v6274_v57 = vmul.f32 %v5745_v22, %v6127_v54  ;;  %v8259_v52 = vld [vmem:[#allocation16_spill] sm:$0xff]  ;;  %v8260_v37 = vld [vmem:[#allocation18_spill] sm:$0xff]  ;;  %v8269_v11 = vld [vmem:[#allocation75_spill] sm:$0xff] }
 0x37e   : > { %8249 = vst [vmem:[#allocation63_spill] sm:$0xff] %v6254_v33  ;;  %v2437_v3 = vadd.f32 %v2436_v39, %v2435_v59  ;;  %v6280_v58 = vmul.f32 %v5861_v8, %v6254_v33  ;;  %v6282_v12 = vadd.f32 %v2384_v23, %v2383_v44  ;;  %3949 = vpow2.f32 %v2198_v17  ;;  %v6296_v39 = vpop.f32.mrf.mxu3  ;;  %v6311_v33 = vpop.f32.mrf.mxu2 }
 0x37f   : > { %8254 = vst [vmem:[#allocation73_spill] sm:$0xff] %v6266_v16  ;;  %v1671_v56 = vmax.f32 %v1669_v19, %v1670_v30  ;;  %3951 = vpow2.f32 %v2202_v25  ;;  %v6286_v41 = vsel %vm468_vm0, %v6072_v1, -inf  ;;  %v6290_v22 = vsel %vm468_vm0, %v6139_v28, -inf  ;;  %v8258_v25 = vld [vmem:[#allocation71_spill] sm:$0xff]  ;;  %v6313_v63 = vpop.f32.mrf.mxu1 }
 0x380   : > { %8255 = vst [vmem:[#allocation67_spill] sm:$0xff] %v6280_v58  ;;  %v6294_v59 = vsel %vm468_vm0, %v6200_v43, -inf  ;;  %v6298_v8 = vpop.eup %3947  ;;  %v2438_v17 = vsel %vm468_vm0, %v6266_v16, 0.0  ;;  %v1654_v62 = vmax.f32 %v1652_v36, %v8258_v25  ;;  %v6309_v58 = vsel %vm468_vm0, %v6141_v40, -inf  ;;  %v6315_v16 = vpop.permute.xlu0 %2832  ;;  %v8266_v25 = vld [vmem:[#allocation26_spill] sm:$0xff] }
 0x381   : > { %8256 = vst [vmem:[#allocation113_spill] sm:$0xff] %v6296_v39  ;;  %v1869_v44 = vsub.f32 %v5959_v42, %v1671_v56  ;;  %v1871_v30 = vsub.f32 %v6108_v13, %v1671_v56  ;;  %v2439_v19 = vadd.f32 %v2438_v17, %v2437_v3  ;;  %v1873_v23 = vsub.f32 %v8259_v52, %v1671_v56  ;;  %v8265_v13 = vld [vmem:[#allocation22_spill] sm:$0xff] }
 0x382   : > { %8257 = vst [vmem:[#allocation114_spill] sm:$0xff] %v6298_v8  ;;  %v1875_v21 = vsub.f32 %v8260_v37, %v1671_v56  ;;  %3953 = vrcp.f32 %v6282_v12  ;;  %v2678_v42 = vand.u32 2147483648, %v6282_v12  ;;  %v1877_v36 = vsub.f32 %v8265_v13, %v1671_v56  ;;  %v6340_v37 = vpop.permute.xlu2 %2840 }
 0x383   : > { %8261 = vst [vmem:[#allocation71_spill] sm:$0xff] %v6309_v58  ;;  %v6322_v3 = vsel %vm468_vm0, %v6224_v50, -inf  ;;  %v2440_v17 = vsel %vm468_vm0, %v6298_v8, 0.0  ;;  %v1879_v52 = vsub.f32 %v8266_v25, %v1671_v56  ;;  %v6330_v43 = vsel %vm468_vm0, %v6296_v39, -inf }
 0x384   : > { %8262 = vst [vmem:[#allocation16_spill] sm:$0xff] %v6311_v33  ;;  %v6332_v55 = vpop.eup %3949  ;;  %v1881_v14 = vsub.f32 %v8268_v18, %v1671_v56  ;;  %v2014_v13 = vmul.f32 1.442695, %v1869_v44  ;;  %v2018_v20 = vmul.f32 1.442695, %v1871_v30  ;;  %v6336_v40 = vmax.f32 %v1654_v62, %v8269_v11 }
 0x385   : > { %8263 = vst [vmem:[#allocation18_spill] sm:$0xff] %v6313_v63  ;;  %v6338_v31 = vpop.eup %3951  ;;  %v2441_v8 = vadd.f32 %v2440_v17, %v2439_v19  ;;  %v1883_v25 = vsub.f32 %v8246_v0, %v1671_v56  ;;  %v2022_v38 = vmul.f32 1.442695, %v1873_v23  ;;  %v2026_v48 = vmul.f32 1.442695, %v1875_v21  ;;  %v8271_v23 = vld [vmem:[#allocation17_spill] sm:$0xff] }
 0x386   : > { %8264 = vst [vmem:[#allocation115_spill] sm:$0xff] %v6315_v16  ;;  %v6343_v39 = vor.u32 1.1754944e-38, %v2678_v42  ;;  %3955 = vpow2.f32 %v2014_v13  ;;  %v2030_v51 = vmul.f32 1.442695, %v1877_v36  ;;  %v6347_v18 = vsel %vm468_vm0, %v6226_v24, -inf  ;;  %v8276_v13 = vld [vmem:[#allocation20_spill] sm:$0xff] }
 0x387   : > { %8267 = vst [vmem:[#allocation22_spill] sm:$0xff] %v6332_v55  ;;  %3957 = vpow2.f32 %v2018_v20  ;;  %v2034_v11 = vmul.f32 1.442695, %v1879_v52  ;;  %v1868_v44 = vsub.f32 %v5901_v26, %v6336_v40  ;;  %v1870_v30 = vsub.f32 %v6046_v5, %v6336_v40  ;;  %v6361_v26 = vpop.f32.mrf.mxu3  ;;  %v6377_v17 = vpop.f32.mrf.mxu1 }
 0x388   : > { %8270 = vst [vmem:[#allocation26_spill] sm:$0xff] %v6338_v31  ;;  %v6353_v62 = vpop.eup %3953  ;;  %v2442_v21 = vsel %vm468_vm0, %v6332_v55, 0.0  ;;  %3959 = vpow2.f32 %v2022_v38  ;;  %v2038_v0 = vmul.f32 1.442695, %v1881_v14  ;;  %v1872_v56 = vsub.f32 %v6180_v7, %v6336_v40  ;;  %v8280_v55 = vld [vmem:[#allocation52_spill] sm:$0xff] }
 0x389   : > { %v2443_v19 = vadd.f32 %v2442_v21, %v2441_v8  ;;  %3961 = vpow2.f32 %v2026_v48  ;;  %v2042_v20 = vmul.f32 1.442695, %v1883_v25  ;;  %v1874_v42 = vsub.f32 %v8271_v23, %v6336_v40  ;;  %8272 = vst [vmem:[#allocation30_spill] sm:$0xff] %v6361_v26  ;;  %v6375_v8 = vpop.f32.mrf.mxu2 }
 0x38a   : > { %v2444_v5 = vsel %vm468_vm0, %v6338_v31, 0.0  ;;  %3963 = vpow2.f32 %v2030_v51  ;;  %v2012_v36 = vmul.f32 1.442695, %v1868_v44  ;;  %v6369_v14 = vmul.f32 %v6353_v62, %v6282_v12  ;;  %8273 = vst [vmem:[#allocation75_spill] sm:$0xff] %v6377_v17  ;;  %v6381_v51 = vpop.permute.xlu0 %2844 }
 0x38b   : > { %3965 = vpow2.f32 %v2034_v11  ;;  %v2016_v7 = vmul.f32 1.442695, %v1870_v30  ;;  %v6373_v48 = vsel %vm468_vm0, %v6311_v33, -inf  ;;  %8275 = vst [vmem:[#allocation116_spill] sm:$0xff] %v6381_v51  ;;  %v1876_v25 = vsub.f32 %v8276_v13, %v6336_v40 }
 0x38c   : > { %v6379_v52 = vpop.eup %3955  ;;  %3967 = vpow2.f32 %v2038_v0  ;;  %v2020_v44 = vmul.f32 1.442695, %v1872_v56  ;;  %v6387_v11 = vsel %vm468_vm0, %v6361_v26, -inf  ;;  %v6391_v21 = vadd.f32 %v2444_v5, %v2443_v19  ;;  %v8279_v56 = vld [vmem:[#allocation24_spill] sm:$0xff]  ;;  %v6405_v19 = vpop.permute.xlu2 %2834 }
 0x38d   : > { %8274 = vst [vmem:[#allocation17_spill] sm:$0xff] %v6379_v52  ;;  %v6389_v30 = vpop.eup %3957  ;;  %3969 = vpow2.f32 %v2042_v20  ;;  %v2281_v23 = vsel %vm468_vm0, %v6379_v52, 0.0  ;;  %v2024_v38 = vmul.f32 1.442695, %v1874_v42  ;;  %v1878_v13 = vsub.f32 %v8279_v56, %v6336_v40  ;;  %v8282_v5 = vld [vmem:[#allocation28_spill] sm:$0xff] }
 0x38e   : > { %8277 = vst [vmem:[#allocation20_spill] sm:$0xff] %v6389_v30  ;;  %v6395_v31 = vpop.eup %3959  ;;  %v2282_v0 = vsel %vm468_vm0, %v6389_v30, 0.0  ;;  %3971 = vpow2.f32 %v2012_v36  ;;  %v2490_v26 = vmul.f32 %v8280_v55, %v6030_v49  ;;  %v1880_v42 = vsub.f32 %v8282_v5, %v6336_v40  ;;  %v8285_v55 = vld [vmem:[#allocation57_spill] sm:$0xff] }
 0x38f   : > { %8278 = vst [vmem:[#allocation117_spill] sm:$0xff] %v6395_v31  ;;  %v6403_v15 = vpop.eup %3961  ;;  %v2283_v20 = vadd.f32 %v2282_v0, %v2281_v23  ;;  %v1882_v24 = vsub.f32 %v8283_v34, %v6336_v40  ;;  %3973 = vpow2.f32 %v2016_v7  ;;  %v2284_v36 = vsel %vm468_vm0, %v6395_v31, 0.0 }
 0x390   : > { %8281 = vst [vmem:[#allocation24_spill] sm:$0xff] %v6403_v15  ;;  %v6411_v1 = vpop.eup %3963  ;;  %3975 = vpow2.f32 %v2020_v44  ;;  %v2028_v56 = vmul.f32 1.442695, %v1876_v25  ;;  %v2506_v53 = vmul.f32 %v8285_v55, %v6030_v49  ;;  %v6422_v34 = vsel %vm468_vm0, %v6313_v63, -inf  ;;  %v8289_v44 = vld [vmem:[#allocation47_spill] sm:$0xff] }
 0x391   : > { %8284 = vst [vmem:[#allocation52_spill] sm:$0xff] %v6411_v1  ;;  %v6417_v30 = vpop.eup %3965  ;;  %v2285_v0 = vadd.f32 %v2284_v36, %v2283_v20  ;;  %3977 = vpow2.f32 %v2024_v38  ;;  %v2286_v7 = vsel %vm468_vm0, %v6403_v15, 0.0  ;;  %v2032_v25 = vmul.f32 1.442695, %v1878_v13  ;;  %v8291_v36 = vld [vmem:[#allocation51_spill] sm:$0xff] }
 0x392   : > { %8286 = vst [vmem:[#allocation28_spill] sm:$0xff] %v6417_v30  ;;  %v6424_v40 = vpop.eup %3967  ;;  %3979 = vrcp.f32 %v6391_v21  ;;  %v2508_v5 = vmul.f32 %v8289_v44, %v6030_v49  ;;  %v2036_v20 = vmul.f32 1.442695, %v1880_v42  ;;  %v2040_v38 = vmul.f32 1.442695, %v1882_v24 }
 0x393   : > { %8287 = vst [vmem:[#allocation32_spill] sm:$0xff] %v6422_v34  ;;  %v6431_v55 = vpop.eup %3969  ;;  %v2287_v23 = vadd.f32 %v2286_v7, %v2285_v0  ;;  %v2510_v63 = vmul.f32 %v8291_v36, %v6030_v49  ;;  %v2288_v52 = vsel %vm468_vm0, %v6411_v1, 0.0  ;;  %3981 = vpow2.f32 %v2028_v56  ;;  %v8293_v0 = vld [vmem:[#allocation54_spill] sm:$0xff]  ;;  %v6449_v36 = vpop.f32.mrf.mxu2 }
 0x394   : > { %8288 = vst [vmem:[#allocation57_spill] sm:$0xff] %v6424_v40  ;;  %v6435_v31 = vpop.eup %3971  ;;  %v2876_v15 = vmul.f32 %v6244_v60, %v2490_v26  ;;  %v2878_v13 = vmul.f32 %v6315_v16, %v2506_v53  ;;  %v2290_v42 = vsel %vm468_vm0, %v6417_v30, 0.0  ;;  %v2512_v7 = vmul.f32 %v8293_v0, %v6030_v49  ;;  %v6451_v1 = vpop.f32.mrf.mxu1 }
 0x395   : > { %8290 = vst [vmem:[#allocation47_spill] sm:$0xff] %v6431_v55  ;;  %v6441_v33 = vpop.eup %3973  ;;  %v2289_v44 = vadd.f32 %v2288_v52, %v2287_v23  ;;  %v2266_v24 = vsel %vm468_vm0, %v6435_v31, 0.0  ;;  %v6455_v26 = vpop.permute.xlu0 %2848  ;;  %3983 = vpow2.f32 %v2032_v25  ;;  %v2514_v52 = vmul.f32 %v5653_v27, %v6030_v49 }
 0x396   : > { %8292 = vst [vmem:[#allocation51_spill] sm:$0xff] %v6441_v33  ;;  %v6453_v56 = vpop.eup %3975  ;;  %v2267_v53 = vsel %vm468_vm0, %v6441_v33, 0.0  ;;  %v2880_v23 = vmul.f32 %v6036_v46, %v2508_v5  ;;  %v2292_v16 = vsel %vm468_vm0, %v6424_v40, 0.0  ;;  %3985 = vpow2.f32 %v2036_v20  ;;  %v6472_v33 = vpop.permute.xlu2 %2852 }
 0x397   : > { %8294 = vst [vmem:[#allocation54_spill] sm:$0xff] %v6455_v26  ;;  %v6462_v30 = vpop.eup %3977  ;;  %v2291_v0 = vadd.f32 %v2290_v42, %v2289_v44  ;;  %v2268_v60 = vadd.f32 %v2267_v53, %v2266_v24  ;;  %3987 = vpow2.f32 %v2040_v38  ;;  %v2269_v25 = vsel %vm468_vm0, %v6453_v56, 0.0 }
 0x398   : > { %v6466_v28 = vpop.eup %3979  ;;  %v3004_v47 = vsel %vm468_vm0, %v2876_v15, 0.0  ;;  %v3005_v27 = vsel %vm468_vm0, %v2878_v13, 0.0  ;;  %8295 = vst [vmem:[#allocation118_spill] sm:$0xff] %v6472_v33  ;;  %v2882_v44 = vmul.f32 %v6340_v37, %v2510_v63  ;;  %v2294_v20 = vsel %vm468_vm0, %v6431_v55, 0.0 }
 0x399   : > { %v2293_v5 = vadd.f32 %v2292_v16, %v2291_v0  ;;  %v2270_v46 = vadd.f32 %v2269_v25, %v2268_v60  ;;  %v3006_v42 = vadd.f32 %v3005_v27, %v3004_v47  ;;  %v6475_v40 = vpop.eup %3981  ;;  %v2271_v38 = vsel %vm468_vm0, %v6462_v30, 0.0  ;;  %v6486_v60 = vpop.f32.mrf.mxu3 }
 0x39a   : > { %v2516_v15 = vmul.f32 %v5665_v61, %v6030_v49  ;;  %v3007_v13 = vsel %vm468_vm0, %v2880_v23, 0.0  ;;  %8296 = vst [vmem:[#allocation119_spill] sm:$0xff] %v6486_v60  ;;  %v2884_v63 = vmul.f32 %v6381_v51, %v2512_v7  ;;  %vm2673_vm12 = vweird.f32 %v6353_v62 }
 0x39b   : > { %v6484_v24 = vadd.f32 %v2294_v20, %v2293_v5  ;;  %v2272_v16 = vadd.f32 %v2271_v38, %v2270_v46  ;;  %v3008_v47 = vadd.f32 %v3007_v13, %v3006_v42  ;;  %v6489_v53 = vpop.eup %3983  ;;  %v2756_v0 = vmul.f32 %v6466_v28, %v6391_v21 }
 0x39c   : > { %v6500_v23 = vpop.eup %3985  ;;  %v2273_v7 = vsel %vm468_vm0, %v6475_v40, 0.0  ;;  %v6506_v25 = vsel %vm468_vm0, %v6375_v8, -inf  ;;  %v2886_v27 = vmul.f32 %v6455_v26, %v2514_v52  ;;  %v3009_v5 = vsel %vm468_vm0, %v2882_v44, 0.0 }
 0x39d   : > { %v6510_v42 = vpop.eup %3987  ;;  %v8297_v20 = vsub.f32 1.0, %v6369_v14  ;;  %vm2672_vm13 = vweird.f32 %v6282_v12  ;;  %v2274_v13 = vadd.f32 %v2273_v7, %v2272_v16  ;;  %v6518_v46 = vsel %vm468_vm0, %v6486_v60, -inf  ;;  %v6525_v14 = vpop.f32.mrf.mxu2 }
 0x39e   : > { %v3010_v49 = vadd.f32 %v3009_v5, %v3008_v47  ;;  %3989 = vrcp.f32 %v6484_v24  ;;  %v2275_v52 = vsel %vm468_vm0, %v6489_v53, 0.0  ;;  %v2888_v44 = vmul.f32 %v6472_v33, %v2516_v15  ;;  %v6529_v55 = vpop.permute.xlu0 %2842  ;;  %v8299_v47 = vld [vmem:[#allocation53_spill] sm:$0xff]  ;;  %v8300_v15 = vld [vmem:[#allocation56_spill] sm:$0xff]  ;;  %v8301_v33 = vld [vmem:[#allocation55_spill] sm:$0xff] }
 0x39f   : > { %v2670_v38 = vmul.f32 %v6353_v62, %v8297_v20  ;;  %v3011_v61 = vsel %vm468_vm0, %v2884_v63, 0.0  ;;  %v6527_v20 = vpop.f32.mrf.mxu1  ;;  %8298 = vst [vmem:[#allocation120_spill] sm:$0xff] %v6529_v55  ;;  %v2757_v16 = vsub.f32 1.0, %v2756_v0  ;;  %v2276_v7 = vadd.f32 %v2275_v52, %v2274_v13  ;;  %v6544_v13 = vpop.permute.xlu2 %2846  ;;  %vm6583_vm15 = vmor %vm2672_vm13, %vm2673_vm12 }
 0x3a0   : > { %v3012_v60 = vadd.f32 %v3011_v61, %v3010_v49  ;;  %v2505_v5 = vmul.f32 %v8299_v47, %v6127_v54  ;;  %v2277_v34 = vsel %vm468_vm0, %v6500_v23, 0.0  ;;  %v3013_v58 = vsel %vm468_vm0, %v2886_v27, 0.0  ;;  %8302 = vst [vmem:[#allocation53_spill] sm:$0xff] %v6544_v13 }
 0x3a1   : > { %v2507_v63 = vmul.f32 %v8300_v15, %v6127_v54  ;;  %v2509_v26 = vmul.f32 %v8301_v33, %v6127_v54  ;;  %v2278_v51 = vadd.f32 %v2277_v34, %v2276_v7  ;;  %v2279_v0 = vsel %vm468_vm0, %v6510_v42, 0.0 }
 0x3a2   : > { %v1779_v61 = vmax.f32 %v6322_v3, %v6506_v25  ;;  %v3014_v49 = vadd.f32 %v3013_v58, %v3012_v60  ;;  %v3015_v52 = vsel %vm468_vm0, %v2888_v44, 0.0  ;;  %v2511_v27 = vmul.f32 %v5671_v6, %v6127_v54 }
 0x3a3   : > { %v2877_v47 = vmul.f32 %v6098_v35, %v2505_v5  ;;  %v2879_v15 = vmul.f32 %v6405_v19, %v2507_v63  ;;  %v2671_v33 = vadd.f32 %v6353_v62, %v2670_v38  ;;  %v8303_v34 = vand.u32 2147483647, %v6282_v12 }
 0x3a4   : > { %v6558_v58 = vadd.f32 %v2279_v0, %v2278_v51  ;;  %v3016_v60 = vadd.f32 %v3015_v52, %v3014_v49  ;;  %v6562_v25 = vpop.eup %3989  ;;  %v2758_v6 = vmul.f32 %v6466_v28, %v2757_v16  ;;  %v6567_v44 = vsel %vm468_vm0, %v6377_v17, -inf }
 0x3a5   : > { %vm6554_vm14 = vcmp.eq.f32.partialorder %v8303_v34, 8.507059e+37  ;;  %v2513_v38 = vmul.f32 %v5681_v45, %v6127_v54  ;;  %v2881_v5 = vmul.f32 %v6168_v2, %v2509_v26  ;;  %v3017_v51 = vsel %vm468_vm0, %v6270_v10, 0.0 }
 0x3a6   : > { %3991 = vrcp.f32 %v6558_v58  ;;  %v2515_v63 = vmul.f32 %v5707_v4, %v6127_v54  ;;  %v2517_v16 = vmul.f32 %v5731_v9, %v6127_v54  ;;  %v3018_v45 = vadd.f32 %v3017_v51, %v3016_v60  ;;  %v6605_v60 = vpop.f32.mrf.mxu2 }
 0x3a7   : > { %v2883_v26 = vmul.f32 %v6529_v55, %v2511_v27  ;;  %v3019_v49 = vsel %vm468_vm0, %v2877_v47, 0.0  ;;  %v3020_v10 = vsel %vm468_vm0, %v2879_v15, 0.0  ;;  %v6590_v52 = vpop.f32.mrf.mxu1  ;;  %v2675_v4 = vsel %vm6583_vm15, %v6353_v62, %v2671_v33  ;;  %v6601_v47 = vpop.f32.mrf.mxu3 }
 0x3a8   : > { %8308 = vst [vmem:[#allocation56_spill] sm:$0xff] %v6590_v52  ;;  %vm2760_vm1 = vweird.f32 %v6391_v21  ;;  %v2536_v9 = vmul.f32 %v6562_v25, %v6484_v24  ;;  %v3021_v54 = vadd.f32 %v3020_v10, %v3019_v49  ;;  %v2766_v27 = vand.u32 2147483648, %v6391_v21  ;;  %3675 = vmatmul.msk.f32.vlgmr.msrb.gmra.mxu2 %vm468_vm0, %v3018_v45  ;;  %v6607_v62 = vpop.permute.xlu0 %2850  ;;  %v6609_v33 = vpop.permute.xlu1 %2854 }
 0x3a9   : > { %v2885_v15 = vmul.f32 %v6544_v13, %v2513_v38  ;;  %v3022_v34 = vsel %vm468_vm0, %v2881_v5, 0.0  ;;  %8309 = vst [vmem:[#allocation55_spill] sm:$0xff] %v6607_v62  ;;  %v2759_v51 = vadd.f32 %v6466_v28, %v2758_v6  ;;  %vm2761_vm2 = vweird.f32 %v6466_v28  ;;  %v6622_v55 = vpop.permute.xlu2 %2858 }
 0x3aa   : > { %8310 = vst [vmem:[#allocation121_spill] sm:$0xff] %v6609_v33  ;;  %v1765_v0 = vsel %vm468_vm0, %v6449_v36, -inf  ;;  %v3023_v45 = vadd.f32 %v3022_v34, %v3021_v54  ;;  %v2887_v49 = vmul.f32 %v6607_v62, %v2515_v63  ;;  %v2889_v38 = vmul.f32 %v6609_v33, %v2517_v16  ;;  %vm6631_vm3 = vmor %vm2760_vm1, %vm2761_vm2 }
 0x3ab   : > { %v3024_v5 = vsel %vm468_vm0, %v2883_v26, 0.0  ;;  %v1780_v10 = vsel %vm468_vm0, %v6525_v14, -inf  ;;  %v2537_v12 = vsub.f32 1.0, %v2536_v9  ;;  %v1767_v6 = vsel %vm468_vm0, %v6605_v60, -inf }
 0x3ac   : > { %v3992_v3 = vpop.eup %3991  ;;  %v3025_v13 = vadd.f32 %v3024_v5, %v3023_v45  ;;  %v1781_v52 = vmax.f32 %v1779_v61, %v1780_v10  ;;  %v6627_v63 = vsel %vm6554_vm14, %v6343_v39, %v2675_v4  ;;  %v8314_v61 = vmax.f32 %v6290_v22, %v6373_v48  ;;  %v8315_v10 = vld [vmem:[#allocation62_spill] sm:$0xff] }
 0x3ad   : > { %8311 = vst [vmem:[#allocation122_spill] sm:$0xff] %v6627_v63  ;;  %v2521_v26 = vmul.f32 %v3992_v3, %v6558_v58  ;;  %v3026_v54 = vsel %vm468_vm0, %v2885_v15, 0.0  ;;  %v2763_v7 = vsel %vm6631_vm3, %v6466_v28, %v2759_v51  ;;  %v2767_v39 = vor.u32 1.1754944e-38, %v2766_v27  ;;  %v8316_v51 = vld [vmem:[#allocation66_spill] sm:$0xff] }
 0x3ae   : > { %v1766_v9 = vmax.f32 %v8314_v61, %v1765_v0  ;;  %v2891_v4 = vmul.f32 %v6622_v55, %v6274_v57  ;;  %v3027_v34 = vadd.f32 %v3026_v54, %v3025_v13  ;;  %v3028_v5 = vsel %vm468_vm0, %v2887_v49, 0.0  ;;  %v8317_v13 = vld [vmem:[#allocation64_spill] sm:$0xff] }
 0x3af   : > { %v2522_v45 = vsub.f32 1.0, %v2521_v26  ;;  %v1783_v33 = vmax.f32 %v1781_v52, %v8315_v10  ;;  %v6647_v17 = vpop.f32.mrf.mxu1  ;;  %v2538_v22 = vmul.f32 %v6562_v25, %v2537_v12  ;;  %v2544_v48 = vand.u32 2147483647, %v6484_v24  ;;  %v8318_v26 = vld [vmem:[#allocation70_spill] sm:$0xff] }
 0x3b0   : > { %v1768_v62 = vmax.f32 %v1766_v9, %v1767_v6  ;;  %v3029_v15 = vadd.f32 %v3028_v5, %v3027_v34  ;;  %v3030_v28 = vsel %vm468_vm0, %v2889_v38, 0.0  ;;  %vm2526_vm4 = vweird.f32 %v3992_v3  ;;  %v6659_v9 = vpop.f32.mrf.mxu3  ;;  %v8320_v38 = vld [vmem:[#allocation68_spill] sm:$0xff]  ;;  %v8323_v5 = vld [vmem:[#allocation74_spill] sm:$0xff] }
 0x3b1   : > { %v2523_v27 = vmul.f32 %v3992_v3, %v2522_v45  ;;  %v1785_v57 = vmax.f32 %v1783_v33, %v8316_v51  ;;  %vm2525_vm5 = vweird.f32 %v6558_v58  ;;  %v2529_v52 = vand.u32 2147483647, %v6558_v58  ;;  %8319 = vst [vmem:[#allocation62_spill] sm:$0xff] %v6659_v9  ;;  %v8339_v33 = vld [vmem:[#allocation31_spill] sm:$0xff] }
 0x3b2   : > { %v1770_v0 = vmax.f32 %v1768_v62, %v8317_v13  ;;  %v2531_v49 = vand.u32 2147483648, %v6558_v58  ;;  %v3031_v6 = vadd.f32 %v3030_v28, %v3029_v15  ;;  %v3032_v12 = vsel %vm468_vm0, %v2891_v4, 0.0  ;;  %vm6664_vm7 = vmor %vm2525_vm5, %vm2526_vm4  ;;  %v8324_v15 = vld [vmem:[#allocation72_spill] sm:$0xff] }
 0x3b3   : > { %v2524_v16 = vadd.f32 %v3992_v3, %v2523_v27  ;;  %v1787_v61 = vmax.f32 %v1785_v57, %v8318_v26  ;;  %vm2541_vm6 = vweird.f32 %v6562_v25  ;;  %v2546_v62 = vand.u32 2147483648, %v6484_v24 }
 0x3b4   : > { %v1772_v54 = vmax.f32 %v1770_v0, %v8320_v38  ;;  %v1825_v58 = vsel %vm468_vm0, %v6601_v47, -inf  ;;  %v3033_v34 = vadd.f32 %v3032_v12, %v3031_v6  ;;  %v2539_v4 = vadd.f32 %v6562_v25, %v2538_v22  ;;  %v8336_v12 = vld [vmem:[#allocation23_spill] sm:$0xff] }
 0x3b5   : > { %v2528_v45 = vsel %vm6664_vm7, %v3992_v3, %v2524_v16  ;;  %v1789_v10 = vmax.f32 %v1787_v61, %v8323_v5  ;;  %v6677_v27 = vmul.f32 %v6187_v29, %v6627_v63  ;;  %v8326_v51 = vand.u32 2147483647, %v6391_v21  ;;  %v8337_v61 = vld [vmem:[#allocation27_spill] sm:$0xff]  ;;  %v8343_v21 = vld [vmem:[#allocation60_spill] sm:$0xff] }
 0x3b6   : > { %v1774_v28 = vmax.f32 %v1772_v54, %v8324_v15  ;;  %v2532_v57 = vor.u32 1.1754944e-38, %v2531_v49  ;;  %v8327_v13 = vmax.f32 %v6286_v41, %v6347_v18  ;;  %3676 = vmatmul.msk.f32.gmra.mxu2 %vm468_vm0, %v3033_v34  ;;  %vm2540_vm9 = vweird.f32 %v6484_v24  ;;  %v8340_v34 = vld [vmem:[#allocation37_spill] sm:$0xff] }
 0x3b7   : > { %8325 = vst [vmem:[#allocation66_spill] sm:$0xff] %v6677_v27  ;;  %vm2765_vm8 = vcmp.eq.f32.partialorder %v8326_v51, 8.507059e+37  ;;  %vm2530_vm10 = vcmp.eq.f32.partialorder %v2529_v52, 8.507059e+37  ;;  %v1791_v29 = vmax.f32 %v1789_v10, %v6260_v32  ;;  %v6692_v0 = vpop.f32.mrf.mxu1  ;;  %vm6696_vm11 = vmor %vm2540_vm9, %vm2541_vm6  ;;  %vm6700_vm12 = vcmp.eq.f32.partialorder %v2544_v48, 8.507059e+37  ;;  %v8334_v52 = vld [vmem:[#allocation77_spill] sm:$0xff] }
 0x3b8   : > { %v6685_v22 = vmax.f32 %v8327_v13, %v6567_v44  ;;  %v6688_v3 = vsel %vm2765_vm8, %v2767_v39, %v2763_v7  ;;  %v2547_v18 = vor.u32 1.1754944e-38, %v2546_v62  ;;  %v6704_v44 = vsel %vm2530_vm10, %v2532_v57, %v2528_v45  ;;  %v6745_v15 = vpop.f32.mrf.mxu3  ;;  %v8342_v57 = vld [vmem:[#allocation104_spill] sm:$0xff] }
 0x3b9   : > { %8328 = vst [vmem:[#allocation64_spill] sm:$0xff] %v6688_v3  ;;  %v8333_v24 = vmax.f32 %v6294_v59, %v6387_v11  ;;  %v2543_v32 = vsel %vm6696_vm11, %v6562_v25, %v2539_v4  ;;  %v6716_v39 = vsel %vm468_vm0, %v6451_v1, -inf  ;;  %v1933_v48 = vsub.f32 %v6224_v50, %v1791_v29  ;;  %v8335_v59 = vld [vmem:[#allocation19_spill] sm:$0xff] }
 0x3ba   : > { %v6720_v49 = vmax.f32 %v1774_v28, %v8334_v52  ;;  %v1935_v6 = vsub.f32 %v6375_v8, %v1791_v29  ;;  %v1937_v16 = vsub.f32 %v6525_v14, %v1791_v29  ;;  %v1939_v11 = vsub.f32 %v8335_v59, %v1791_v29  ;;  %v8338_v14 = vld [vmem:[#allocation51_spill] sm:$0xff]  ;;  %8341 = vst [vmem:[#allocation70_spill] sm:$0xff] %v6745_v15  ;;  %v8346_v59 = vld [vmem:[#allocation17_spill] sm:$0xff] }
 0x3bb   : > { %v6709_v7 = vmax.f32 %v8333_v24, %v1825_v58  ;;  %v1941_v26 = vsub.f32 %v8336_v12, %v1791_v29  ;;  %v2534_v25 = vmul.f32 %v6435_v31, %v6704_v44  ;;  %v1943_v38 = vsub.f32 %v8337_v61, %v1791_v29  ;;  %v8344_v24 = vld [vmem:[#allocation16_spill] sm:$0xff] }
 0x3bc   : > { %v6731_v54 = vsel %vm468_vm0, %v6659_v9, -inf  ;;  %v6735_v50 = vsel %vm468_vm0, %v6527_v20, -inf  ;;  %v6739_v8 = vsel %vm6700_vm12, %v2547_v18, %v2543_v32  ;;  %v2550_v62 = vmul.f32 %v8338_v14, %v6704_v44 }
 0x3bd   : > { %v1945_v58 = vsub.f32 %v8339_v33, %v1791_v29  ;;  %v2142_v31 = vmul.f32 1.442695, %v1933_v48  ;;  %v1947_v4 = vsub.f32 %v8340_v34, %v1791_v29  ;;  %v2146_v45 = vmul.f32 1.442695, %v1935_v6  ;;  %v8345_v48 = vld [vmem:[#allocation115_spill] sm:$0xff]  ;;  %v8349_v34 = vld [vmem:[#allocation21_spill] sm:$0xff] }
 0x3be   : > { %v2150_v5 = vmul.f32 1.442695, %v1937_v16  ;;  %v2154_v10 = vmul.f32 1.442695, %v1939_v11  ;;  %v2158_v28 = vmul.f32 1.442695, %v1941_v26  ;;  %v1932_v13 = vsub.f32 %v8342_v57, %v6720_v49 }
 0x3bf   : > { %3993 = vpow2.f32 %v2142_v31  ;;  %v2892_v41 = vmul.f32 %v8343_v21, %v2534_v25  ;;  %v2162_v18 = vmul.f32 1.442695, %v1943_v38  ;;  %v1934_v29 = vsub.f32 %v8344_v24, %v6720_v49  ;;  %v6754_v32 = vpop.f32.mrf.mxu1  ;;  %v8347_v25 = vld [vmem:[#allocation20_spill] sm:$0xff]  ;;  %v8351_v24 = vld [vmem:[#allocation25_spill] sm:$0xff] }
 0x3c0   : > { %3995 = vpow2.f32 %v2146_v45  ;;  %v2894_v52 = vmul.f32 %v8345_v48, %v2550_v62  ;;  %v2166_v6 = vmul.f32 1.442695, %v1945_v58  ;;  %v1936_v16 = vsub.f32 %v6449_v36, %v6720_v49  ;;  %v8348_v62 = vld [vmem:[#allocation117_spill] sm:$0xff] }
 0x3c1   : > { %3997 = vpow2.f32 %v2150_v5  ;;  %v2549_v11 = vmul.f32 %v8346_v59, %v6739_v8  ;;  %v2170_v12 = vmul.f32 1.442695, %v1947_v4  ;;  %v1938_v26 = vsub.f32 %v6605_v60, %v6720_v49  ;;  %v8353_v59 = vld [vmem:[#allocation29_spill] sm:$0xff] }
 0x3c2   : > { %3999 = vpow2.f32 %v2154_v10  ;;  %v6765_v61 = vmul.f32 %v8347_v25, %v6739_v8  ;;  %v2552_v38 = vmul.f32 %v6453_v56, %v6704_v44  ;;  %v2140_v14 = vmul.f32 1.442695, %v1932_v13  ;;  %v8350_v13 = vld [vmem:[#allocation98_spill] sm:$0xff] }
 0x3c3   : > { %4001 = vpow2.f32 %v2158_v28  ;;  %v6771_v36 = vmul.f32 %v8348_v62, %v6739_v8  ;;  %v3034_v33 = vsel %vm468_vm0, %v2892_v41, 0.0  ;;  %v2144_v58 = vmul.f32 1.442695, %v1934_v29 }
 0x3c4   : > { %4003 = vpow2.f32 %v2162_v18  ;;  %v3035_v60 = vsel %vm468_vm0, %v2894_v52, 0.0  ;;  %v1940_v4 = vsub.f32 %v8349_v34, %v6720_v49  ;;  %v2148_v45 = vmul.f32 1.442695, %v1936_v16  ;;  %v8356_v34 = vld [vmem:[#allocation34_spill] sm:$0xff] }
 0x3c5   : > { %v6774_v31 = vpop.eup %3993  ;;  %4005 = vpow2.f32 %v2166_v6  ;;  %v2152_v10 = vmul.f32 1.442695, %v1938_v26  ;;  %v1709_v28 = vsel %vm468_vm0, %v6647_v17, -inf  ;;  %v2896_v41 = vmul.f32 %v8350_v13, %v2552_v38  ;;  %v6796_v26 = vpop.f32.mrf.mxu3 }
 0x3c6   : > { %v6779_v56 = vpop.eup %3995  ;;  %4007 = vpow2.f32 %v2170_v12  ;;  %v2401_v5 = vsel %vm468_vm0, %v6774_v31, 0.0  ;;  %v1942_v29 = vsub.f32 %v8351_v24, %v6720_v49  ;;  %v3036_v6 = vadd.f32 %v3035_v60, %v3034_v33  ;;  %8354 = vst [vmem:[#allocation74_spill] sm:$0xff] %v6796_v26 }
 0x3c7   : > { %v6785_v57 = vpop.eup %3997  ;;  %v2402_v18 = vsel %vm468_vm0, %v6779_v56, 0.0  ;;  %4009 = vpow2.f32 %v2140_v14  ;;  %v1944_v12 = vsub.f32 %v8353_v59, %v6720_v49  ;;  %v6798_v25 = vpop.f32.mrf.mxu1  ;;  %v1946_v14 = vsub.f32 %v8356_v34, %v6720_v49 }
 0x3c8   : > { %v6792_v52 = vpop.eup %3999  ;;  %v2403_v16 = vadd.f32 %v2402_v18, %v2401_v5  ;;  %4011 = vpow2.f32 %v2144_v58  ;;  %v2404_v62 = vsel %vm468_vm0, %v6785_v57, 0.0  ;;  %v2156_v24 = vmul.f32 1.442695, %v1940_v4 }
 0x3c9   : > { %8352 = vst [vmem:[#allocation68_spill] sm:$0xff] %v6792_v52  ;;  %v6800_v38 = vpop.eup %4001  ;;  %4013 = vpow2.f32 %v2148_v45  ;;  %v6809_v60 = vmul.f32 %v6098_v35, %v2549_v11  ;;  %v2554_v5 = vmul.f32 %v6462_v30, %v6704_v44  ;;  %v3037_v59 = vsel %vm468_vm0, %v2896_v41, 0.0 }
 0x3ca   : > { %8355 = vst [vmem:[#allocation72_spill] sm:$0xff] %v6800_v38  ;;  %v6806_v33 = vpop.eup %4003  ;;  %v2405_v58 = vadd.f32 %v2404_v62, %v2403_v16  ;;  %4015 = vpow2.f32 %v2152_v10  ;;  %v2406_v51 = vsel %vm468_vm0, %v6792_v52, 0.0  ;;  %v2160_v49 = vmul.f32 1.442695, %v1942_v29 }
 0x3cb   : > { %8357 = vst [vmem:[#allocation77_spill] sm:$0xff] %v6806_v33  ;;  %v6813_v18 = vpop.eup %4005  ;;  %v2556_v4 = vmul.f32 %v6475_v40, %v6704_v44  ;;  %v3038_v11 = vadd.f32 %v3037_v59, %v3036_v6  ;;  %v2164_v16 = vmul.f32 1.442695, %v1944_v12  ;;  %v8360_v10 = vmax.f32 %v6685_v22, %v6735_v50 }
 0x3cc   : > { %8358 = vst [vmem:[#allocation19_spill] sm:$0xff] %v6813_v18  ;;  %v6820_v45 = vpop.eup %4007  ;;  %v2407_v34 = vadd.f32 %v2406_v51, %v2405_v58  ;;  %v2408_v41 = vsel %vm468_vm0, %v6800_v38, 0.0  ;;  %4017 = vpow2.f32 %v2156_v24  ;;  %v2168_v3 = vmul.f32 1.442695, %v1946_v14  ;;  %v8361_v14 = vld [vmem:[#allocation116_spill] sm:$0xff] }
 0x3cd   : > { %8359 = vst [vmem:[#allocation23_spill] sm:$0xff] %v6820_v45  ;;  %v1710_v30 = vmax.f32 %v8360_v10, %v1709_v28  ;;  %v6825_v62 = vpop.eup %4009  ;;  %v1711_v29 = vsel %vm468_vm0, %v6754_v32, -inf  ;;  %v2558_v22 = vmul.f32 %v6489_v53, %v6704_v44  ;;  %v2898_v50 = vmul.f32 %v6340_v37, %v2554_v5  ;;  %v6856_v38 = vpop.f32.mrf.mxu3 }
 0x3ce   : > { %v6831_v40 = vpop.eup %4011  ;;  %v2409_v52 = vadd.f32 %v2408_v41, %v2407_v34  ;;  %v2386_v51 = vsel %vm468_vm0, %v6825_v62, 0.0  ;;  %v2410_v6 = vsel %vm468_vm0, %v6806_v33, 0.0  ;;  %4019 = vpow2.f32 %v2160_v49 }
 0x3cf   : > { %v6838_v28 = vpop.eup %4013  ;;  %v2387_v12 = vsel %vm468_vm0, %v6831_v40, 0.0  ;;  %v2900_v24 = vmul.f32 %v8361_v14, %v2556_v4  ;;  %v2412_v34 = vsel %vm468_vm0, %v6813_v18, 0.0  ;;  %v2560_v5 = vmul.f32 %v6500_v23, %v6704_v44 }
 0x3d0   : > { %v6845_v58 = vpop.eup %4015  ;;  %v2411_v59 = vadd.f32 %v2410_v6, %v2409_v52  ;;  %v2388_v53 = vadd.f32 %v2387_v12, %v2386_v51  ;;  %4021 = vpow2.f32 %v2164_v16  ;;  %v2389_v10 = vsel %vm468_vm0, %v6838_v28, 0.0  ;;  %v8362_v52 = vld [vmem:[#allocation54_spill] sm:$0xff]  ;;  %v6859_v51 = vpop.f32.mrf.mxu1 }
 0x3d1   : > { %v2562_v49 = vmul.f32 %v6510_v42, %v6704_v44  ;;  %v3039_v41 = vsel %vm468_vm0, %v2898_v50, 0.0  ;;  %v2902_v6 = vmul.f32 %v8362_v52, %v2558_v22  ;;  %v2414_v23 = vsel %vm468_vm0, %v6820_v45, 0.0 }
 0x3d2   : > { %v2413_v4 = vadd.f32 %v2412_v34, %v2411_v59  ;;  %v2390_v33 = vadd.f32 %v2389_v10, %v2388_v53  ;;  %v3040_v18 = vadd.f32 %v3039_v41, %v3038_v11  ;;  %v6861_v12 = vpop.eup %4017  ;;  %4023 = vpow2.f32 %v2168_v3  ;;  %v8364_v59 = vld [vmem:[#allocation118_spill] sm:$0xff]  ;;  %v8366_v10 = vld [vmem:[#allocation71_spill] sm:$0xff]  ;;  %v8367_v41 = vld [vmem:[#allocation32_spill] sm:$0xff] }
 0x3d3   : > { %8363 = vst [vmem:[#allocation27_spill] sm:$0xff] %v6861_v12  ;;  %v2391_v42 = vsel %vm468_vm0, %v6845_v58, 0.0  ;;  %v3041_v44 = vsel %vm468_vm0, %v2900_v24, 0.0  ;;  %v2904_v34 = vmul.f32 %v8364_v59, %v2560_v5  ;;  %v2895_v53 = vmul.f32 %v6405_v19, %v6765_v61 }
 0x3d4   : > { %v6868_v16 = vadd.f32 %v2414_v23, %v2413_v4  ;;  %v2392_v50 = vadd.f32 %v2391_v42, %v2390_v33  ;;  %v3042_v22 = vadd.f32 %v3041_v44, %v3040_v18  ;;  %v6871_v11 = vpop.eup %4019  ;;  %v8368_v3 = vmax.f32 %v8366_v10, %v8367_v41  ;;  %v8369_v18 = vld [vmem:[#allocation35_spill] sm:$0xff] }
 0x3d5   : > { %8365 = vst [vmem:[#allocation51_spill] sm:$0xff] %v6871_v11  ;;  %v1712_v27 = vmax.f32 %v1710_v30, %v1711_v29  ;;  %v1713_v24 = vsel %vm468_vm0, %v6859_v51, -inf  ;;  %v2393_v33 = vsel %vm468_vm0, %v6861_v12, 0.0  ;;  %v2906_v5 = vmul.f32 %v8369_v18, %v2562_v49  ;;  %v8389_v12 = vld [vmem:[#allocation121_spill] sm:$0xff] }
 0x3d6   : > { %v6879_v45 = vmax.f32 %v8368_v3, %v6716_v39  ;;  %4025 = vrcp.f32 %v6868_v16  ;;  %v3043_v4 = vsel %vm468_vm0, %v2902_v6, 0.0  ;;  %v6888_v61 = vpop.eup %4021  ;;  %v8371_v39 = vmax.f32 %v6330_v43, %v6518_v46  ;;  %v8374_v3 = vld [vmem:[#allocation24_spill] sm:$0xff] }
 0x3d7   : > { %8370 = vst [vmem:[#allocation31_spill] sm:$0xff] %v6888_v61  ;;  %v2394_v30 = vadd.f32 %v2393_v33, %v2392_v50  ;;  %v3044_v29 = vadd.f32 %v3043_v4, %v3042_v22  ;;  %v1714_v42 = vmax.f32 %v1712_v27, %v1713_v24  ;;  %v2897_v44 = vmul.f32 %v6168_v2, %v6771_v36  ;;  %v8373_v50 = vld [vmem:[#allocation76_spill] sm:$0xff]  ;;  %v8375_v4 = vld [vmem:[#allocation45_spill] sm:$0xff] }
 0x3d8   : > { %v6894_v23 = vmax.f32 %v8371_v39, %v6731_v54  ;;  %v3049_v10 = vsel %vm468_vm0, %v6809_v60, 0.0  ;;  %v2395_v49 = vsel %vm468_vm0, %v6871_v11, 0.0  ;;  %v3045_v6 = vsel %vm468_vm0, %v2904_v34, 0.0  ;;  %v6903_v41 = vpop.eup %4023  ;;  %v8376_v39 = vld [vmem:[#allocation111_spill] sm:$0xff] }
 0x3d9   : > { %8372 = vst [vmem:[#allocation37_spill] sm:$0xff] %v6903_v41  ;;  %v3050_v43 = vsel %vm468_vm0, %v2895_v53, 0.0  ;;  %v2396_v46 = vadd.f32 %v2395_v49, %v2394_v30  ;;  %v3046_v54 = vadd.f32 %v3045_v6, %v3044_v29  ;;  %v1716_v22 = vmax.f32 %v1714_v42, %v8373_v50  ;;  %v6922_v6 = vpop.f32.mrf.mxu3  ;;  %v8377_v50 = vld [vmem:[#allocation75_spill] sm:$0xff] }
 0x3da   : > { %v2397_v27 = vsel %vm468_vm0, %v6888_v61, 0.0  ;;  %v6911_v36 = vsel %vm468_vm0, %v6745_v15, -inf  ;;  %v3047_v60 = vsel %vm468_vm0, %v2906_v5, 0.0  ;;  %v2555_v34 = vmul.f32 %v8374_v3, %v6739_v8 }
 0x3db   : > { %v2398_v24 = vadd.f32 %v2397_v27, %v2396_v46  ;;  %v3048_v33 = vadd.f32 %v3047_v60, %v3046_v54  ;;  %v1900_v53 = vsub.f32 %v8375_v4, %v1716_v22  ;;  %v1902_v30 = vsub.f32 %v8376_v39, %v1716_v22  ;;  %v8378_v4 = vld [vmem:[#allocation52_spill] sm:$0xff] }
 0x3dc   : > { %v6918_v29 = vpop.eup %4025  ;;  %v3051_v42 = vadd.f32 %v3050_v43, %v3049_v10  ;;  %v2399_v49 = vsel %vm468_vm0, %v6903_v41, 0.0  ;;  %v1904_v61 = vsub.f32 %v8377_v50, %v1716_v22  ;;  %v1906_v5 = vsub.f32 %v6527_v20, %v1716_v22 }
 0x3dd   : > { %v3052_v3 = vsel %vm468_vm0, %v2897_v44, 0.0  ;;  %v2712_v46 = vmul.f32 %v6918_v29, %v6868_v16  ;;  %v6929_v54 = vadd.f32 %v2399_v49, %v2398_v24  ;;  %3677 = vmatmul.msk.f32.gmra.mxu2 %vm468_vm0, %v3048_v33  ;;  %v1908_v10 = vsub.f32 %v6647_v17, %v1716_v22  ;;  %v8379_v44 = vld [vmem:[#allocation120_spill] sm:$0xff] }
 0x3de   : > { %v2076_v43 = vmul.f32 1.442695, %v1900_v53  ;;  %v2080_v27 = vmul.f32 1.442695, %v1902_v30  ;;  %v2084_v60 = vmul.f32 1.442695, %v1904_v61  ;;  %v2557_v39 = vmul.f32 %v8378_v4, %v6739_v8 }
 0x3df   : > { %v2713_v50 = vsub.f32 1.0, %v2712_v46  ;;  %4027 = vrcp.f32 %v6929_v54  ;;  %v1910_v20 = vsub.f32 %v6754_v32, %v1716_v22  ;;  %v2899_v41 = vmul.f32 %v8379_v44, %v2555_v34  ;;  %v8380_v53 = vld [vmem:[#allocation28_spill] sm:$0xff]  ;;  %v8382_v34 = vld [vmem:[#allocation53_spill] sm:$0xff] }
 0x3e0   : > { %v3053_v11 = vadd.f32 %v3052_v3, %v3051_v42  ;;  %4029 = vpow2.f32 %v2076_v43  ;;  %v2088_v33 = vmul.f32 1.442695, %v1906_v5  ;;  %v1912_v17 = vsub.f32 %v6859_v51, %v1716_v22  ;;  %v8381_v46 = vld [vmem:[#allocation56_spill] sm:$0xff]  ;;  %v8383_v3 = vld [vmem:[#allocation33_spill] sm:$0xff] }
 0x3e1   : > { %4031 = vpow2.f32 %v2080_v27  ;;  %v2092_v61 = vmul.f32 1.442695, %v1908_v10  ;;  %v2559_v30 = vmul.f32 %v8380_v53, %v6739_v8  ;;  %v2714_v49 = vmul.f32 %v6918_v29, %v2713_v50  ;;  %v8384_v27 = vld [vmem:[#allocation57_spill] sm:$0xff] }
 0x3e2   : > { %v1722_v32 = vsel %vm468_vm0, %v8381_v46, -inf  ;;  %4033 = vpow2.f32 %v2084_v60  ;;  %v2901_v42 = vmul.f32 %v8382_v34, %v2557_v39  ;;  %v1914_v4 = vsub.f32 %v8383_v3, %v1716_v22  ;;  %v8385_v22 = vld [vmem:[#allocation47_spill] sm:$0xff] }
 0x3e3   : > { %4035 = vpow2.f32 %v2088_v33  ;;  %v2096_v43 = vmul.f32 1.442695, %v1910_v20  ;;  %v3054_v5 = vsel %vm468_vm0, %v2899_v41, 0.0  ;;  %v6951_v51 = vsel %vm468_vm0, %v6796_v26, -inf  ;;  %v8386_v33 = vld [vmem:[#allocation55_spill] sm:$0xff] }
 0x3e4   : > { %v1724_v10 = vsel %vm468_vm0, %v6692_v0, -inf  ;;  %v2561_v50 = vmul.f32 %v8384_v27, %v6739_v8  ;;  %v3055_v53 = vadd.f32 %v3054_v5, %v3053_v11  ;;  %4037 = vpow2.f32 %v2092_v61  ;;  %v6968_v11 = vpop.f32.mrf.mxu3 }
 0x3e5   : > { %v6957_v60 = vpop.eup %4027  ;;  %v2100_v39 = vmul.f32 1.442695, %v1912_v17  ;;  %v2563_v20 = vmul.f32 %v8385_v22, %v6739_v8  ;;  %v2903_v41 = vmul.f32 %v8386_v33, %v2559_v30  ;;  %v2715_v24 = vadd.f32 %v6918_v29, %v2714_v49 }
 0x3e6   : > { %v6962_v3 = vpop.eup %4029  ;;  %vm2716_vm13 = vweird.f32 %v6868_v16  ;;  %vm2717_vm14 = vweird.f32 %v6918_v29  ;;  %v2720_v27 = vand.u32 2147483647, %v6868_v16  ;;  %v2722_v17 = vand.u32 2147483648, %v6868_v16 }
 0x3e7   : > { %8387 = vst [vmem:[#allocation104_spill] sm:$0xff] %v6962_v3  ;;  %v6970_v5 = vpop.eup %4031  ;;  %4039 = vpow2.f32 %v2096_v43  ;;  %v2104_v8 = vmul.f32 1.442695, %v1914_v4  ;;  %v3056_v61 = vsel %vm468_vm0, %v2901_v42, 0.0  ;;  %v2326_v49 = vsel %vm468_vm0, %v6962_v3, 0.0  ;;  %vm6985_vm15 = vmor %vm2716_vm13, %vm2717_vm14 }
 0x3e8   : > { %8388 = vst [vmem:[#allocation60_spill] sm:$0xff] %v6970_v5  ;;  %v6974_v30 = vpop.eup %4033  ;;  %v2327_v22 = vsel %vm468_vm0, %v6970_v5, 0.0  ;;  %v2905_v63 = vmul.f32 %v8389_v12, %v2561_v50  ;;  %v3057_v26 = vadd.f32 %v3056_v61, %v3055_v53  ;;  %4041 = vpow2.f32 %v2100_v39 }
 0x3e9   : > { %v6981_v9 = vpop.eup %4035  ;;  %v2328_v42 = vadd.f32 %v2327_v22, %v2326_v49  ;;  %v2907_v4 = vmul.f32 %v6622_v55, %v2563_v20  ;;  %v3058_v3 = vsel %vm468_vm0, %v2903_v41, 0.0  ;;  %v2719_v5 = vsel %vm6985_vm15, %v6918_v29, %v2715_v24  ;;  %v7006_v49 = vpop.f32.mrf.mxu1 }
 0x3ea   : > { %8390 = vst [vmem:[#allocation16_spill] sm:$0xff] %v6981_v9  ;;  %v2697_v50 = vmul.f32 %v6957_v60, %v6929_v54  ;;  %v2329_v16 = vsel %vm468_vm0, %v6974_v30, 0.0  ;;  %v3059_v53 = vadd.f32 %v3058_v3, %v3057_v26  ;;  %v6998_v61 = vpop.eup %4037  ;;  %v2723_v15 = vor.u32 1.1754944e-38, %v2722_v17 }
 0x3eb   : > { %8393 = vst [vmem:[#allocation115_spill] sm:$0xff] %v6998_v61  ;;  %v1723_v39 = vmax.f32 %v6879_v45, %v1722_v32  ;;  %4043 = vpow2.f32 %v2104_v8  ;;  %v2330_v20 = vadd.f32 %v2329_v16, %v2328_v42  ;;  %vm2721_vm1 = vcmp.eq.f32.partialorder %v2720_v27, 8.507059e+37 }
 0x3ec   : > { %v1726_v41 = vsel %vm468_vm0, %v6798_v25, -inf  ;;  %v2331_v29 = vsel %vm468_vm0, %v6981_v9, 0.0  ;;  %v3060_v24 = vsel %vm468_vm0, %v2905_v63, 0.0  ;;  %v7010_v26 = vsel %vm2721_vm1, %v2723_v15, %v2719_v5 }
 0x3ed   : > { %v7008_v22 = vpop.eup %4039  ;;  %8395 = vst [vmem:[#allocation20_spill] sm:$0xff] %v7010_v26  ;;  %v1725_v3 = vmax.f32 %v1723_v39, %v1724_v10  ;;  %v2332_v17 = vadd.f32 %v2331_v29, %v2330_v20  ;;  %v3061_v45 = vadd.f32 %v3060_v24, %v3059_v53  ;;  %v2698_v32 = vsub.f32 1.0, %v2697_v50  ;;  %v7027_v53 = vpop.f32.mrf.mxu3  ;;  %v8397_v29 = vld [vmem:[#allocation48_spill] sm:$0xff]  ;;  %v8398_v24 = vld [vmem:[#allocation38_spill] sm:$0xff] }
 0x3ee   : > { %8394 = vst [vmem:[#allocation17_spill] sm:$0xff] %v7008_v22  ;;  %v1829_v27 = vsel %vm468_vm0, %v6856_v38, -inf  ;;  %v2333_v8 = vsel %vm468_vm0, %v6998_v61, 0.0  ;;  %v3062_v43 = vsel %vm468_vm0, %v2907_v4, 0.0  ;;  %v7017_v42 = vpop.eup %4041  ;;  %v1728_v15 = vsel %vm468_vm0, %v7006_v49, -inf }
 0x3ef   : > { %v1727_v63 = vmax.f32 %v1725_v3, %v1726_v41  ;;  %v2334_v16 = vadd.f32 %v2333_v8, %v2332_v17  ;;  %v3063_v9 = vadd.f32 %v3062_v43, %v3061_v45  ;;  %v2725_v10 = vmul.f32 %v6774_v31, %v7010_v26  ;;  %v8399_v3 = vld [vmem:[#allocation42_spill] sm:$0xff] }
 0x3f0   : > { %v1843_v5 = vmax.f32 %v6894_v23, %v6951_v51  ;;  %v1844_v50 = vsel %vm468_vm0, %v6922_v6, -inf  ;;  %v2335_v4 = vsel %vm468_vm0, %v7008_v22, 0.0  ;;  %v2578_v31 = vmul.f32 %v8398_v24, %v8397_v29  ;;  %v8403_v24 = vld [vmem:[#allocation58_spill] sm:$0xff] }
 0x3f1   : > { %v7031_v39 = vpop.eup %4043  ;;  %v2336_v20 = vadd.f32 %v2335_v4, %v2334_v16  ;;  %3678 = vmatmul.msk.f32.gmra.mxu2 %vm468_vm0, %v3063_v9  ;;  %v1729_v41 = vmax.f32 %v1727_v63, %v1728_v15  ;;  %v2594_v23 = vmul.f32 %v8399_v3, %v8397_v29  ;;  %v2727_v51 = vmul.f32 %v6779_v56, %v7010_v26  ;;  %v8401_v63 = vld [vmem:[#allocation69_spill] sm:$0xff]  ;;  %v8402_v15 = vld [vmem:[#allocation46_spill] sm:$0xff] }
 0x3f2   : > { %8396 = vst [vmem:[#allocation117_spill] sm:$0xff] %v7031_v39  ;;  %v2699_v17 = vmul.f32 %v6957_v60, %v2698_v32  ;;  %v8400_v45 = vmax.f32 %v6709_v7, %v6911_v36  ;;  %v2337_v9 = vsel %vm468_vm0, %v7017_v42, 0.0  ;;  %v2596_v4 = vmul.f32 %v8402_v15, %v8397_v29 }
 0x3f3   : > { %v2338_v43 = vadd.f32 %v2337_v9, %v2336_v20  ;;  %v1731_v16 = vmax.f32 %v1729_v41, %v8401_v63  ;;  %v2598_v3 = vmul.f32 %v8403_v24, %v8397_v29  ;;  %v2957_v56 = vmul.f32 %v6098_v35, %v2725_v10  ;;  %v8405_v41 = vld [vmem:[#allocation18_spill] sm:$0xff] }
 0x3f4   : > { %v7044_v8 = vmax.f32 %v8400_v45, %v1829_v27  ;;  %v2707_v32 = vand.u32 2147483648, %v6929_v54  ;;  %v7055_v22 = vmax.f32 %v1843_v5, %v1844_v50  ;;  %v2339_v7 = vsel %vm468_vm0, %v7031_v39, 0.0  ;;  %v8404_v27 = vld [vmem:[#allocation105_spill] sm:$0xff] }
 0x3f5   : > { %vm2702_vm2 = vweird.f32 %v6957_v60  ;;  %v7060_v36 = vadd.f32 %v2339_v7, %v2338_v43  ;;  %v1901_v20 = vsub.f32 %v8404_v27, %v1731_v16  ;;  %v1903_v45 = vsub.f32 %v8405_v41, %v1731_v16  ;;  %v8408_v41 = vld [vmem:[#allocation36_spill] sm:$0xff] }
 0x3f6   : > { %v2959_v9 = vmul.f32 %v6405_v19, %v2727_v51  ;;  %v2700_v63 = vadd.f32 %v6957_v60, %v2699_v17  ;;  %v1905_v10 = vsub.f32 %v6451_v1, %v1731_v16  ;;  %v1907_v5 = vsub.f32 %v8381_v46, %v1731_v16  ;;  %v8411_v1 = vld [vmem:[#allocation81_spill] sm:$0xff] }
 0x3f7   : > { %vm2701_vm3 = vweird.f32 %v6929_v54  ;;  %v2705_v50 = vand.u32 2147483647, %v6929_v54  ;;  %v7072_v43 = vsel %vm468_vm0, %v6968_v11, -inf  ;;  %v1909_v15 = vsub.f32 %v6692_v0, %v1731_v16 }
 0x3f8   : > { %v2729_v24 = vmul.f32 %v6785_v57, %v7010_v26  ;;  %v3169_v51 = vsel %vm468_vm0, %v2957_v56, 0.0  ;;  %v2708_v17 = vor.u32 1.1754944e-38, %v2707_v32  ;;  %v2078_v7 = vmul.f32 1.442695, %v1901_v20  ;;  %vm7080_vm4 = vmor %vm2701_vm3, %vm2702_vm2  ;;  %v7090_v56 = vpop.f32.mrf.mxu3 }
 0x3f9   : > { %4045 = vrcp.f32 %v7060_v36  ;;  %v1911_v54 = vsub.f32 %v6798_v25, %v1731_v16  ;;  %v2082_v46 = vmul.f32 1.442695, %v1903_v45  ;;  %v2086_v27 = vmul.f32 1.442695, %v1905_v10  ;;  %v8409_v25 = vld [vmem:[#allocation78_spill] sm:$0xff] }
 0x3fa   : > { %v3170_v0 = vsel %vm468_vm0, %v2959_v9, 0.0  ;;  %v2704_v57 = vsel %vm7080_vm4, %v6957_v60, %v2700_v63  ;;  %4047 = vpow2.f32 %v2078_v7  ;;  %v2090_v32 = vmul.f32 1.442695, %v1907_v5  ;;  %v8410_v9 = vld [vmem:[#allocation79_spill] sm:$0xff] }
 0x3fb   : > { %v1913_v20 = vsub.f32 %v7006_v49, %v1731_v16  ;;  %v1915_v26 = vsub.f32 %v8408_v41, %v1731_v16  ;;  %4049 = vpow2.f32 %v2082_v46  ;;  %v2094_v39 = vmul.f32 1.442695, %v1909_v15 }
 0x3fc   : > { %4051 = vpow2.f32 %v2086_v27  ;;  %v2600_v45 = vmul.f32 %v8409_v25, %v8397_v29  ;;  %v2602_v10 = vmul.f32 %v8410_v9, %v8397_v29  ;;  %v2604_v60 = vmul.f32 %v8411_v1, %v8397_v29 }
 0x3fd   : > { %4053 = vpow2.f32 %v2090_v32  ;;  %v2098_v63 = vmul.f32 1.442695, %v1911_v54  ;;  %v2908_v5 = vmul.f32 %v8343_v21, %v2578_v31  ;;  %v2910_v49 = vmul.f32 %v8345_v48, %v2594_v23 }
 0x3fe   : > { %v7103_v16 = vmul.f32 %v6168_v2, %v2729_v24  ;;  %vm2706_vm5 = vcmp.eq.f32.partialorder %v2705_v50, 8.507059e+37  ;;  %v7109_v7 = vsel %vm468_vm0, %v7027_v53, -inf  ;;  %4055 = vpow2.f32 %v2094_v39 }
 0x3ff   : > { %v7111_v46 = vpop.eup %4045  ;;  %v7113_v29 = vsel %vm2706_vm5, %v2708_v17, %v2704_v57  ;;  %v2102_v54 = vmul.f32 1.442695, %v1913_v20  ;;  %v2912_v31 = vmul.f32 %v8350_v13, %v2596_v4  ;;  %v7118_v24 = vadd.f32 %v3170_v0, %v3169_v51 }
 0x400   : > { %v7116_v23 = vpop.eup %4047  ;;  %v7122_v50 = vsel %vm468_vm0, %v7090_v56, -inf  ;;  %v2106_v27 = vmul.f32 1.442695, %v1915_v26  ;;  %v3064_v32 = vsel %vm468_vm0, %v2908_v5, 0.0  ;;  %4057 = vpow2.f32 %v2098_v63  ;;  %v7148_v15 = vpop.f32.mrf.mxu3 }
 0x401   : > { %8412 = vst [vmem:[#allocation21_spill] sm:$0xff] %v7116_v23  ;;  %v7125_v41 = vpop.eup %4049  ;;  %v2341_v39 = vsel %vm468_vm0, %v7116_v23, 0.0  ;;  %v2914_v17 = vmul.f32 %v6340_v37, %v2598_v3  ;;  %v3065_v4 = vsel %vm468_vm0, %v2910_v49, 0.0  ;;  %v2710_v51 = vmul.f32 %v6825_v62, %v7113_v29 }
 0x402   : > { %8413 = vst [vmem:[#allocation98_spill] sm:$0xff] %v7125_v41  ;;  %v7131_v57 = vpop.eup %4051  ;;  %v2609_v26 = vmul.f32 %v7111_v46, %v7060_v36  ;;  %v2342_v0 = vsel %vm468_vm0, %v7125_v41, 0.0  ;;  %v3066_v20 = vadd.f32 %v3065_v4, %v3064_v32  ;;  %4059 = vpow2.f32 %v2102_v54 }
 0x403   : > { %8414 = vst [vmem:[#allocation25_spill] sm:$0xff] %v7131_v57  ;;  %v7139_v25 = vpop.eup %4053  ;;  %v2343_v9 = vadd.f32 %v2342_v0, %v2341_v39  ;;  %v2916_v3 = vmul.f32 %v8361_v14, %v2600_v45  ;;  %v3067_v1 = vsel %vm468_vm0, %v2912_v31, 0.0  ;;  %v2726_v63 = vmul.f32 %v6831_v40, %v7113_v29 }
 0x404   : > { %8415 = vst [vmem:[#allocation29_spill] sm:$0xff] %v7139_v25  ;;  %v2344_v62 = vsel %vm468_vm0, %v7131_v57, 0.0  ;;  %v2918_v5 = vmul.f32 %v8362_v52, %v2602_v10  ;;  %v3068_v49 = vadd.f32 %v3067_v1, %v3066_v20  ;;  %v7150_v32 = vpop.eup %4055  ;;  %v2728_v54 = vmul.f32 %v6838_v28, %v7113_v29  ;;  %v8418_v1 = vld [vmem:[#allocation92_spill] sm:$0xff]  ;;  %v8419_v28 = vld [vmem:[#allocation61_spill] sm:$0xff] }
 0x405   : > { %8416 = vst [vmem:[#allocation34_spill] sm:$0xff] %v7150_v32  ;;  %4061 = vpow2.f32 %v2106_v27  ;;  %v2345_v45 = vadd.f32 %v2344_v62, %v2343_v9  ;;  %v3069_v31 = vsel %vm468_vm0, %v2914_v17, 0.0  ;;  %v2610_v39 = vsub.f32 1.0, %v2609_v26  ;;  %v8420_v27 = vld [vmem:[#allocation94_spill] sm:$0xff] }
 0x406   : > { %v2346_v40 = vsel %vm468_vm0, %v7139_v25, 0.0  ;;  %v2920_v4 = vmul.f32 %v8364_v59, %v2604_v60  ;;  %v3070_v0 = vadd.f32 %v3069_v31, %v3068_v49  ;;  %v7158_v10 = vpop.eup %4057  ;;  %v2922_v57 = vmul.f32 %v8369_v18, %v8418_v1  ;;  %v8421_v60 = vld [vmem:[#allocation40_spill] sm:$0xff] }
 0x407   : > { %8417 = vst [vmem:[#allocation116_spill] sm:$0xff] %v7158_v10  ;;  %v2347_v20 = vadd.f32 %v2346_v40, %v2345_v45  ;;  %v3071_v41 = vsel %vm468_vm0, %v2916_v3, 0.0  ;;  %v2593_v9 = vmul.f32 %v8420_v27, %v8419_v28  ;;  %v2348_v17 = vsel %vm468_vm0, %v7150_v32, 0.0  ;;  %v8422_v40 = vld [vmem:[#allocation44_spill] sm:$0xff]  ;;  %v8423_v3 = vld [vmem:[#allocation49_spill] sm:$0xff]  ;;  %v8424_v27 = vld [vmem:[#allocation95_spill] sm:$0xff] }
 0x408   : > { %v3072_v26 = vadd.f32 %v3071_v41, %v3070_v0  ;;  %v3073_v62 = vsel %vm468_vm0, %v2918_v5, 0.0  ;;  %v2595_v49 = vmul.f32 %v8421_v60, %v8419_v28  ;;  %v7170_v31 = vpop.eup %4059  ;;  %v2597_v1 = vmul.f32 %v8422_v40, %v8419_v28  ;;  %v8425_v5 = vld [vmem:[#allocation96_spill] sm:$0xff]  ;;  %v8426_v60 = vld [vmem:[#allocation97_spill] sm:$0xff] }
 0x409   : > { %v2349_v45 = vadd.f32 %v2348_v17, %v2347_v20  ;;  %v2599_v25 = vmul.f32 %v8423_v3, %v8419_v28  ;;  %v2601_v23 = vmul.f32 %v8424_v27, %v8419_v28  ;;  %v2350_v41 = vsel %vm468_vm0, %v7158_v10, 0.0 }
 0x40a   : > { %v3074_v0 = vadd.f32 %v3073_v62, %v3072_v26  ;;  %v2603_v32 = vmul.f32 %v8425_v5, %v8419_v28  ;;  %v2605_v61 = vmul.f32 %v8426_v60, %v8419_v28  ;;  %v3075_v40 = vsel %vm468_vm0, %v2920_v4, 0.0  ;;  %v7196_v4 = vpop.f32.mrf.mxu3 }
 0x40b   : > { %v7184_v20 = vpop.eup %4061  ;;  %v2351_v17 = vadd.f32 %v2350_v41, %v2349_v45  ;;  %v2909_v3 = vmul.f32 %v6098_v35, %v2593_v9  ;;  %v2911_v18 = vmul.f32 %v6405_v19, %v2595_v49  ;;  %v2956_v27 = vmul.f32 %v8343_v21, %v2710_v51 }
 0x40c   : > { %v2958_v10 = vmul.f32 %v8345_v48, %v2726_v63  ;;  %v2352_v26 = vsel %vm468_vm0, %v7170_v31, 0.0  ;;  %v3076_v62 = vadd.f32 %v3075_v40, %v3074_v0  ;;  %v3077_v28 = vsel %vm468_vm0, %v2922_v57, 0.0 }
 0x40d   : > { %v2353_v5 = vadd.f32 %v2352_v26, %v2351_v17  ;;  %v2913_v60 = vmul.f32 %v6168_v2, %v2597_v1  ;;  %v3079_v45 = vsel %vm468_vm0, %v2909_v3, 0.0  ;;  %v8427_v9 = vmax.f32 %v7044_v8, %v7072_v43 }
 0x40e   : > { %v2354_v63 = vsel %vm468_vm0, %v7184_v20, 0.0  ;;  %v3078_v49 = vadd.f32 %v3077_v28, %v3076_v62  ;;  %v3080_v41 = vsel %vm468_vm0, %v2911_v18, 0.0  ;;  %v2611_v0 = vmul.f32 %v7111_v46, %v2610_v39  ;;  %v8429_v28 = vld [vmem:[#allocation30_spill] sm:$0xff] }
 0x40f   : > { %v1834_v51 = vmax.f32 %v8427_v9, %v7122_v50  ;;  %v7206_v57 = vadd.f32 %v2354_v63, %v2353_v5  ;;  %v2915_v1 = vmul.f32 %v8379_v44, %v2599_v25  ;;  %v3081_v17 = vadd.f32 %v3080_v41, %v3079_v45  ;;  %v8430_v63 = vld [vmem:[#allocation70_spill] sm:$0xff] }
 0x410   : > { %v2730_v40 = vmul.f32 %v6845_v58, %v7113_v29  ;;  %v2960_v3 = vmul.f32 %v8350_v13, %v2728_v54  ;;  %v3154_v8 = vsel %vm468_vm0, %v2956_v27, 0.0  ;;  %3679 = vmatmul.msk.f32.gmra.mxu2 %vm468_vm0, %v3078_v49  ;;  %v1835_v43 = vsel %vm468_vm0, %v7196_v4, -inf }
 0x411   : > { %v3155_v18 = vsel %vm468_vm0, %v2958_v10, 0.0  ;;  %vm2613_vm6 = vweird.f32 %v7060_v36  ;;  %v2917_v50 = vmul.f32 %v8382_v34, %v2601_v23  ;;  %v3082_v25 = vsel %vm468_vm0, %v2913_v60, 0.0  ;;  %v8428_v23 = vld [vmem:[#allocation110_spill] sm:$0xff] }
 0x412   : > { %vm2614_vm7 = vweird.f32 %v7111_v46  ;;  %v2619_v58 = vand.u32 2147483648, %v7060_v36  ;;  %v3083_v54 = vadd.f32 %v3082_v25, %v3081_v17  ;;  %v7222_v39 = vmax.f32 %v1834_v51, %v1835_v43 }
 0x413   : > { %v2612_v27 = vadd.f32 %v7111_v46, %v2611_v0  ;;  %4063 = vrcp.f32 %v7206_v57  ;;  %v2919_v26 = vmul.f32 %v8386_v33, %v2603_v32  ;;  %v3084_v10 = vsel %vm468_vm0, %v2915_v1, 0.0  ;;  %vm7245_vm8 = vmor %vm2613_vm6, %vm2614_vm7 }
 0x414   : > { %v3085_v62 = vadd.f32 %v3084_v10, %v3083_v54  ;;  %v1964_v5 = vsub.f32 %v8428_v23, %v7222_v39  ;;  %v1966_v60 = vsub.f32 %v8429_v28, %v7222_v39  ;;  %v1968_v45 = vsub.f32 %v6601_v47, %v7222_v39 }
 0x415   : > { %v2921_v9 = vmul.f32 %v8389_v12, %v2605_v61  ;;  %v3086_v51 = vsel %vm468_vm0, %v2917_v50, 0.0  ;;  %v1970_v49 = vsub.f32 %v8430_v63, %v7222_v39  ;;  %v1972_v32 = vsub.f32 %v6856_v38, %v7222_v39  ;;  %v8433_v61 = vld [vmem:[#allocation112_spill] sm:$0xff] }
 0x416   : > { %v2617_v41 = vand.u32 2147483647, %v7060_v36  ;;  %v3087_v0 = vadd.f32 %v3086_v51, %v3085_v62  ;;  %v2204_v1 = vmul.f32 1.442695, %v1964_v5  ;;  %v2208_v17 = vmul.f32 1.442695, %v1966_v60 }
 0x417   : > { %v2923_v43 = vmul.f32 %v6622_v55, %v8433_v61  ;;  %v3088_v50 = vsel %vm468_vm0, %v2919_v26, 0.0  ;;  %v2212_v25 = vmul.f32 1.442695, %v1968_v45  ;;  %v2216_v38 = vmul.f32 1.442695, %v1970_v49 }
 0x418   : > { %v2616_v54 = vsel %vm7245_vm8, %v7111_v46, %v2612_v27  ;;  %v2620_v10 = vor.u32 1.1754944e-38, %v2619_v58  ;;  %v3089_v62 = vadd.f32 %v3088_v50, %v3087_v0  ;;  %4065 = vpow2.f32 %v2204_v1  ;;  %v8435_v0 = vld [vmem:[#allocation80_spill] sm:$0xff] }
 0x419   : > { %v7255_v23 = vpop.eup %4063  ;;  %v3090_v36 = vsel %vm468_vm0, %v2921_v9, 0.0  ;;  %v1974_v5 = vsub.f32 %v6968_v11, %v7222_v39  ;;  %4067 = vpow2.f32 %v2208_v17  ;;  %v2220_v28 = vmul.f32 1.442695, %v1972_v32 }
 0x41a   : > { %v2962_v26 = vmul.f32 %v6340_v37, %v2730_v40  ;;  %vm2618_vm9 = vcmp.eq.f32.partialorder %v2617_v41, 8.507059e+37  ;;  %v3091_v60 = vadd.f32 %v3090_v36, %v3089_v62  ;;  %4069 = vpow2.f32 %v2212_v25  ;;  %v7302_v25 = vpop.f32.mrf.mxu3 }
 0x41b   : > { %v1847_v46 = vmax.f32 %v7055_v22, %v7109_v7  ;;  %v7263_v58 = vsel %vm2618_vm9, %v2620_v10, %v2616_v54  ;;  %v3092_v27 = vsel %vm468_vm0, %v2923_v43, 0.0  ;;  %4071 = vpow2.f32 %v2216_v38 }
 0x41c   : > { %v3172_v45 = vsel %vm468_vm0, %v7103_v16, 0.0  ;;  %v3156_v9 = vadd.f32 %v3155_v18, %v3154_v8  ;;  %v2624_v11 = vmul.f32 %v7255_v23, %v7206_v57  ;;  %v3093_v51 = vadd.f32 %v3092_v27, %v3091_v60 }
 0x41d   : > { %v1848_v40 = vsel %vm468_vm0, %v7148_v15, -inf  ;;  %v1976_v63 = vsub.f32 %v7090_v56, %v7222_v39  ;;  %4073 = vpow2.f32 %v2220_v28  ;;  %v2224_v22 = vmul.f32 1.442695, %v1974_v5 }
 0x41e   : > { %v7274_v7 = vpop.eup %4065  ;;  %v7277_v49 = vadd.f32 %v3172_v45, %v7118_v24  ;;  %v3157_v16 = vsel %vm468_vm0, %v2960_v3, 0.0  ;;  %v7281_v8 = vsel %vm468_vm0, %v2962_v26, 0.0  ;;  %v2648_v18 = vmul.f32 %v7017_v42, %v7263_v58  ;;  %3680 = vmatmul.msk.f32.gmra.mxu2 %vm468_vm0, %v3093_v51  ;;  %v8434_v24 = vld [vmem:[#allocation63_spill] sm:$0xff]  ;;  %v8436_v3 = vld [vmem:[#allocation82_spill] sm:$0xff] }
 0x41f   : > { %v7286_v32 = vpop.eup %4067  ;;  %v1978_v56 = vsub.f32 %v7196_v4, %v7222_v39  ;;  %v2446_v41 = vsel %vm468_vm0, %v7274_v7, 0.0  ;;  %v2666_v1 = vmul.f32 %v8435_v0, %v8434_v24  ;;  %v2682_v17 = vmul.f32 %v8436_v3, %v8434_v24 }
 0x420   : > { %v7296_v47 = vpop.eup %4069  ;;  %v7298_v61 = vadd.f32 %v3157_v16, %v3156_v9  ;;  %v2625_v42 = vsub.f32 1.0, %v2624_v11  ;;  %v1849_v43 = vmax.f32 %v1847_v46, %v1848_v40  ;;  %v2447_v50 = vsel %vm468_vm0, %v7286_v32, 0.0  ;;  %v8439_v11 = vld [vmem:[#allocation113_spill] sm:$0xff]  ;;  %v8440_v40 = vld [vmem:[#allocation119_spill] sm:$0xff]  ;;  %v8441_v16 = vld [vmem:[#allocation62_spill] sm:$0xff] }
 0x421   : > { %v7304_v4 = vpop.eup %4071  ;;  %4075 = vpow2.f32 %v2224_v22  ;;  %v2228_v39 = vmul.f32 1.442695, %v1976_v63  ;;  %v2448_v38 = vadd.f32 %v2447_v50, %v2446_v41  ;;  %v1850_v54 = vsel %vm468_vm0, %v7302_v25, -inf }
 0x422   : > { %8437 = vst [vmem:[#allocation54_spill] sm:$0xff] %v7304_v4  ;;  %v7309_v10 = vmul.f32 %v8364_v59, %v2648_v18  ;;  %v2632_v62 = vand.u32 2147483647, %v7206_v57  ;;  %v2449_v36 = vsel %vm468_vm0, %v7296_v47, 0.0  ;;  %v1851_v5 = vmax.f32 %v1849_v43, %v1850_v54 }
 0x423   : > { %v7314_v28 = vpop.eup %4073  ;;  %v2232_v26 = vmul.f32 1.442695, %v1978_v56  ;;  %v2450_v60 = vadd.f32 %v2449_v36, %v2448_v38  ;;  %v2940_v46 = vmul.f32 %v8343_v21, %v2666_v1  ;;  %v2942_v27 = vmul.f32 %v8345_v48, %v2682_v17  ;;  %v8442_v56 = vld [vmem:[#allocation74_spill] sm:$0xff]  ;;  %v8443_v17 = vld [vmem:[#allocation83_spill] sm:$0xff] }
 0x424   : > { %8438 = vst [vmem:[#allocation118_spill] sm:$0xff] %v7314_v28  ;;  %v2626_v45 = vmul.f32 %v7255_v23, %v2625_v42  ;;  %vm2628_vm10 = vweird.f32 %v7206_v57  ;;  %v2451_v9 = vsel %vm468_vm0, %v7304_v4, 0.0  ;;  %v1965_v51 = vsub.f32 %v8439_v11, %v1851_v5 }
 0x425   : > { %v1967_v63 = vsub.f32 %v8440_v40, %v1851_v5  ;;  %4077 = vpow2.f32 %v2228_v39  ;;  %v2452_v22 = vadd.f32 %v2451_v9, %v2450_v60  ;;  %v1969_v18 = vsub.f32 %v8441_v16, %v1851_v5 }
 0x426   : > { %v1971_v41 = vsub.f32 %v8442_v56, %v1851_v5  ;;  %v2634_v0 = vand.u32 2147483648, %v7206_v57  ;;  %v2453_v1 = vsel %vm468_vm0, %v7314_v28, 0.0  ;;  %v1973_v3 = vsub.f32 %v6922_v6, %v1851_v5 }
 0x427   : > { %v2684_v42 = vmul.f32 %v8443_v17, %v8434_v24  ;;  %v7332_v43 = vpop.eup %4075  ;;  %vm2629_vm11 = vweird.f32 %v7255_v23  ;;  %v2454_v50 = vadd.f32 %v2453_v1, %v2452_v22  ;;  %v2206_v39 = vmul.f32 1.442695, %v1965_v51 }
 0x428   : > { %8444 = vst [vmem:[#allocation71_spill] sm:$0xff] %v7332_v43  ;;  %v2210_v38 = vmul.f32 1.442695, %v1967_v63  ;;  %4079 = vpow2.f32 %v2232_v26  ;;  %v1975_v54 = vsub.f32 %v7027_v53, %v1851_v5  ;;  %v2214_v36 = vmul.f32 1.442695, %v1969_v18  ;;  %v8446_v53 = vld [vmem:[#allocation84_spill] sm:$0xff]  ;;  %vm7354_vm12 = vmor %vm2628_vm10, %vm2629_vm11 }
 0x429   : > { %v2218_v60 = vmul.f32 1.442695, %v1971_v41  ;;  %v2627_v9 = vadd.f32 %v7255_v23, %v2626_v45  ;;  %4081 = vpow2.f32 %v2206_v39  ;;  %v3124_v6 = vsel %vm468_vm0, %v2940_v46, 0.0  ;;  %v8447_v45 = vld [vmem:[#allocation85_spill] sm:$0xff] }
 0x42a   : > { %v3125_v11 = vsel %vm468_vm0, %v2942_v27, 0.0  ;;  %v2455_v40 = vsel %vm468_vm0, %v7332_v43, 0.0  ;;  %v1977_v16 = vsub.f32 %v7148_v15, %v1851_v5  ;;  %4083 = vpow2.f32 %v2210_v38 }
 0x42b   : > { %v2222_v51 = vmul.f32 1.442695, %v1973_v3  ;;  %v7342_v63 = vpop.eup %4077  ;;  %v2456_v26 = vadd.f32 %v2455_v40, %v2454_v50  ;;  %4085 = vpow2.f32 %v2214_v36  ;;  %v2686_v22 = vmul.f32 %v8446_v53, %v8434_v24  ;;  %v8452_v3 = vld [vmem:[#allocation86_spill] sm:$0xff] }
 0x42c   : > { %8445 = vst [vmem:[#allocation32_spill] sm:$0xff] %v7342_v63  ;;  %v2688_v18 = vmul.f32 %v8447_v45, %v8434_v24  ;;  %v1979_v46 = vsub.f32 %v7302_v25, %v1851_v5  ;;  %4087 = vpow2.f32 %v2218_v60  ;;  %v2226_v27 = vmul.f32 1.442695, %v1975_v54 }
 0x42d   : > { %v2944_v56 = vmul.f32 %v8350_v13, %v2684_v42  ;;  %vm7358_vm13 = vcmp.eq.f32.partialorder %v2632_v62, 8.507059e+37  ;;  %v2635_v1 = vor.u32 1.1754944e-38, %v2634_v0  ;;  %v2690_v25 = vmul.f32 %v8452_v3, %v8434_v24  ;;  %v8454_v0 = vld [vmem:[#allocation87_spill] sm:$0xff] }
 0x42e   : > { %v3126_v5 = vadd.f32 %v3125_v11, %v3124_v6  ;;  %v7364_v17 = vpop.eup %4079  ;;  %v2631_v42 = vsel %vm7354_vm12, %v7255_v23, %v2627_v9  ;;  %v2457_v57 = vsel %vm468_vm0, %v7342_v63, 0.0  ;;  %4089 = vpow2.f32 %v2222_v51 }
 0x42f   : > { %8453 = vst [vmem:[#allocation76_spill] sm:$0xff] %v7364_v17  ;;  %v2230_v50 = vmul.f32 1.442695, %v1977_v16  ;;  %v7371_v62 = vpop.eup %4081  ;;  %v2458_v39 = vadd.f32 %v2457_v57, %v2456_v26  ;;  %v2692_v38 = vmul.f32 %v8454_v0, %v8434_v24  ;;  %v2946_v54 = vmul.f32 %v6340_v37, %v2686_v22  ;;  %v8457_v22 = vld [vmem:[#allocation104_spill] sm:$0xff] }
 0x430   : > { %v2948_v36 = vmul.f32 %v8361_v14, %v2688_v18  ;;  %v7377_v60 = vpop.eup %4083  ;;  %4091 = vpow2.f32 %v2226_v27  ;;  %v2234_v6 = vmul.f32 1.442695, %v1979_v46  ;;  %v2461_v23 = vsel %vm468_vm0, %v7371_v62, 0.0  ;;  %v8458_v18 = vld [vmem:[#allocation60_spill] sm:$0xff] }
 0x431   : > { %v3127_v9 = vsel %vm468_vm0, %v2944_v56, 0.0  ;;  %v7382_v11 = vpop.eup %4085  ;;  %v7386_v40 = vsel %vm7358_vm13, %v2635_v1, %v2631_v42  ;;  %v2459_v24 = vsel %vm468_vm0, %v7364_v17, 0.0  ;;  %v2462_v16 = vsel %vm468_vm0, %v7377_v60, 0.0 }
 0x432   : > { %8455 = vst [vmem:[#allocation24_spill] sm:$0xff] %v7382_v11  ;;  %v3128_v51 = vadd.f32 %v3127_v9, %v3126_v5  ;;  %v7392_v26 = vpop.eup %4087  ;;  %4093 = vpow2.f32 %v2230_v50  ;;  %v2463_v53 = vadd.f32 %v2462_v16, %v2461_v23  ;;  %v2622_v45 = vmul.f32 %v8457_v22, %v7263_v58  ;;  %v8460_v50 = vld [vmem:[#allocation16_spill] sm:$0xff] }
 0x433   : > { %8456 = vst [vmem:[#allocation45_spill] sm:$0xff] %v7392_v26  ;;  %v2638_v46 = vmul.f32 %v8458_v18, %v7263_v58  ;;  %v7398_v27 = vadd.f32 %v2459_v24, %v2458_v39  ;;  %v2464_v56 = vsel %vm468_vm0, %v7382_v11, 0.0  ;;  %v2640_v15 = vmul.f32 %v6974_v30, %v7263_v58  ;;  %v7430_v22 = vld [vmem:[%s7861_s5] ss:$0 sm:$0xff] }
 0x434   : > { %v2950_v41 = vmul.f32 %v8362_v52, %v2690_v25  ;;  %v7405_v1 = vpop.eup %4089  ;;  %v2649_v3 = vmul.f32 %v7170_v31, %v7386_v40  ;;  %4095 = vpow2.f32 %v2234_v6  ;;  %v2465_v5 = vadd.f32 %v2464_v56, %v2463_v53  ;;  %v8462_v31 = vld [vmem:[#allocation67_spill] sm:$0xff] }
 0x435   : > { %8459 = vst [vmem:[#allocation111_spill] sm:$0xff] %v7405_v1  ;;  %v3129_v42 = vsel %vm468_vm0, %v2946_v54, 0.0  ;;  %v2466_v57 = vsel %vm468_vm0, %v7392_v26, 0.0  ;;  %v2642_v39 = vmul.f32 %v8460_v50, %v7263_v58  ;;  %v2924_v0 = vmul.f32 %v8343_v21, %v2622_v45  ;;  %v8463_v6 = vld [vmem:[#allocation35_spill] sm:$0xff] }
 0x436   : > { %v2926_v30 = vmul.f32 %v8345_v48, %v2638_v46  ;;  %v7416_v25 = vpop.eup %4091  ;;  %v2467_v23 = vadd.f32 %v2466_v57, %v2465_v5  ;;  %v2952_v9 = vmul.f32 %v8364_v59, %v2692_v38  ;;  %v7421_v24 = vmul.f32 %v8463_v6, %v8462_v31  ;;  %v8465_v46 = vld [vmem:[#allocation115_spill] sm:$0xff]  ;;  %v3317_v5 = vpop.f32.mrf.mxu2 }
 0x437   : > { %8461 = vst [vmem:[#allocation75_spill] sm:$0xff] %v7416_v25  ;;  %v3130_v54 = vadd.f32 %v3129_v42, %v3128_v51  ;;  %4097 = vrcp.f32 %v7398_v27  ;;  %v2468_v16 = vsel %vm468_vm0, %v7405_v1, 0.0  ;;  %v2928_v53 = vmul.f32 %v8350_v13, %v2640_v15 }
 0x438   : > { %v3131_v45 = vsel %vm468_vm0, %v2948_v36, 0.0  ;;  %v7433_v38 = vpop.eup %4093  ;;  %v2469_v18 = vadd.f32 %v2468_v16, %v2467_v23  ;;  %v2644_v51 = vmul.f32 %v8465_v46, %v7263_v58  ;;  %v3094_v56 = vsel %vm468_vm0, %v2924_v0, 0.0  ;;  %v8467_v0 = vld [vmem:[#allocation17_spill] sm:$0xff] }
 0x439   : > { %8464 = vst [vmem:[#allocation52_spill] sm:$0xff] %v7433_v38  ;;  %v7439_v42 = vsel %vm468_vm0, %v2950_v41, 0.0  ;;  %v7442_v15 = vmul.f32 %v8389_v12, %v2649_v3  ;;  %v2470_v57 = vsel %vm468_vm0, %v7416_v25, 0.0  ;;  %v2930_v36 = vmul.f32 %v6340_v37, %v2642_v39  ;;  %v8468_v39 = vld [vmem:[#allocation21_spill] sm:$0xff] }
 0x43a   : > { %v3095_v50 = vsel %vm468_vm0, %v2926_v30, 0.0  ;;  %v7448_v23 = vpop.eup %4095  ;;  %v2471_v31 = vadd.f32 %v2470_v57, %v2469_v18  ;;  %v2646_v16 = vmul.f32 %v8467_v0, %v7263_v58  ;;  %v3132_v41 = vadd.f32 %v3131_v45, %v3130_v54  ;;  %v8469_v18 = vld [vmem:[#allocation98_spill] sm:$0xff] }
 0x43b   : > { %8466 = vst [vmem:[#allocation120_spill] sm:$0xff] %v7448_v23  ;;  %v3096_v46 = vadd.f32 %v3095_v50, %v3094_v56  ;;  %v2472_v3 = vsel %vm468_vm0, %v7433_v38, 0.0  ;;  %v3097_v17 = vsel %vm468_vm0, %v2928_v53, 0.0  ;;  %v3318_v25 = vadd.f32 %v7430_v22, %v3317_v5  ;;  %v8470_v53 = vld [vmem:[#allocation25_spill] sm:$0xff] }
 0x43c   : > { %v2637_v1 = vmul.f32 %v8468_v39, %v7386_v40  ;;  %v2473_v30 = vadd.f32 %v2472_v3, %v2471_v31  ;;  %v2932_v63 = vmul.f32 %v8361_v14, %v2644_v51  ;;  %v2639_v57 = vmul.f32 %v8469_v18, %v7386_v40  ;;  %v8471_v5 = vld [vmem:[#allocation117_spill] sm:$0xff]  ;;  %v8473_v18 = vld [vmem:[#allocation122_spill] sm:$0xff] }
 0x43d   : > { %v3098_v26 = vadd.f32 %v3097_v17, %v3096_v46  ;;  %v7461_v0 = vpop.eup %4097  ;;  %v2474_v54 = vsel %vm468_vm0, %v7448_v23, 0.0  ;;  %v3099_v45 = vsel %vm468_vm0, %v2930_v36, 0.0  ;;  %3365 = vst.msk [vmem:[%s7468_s27] sm:$0xff] %vm468_vm0, %v3318_v25  ;;  %v2641_v51 = vmul.f32 %v8470_v53, %v7386_v40  ;;  %v8472_v46 = vld [vmem:[#allocation29_spill] sm:$0xff]  ;;  %v8474_v53 = vld [vmem:[#allocation99_spill] sm:$0xff] }
 0x43e   : > { %v7475_v17 = vsel %vm468_vm0, %v2952_v9, 0.0  ;;  %v7477_v56 = vadd.f32 %v2474_v54, %v2473_v30  ;;  %v2650_v50 = vmul.f32 %v8471_v5, %v7263_v58  ;;  %v2934_v31 = vmul.f32 %v8362_v52, %v2646_v16  ;;  %v8475_v58 = vld [vmem:[#allocation41_spill] sm:$0xff]  ;;  %v3320_v38 = vpop.f32.mrf.mxu2 }
 0x43f   : > { %v3100_v36 = vadd.f32 %v3099_v45, %v3098_v26  ;;  %v2643_v3 = vmul.f32 %v8472_v46, %v7386_v40  ;;  %v2925_v39 = vmul.f32 %v6098_v35, %v2637_v1  ;;  %v2927_v25 = vmul.f32 %v6405_v19, %v2639_v57  ;;  %v8476_v26 = vld [vmem:[#allocation100_spill] sm:$0xff]  ;;  %v8477_v1 = vld [vmem:[#allocation34_spill] sm:$0xff] }
 0x440   : > { %v2681_v23 = vmul.f32 %v8474_v53, %v8473_v18  ;;  %v2785_v9 = vmul.f32 %v7461_v0, %v7398_v27  ;;  %v3101_v30 = vsel %vm468_vm0, %v2932_v63, 0.0  ;;  %v2683_v54 = vmul.f32 %v8475_v58, %v8473_v18  ;;  %v8478_v58 = vld [vmem:[#allocation50_spill] sm:$0xff] }
 0x441   : > { %v2685_v16 = vmul.f32 %v8476_v26, %v8473_v18  ;;  %4099 = vrcp.f32 %v7477_v56  ;;  %v3102_v45 = vadd.f32 %v3101_v30, %v3100_v36  ;;  %v2645_v57 = vmul.f32 %v8477_v1, %v7386_v40  ;;  %v8479_v26 = vld [vmem:[#allocation116_spill] sm:$0xff] }
 0x442   : > { %v2929_v5 = vmul.f32 %v6168_v2, %v2641_v51  ;;  %v2938_v46 = vmul.f32 %v8463_v6, %v2650_v50  ;;  %v3103_v53 = vsel %vm468_vm0, %v2934_v31, 0.0  ;;  %v3109_v63 = vsel %vm468_vm0, %v2925_v39, 0.0 }
 0x443   : > { %v2687_v43 = vmul.f32 %v8478_v58, %v8473_v18  ;;  %v3104_v11 = vadd.f32 %v3103_v53, %v3102_v45  ;;  %v2647_v28 = vmul.f32 %v8479_v26, %v7386_v40  ;;  %v2931_v36 = vmul.f32 %v8379_v44, %v2643_v3 }
 0x444   : > { %v3110_v30 = vsel %vm468_vm0, %v2927_v25, 0.0  ;;  %v2786_v1 = vsub.f32 1.0, %v2785_v9  ;;  %v3105_v51 = vsel %vm468_vm0, %v7309_v10, 0.0  ;;  %v2941_v31 = vmul.f32 %v6098_v35, %v2681_v23 }
 0x445   : > { %v3111_v50 = vadd.f32 %v3110_v30, %v3109_v63  ;;  %v3106_v39 = vadd.f32 %v3105_v51, %v3104_v11  ;;  %v2933_v4 = vmul.f32 %v8382_v34, %v2645_v57  ;;  %v3112_v45 = vsel %vm468_vm0, %v2929_v5, 0.0 }
 0x446   : > { %v3321_v53 = vadd.f32 %v7430_v22, %v3320_v38  ;;  %v3107_v58 = vsel %vm468_vm0, %v2938_v46, 0.0  ;;  %v2651_v3 = vmul.f32 %v7184_v20, %v7386_v40  ;;  %v2943_v9 = vmul.f32 %v6405_v19, %v2683_v54  ;;  %v8480_v20 = vld [vmem:[#allocation103_spill] sm:$0xff] }
 0x447   : > { %v3113_v25 = vadd.f32 %v3112_v45, %v3111_v50  ;;  %v7518_v26 = vpop.eup %4099  ;;  %v3108_v10 = vadd.f32 %v3107_v58, %v3106_v39  ;;  %v2935_v23 = vmul.f32 %v8386_v33, %v2647_v28  ;;  %v3114_v11 = vsel %vm468_vm0, %v2931_v36, 0.0  ;;  %v8481_v28 = vld [vmem:[#allocation106_spill] sm:$0xff] }
 0x448   : > { %3366 = vst.msk [vmem:[%s7468_s27 + $0x8] sm:$0xff] %vm468_vm0, %v3321_v53  ;;  %v2945_v57 = vmul.f32 %v6168_v2, %v2685_v16  ;;  %v2787_v38 = vmul.f32 %v7461_v0, %v2786_v1  ;;  %v3134_v46 = vadd.f32 %v7439_v42, %v3132_v41  ;;  %v2689_v40 = vmul.f32 %v8480_v20, %v8473_v18 }
 0x449   : > { %v3115_v5 = vadd.f32 %v3114_v11, %v3113_v25  ;;  %3681 = vmatmul.msk.f32.gmra.mxu2 %vm468_vm0, %v3108_v10  ;;  %v3116_v54 = vsel %vm468_vm0, %v2933_v4, 0.0  ;;  %v2691_v63 = vmul.f32 %v8481_v28, %v8473_v18  ;;  %v3139_v36 = vsel %vm468_vm0, %v2941_v31, 0.0  ;;  %v8482_v4 = vld [vmem:[#allocation109_spill] sm:$0xff] }
 0x44a   : > { %v3140_v30 = vsel %vm468_vm0, %v2943_v9, 0.0  ;;  %v2800_v16 = vmul.f32 %v7518_v26, %v7477_v56  ;;  %v2947_v42 = vmul.f32 %v8379_v44, %v2687_v43  ;;  %v2939_v51 = vmul.f32 %v6622_v55, %v2651_v3 }
 0x44b   : > { %v3117_v1 = vadd.f32 %v3116_v54, %v3115_v5  ;;  %v3141_v41 = vadd.f32 %v3140_v30, %v3139_v36  ;;  %v3118_v50 = vsel %vm468_vm0, %v2935_v23, 0.0  ;;  %v2693_v39 = vmul.f32 %v8482_v4, %v8473_v18  ;;  %v8488_v4 = vld [vmem:[#allocation88_spill] sm:$0xff] }
 0x44c   : > { %v3142_v45 = vsel %vm468_vm0, %v2945_v57, 0.0  ;;  %v2788_v31 = vadd.f32 %v7461_v0, %v2787_v38  ;;  %vm2790_vm14 = vweird.f32 %v7461_v0  ;;  %vm2789_vm15 = vweird.f32 %v7398_v27 }
 0x44d   : > { %v3119_v53 = vadd.f32 %v3118_v50, %v3117_v1  ;;  %v3143_v58 = vadd.f32 %v3142_v45, %v3141_v41  ;;  %v2793_v43 = vand.u32 2147483647, %v7398_v27  ;;  %v2795_v25 = vand.u32 2147483648, %v7398_v27  ;;  %vm7552_vm1 = vmor %vm2789_vm15, %vm2790_vm14  ;;  %v8485_v27 = vld [vmem:[#allocation27_spill] sm:$0xff]  ;;  %v8487_v50 = vld [vmem:[#allocation101_spill] sm:$0xff] }
 0x44e   : > { %v3120_v3 = vsel %vm468_vm0, %v7442_v15, 0.0  ;;  %v2801_v9 = vsub.f32 1.0, %v2800_v16  ;;  %v2949_v18 = vmul.f32 %v8382_v34, %v2689_v40  ;;  %v3144_v23 = vsel %vm468_vm0, %v2947_v42, 0.0  ;;  %v8489_v45 = vld [vmem:[#allocation66_spill] sm:$0xff] }
 0x44f   : > { %v3121_v10 = vadd.f32 %v3120_v3, %v3119_v53  ;;  %v3122_v57 = vsel %vm468_vm0, %v2939_v51, 0.0  ;;  %v3136_v38 = vadd.f32 %v7475_v17, %v3134_v46  ;;  %v3145_v5 = vadd.f32 %v3144_v23, %v3143_v58 }
 0x450   : > { %v2732_v20 = vmul.f32 %v8485_v27, %v7113_v29  ;;  %v3160_v15 = vadd.f32 %v7281_v8, %v7298_v61  ;;  %v2792_v40 = vsel %vm7552_vm1, %v7461_v0, %v2788_v31  ;;  %v2810_v54 = vand.u32 2147483648, %v7477_v56  ;;  %v8486_v61 = vld [vmem:[#allocation51_spill] sm:$0xff]  ;;  %v8494_v27 = vld [vmem:[#allocation90_spill] sm:$0xff] }
 0x451   : > { %v3123_v28 = vadd.f32 %v3122_v57, %v3121_v10  ;;  %v2796_v36 = vor.u32 1.1754944e-38, %v2795_v25  ;;  %v3137_v30 = vsel %vm468_vm0, %v7421_v24, 0.0  ;;  %v2951_v17 = vmul.f32 %v8386_v33, %v2691_v63  ;;  %v8490_v25 = vld [vmem:[#allocation31_spill] sm:$0xff]  ;;  %v8491_v10 = vld [vmem:[#allocation20_spill] sm:$0xff] }
 0x452   : > { %v2953_v46 = vmul.f32 %v8389_v12, %v2693_v39  ;;  %vm2794_vm2 = vcmp.eq.f32.partialorder %v2793_v43, 8.507059e+37  ;;  %v2802_v16 = vmul.f32 %v7518_v26, %v2801_v9  ;;  %v3146_v8 = vsel %vm468_vm0, %v2949_v18, 0.0  ;;  %v8492_v18 = vld [vmem:[#allocation68_spill] sm:$0xff] }
 0x453   : > { %3682 = vmatmul.msk.f32.gmra.mxu2 %vm468_vm0, %v3123_v28  ;;  %v2734_v0 = vmul.f32 %v8486_v61, %v7113_v29  ;;  %v7575_v1 = vsel %vm2794_vm2, %v2796_v36, %v2792_v40  ;;  %v3138_v42 = vadd.f32 %v3137_v30, %v3136_v38  ;;  %v3147_v41 = vadd.f32 %v3146_v8, %v3145_v5  ;;  %v8493_v38 = vld [vmem:[#allocation89_spill] sm:$0xff]  ;;  %v8496_v36 = vld [vmem:[#allocation43_spill] sm:$0xff] }
 0x454   : > { %v2964_v24 = vmul.f32 %v8361_v14, %v2732_v20  ;;  %vm2804_vm3 = vweird.f32 %v7477_v56  ;;  %v2808_v63 = vand.u32 2147483647, %v7477_v56  ;;  %v7580_v51 = vor.u32 1.1754944e-38, %v2810_v54  ;;  %v8495_v54 = vld [vmem:[#allocation39_spill] sm:$0xff] }
 0x455   : > { %v2754_v39 = vmul.f32 %v8488_v4, %v8487_v50  ;;  %vm2805_vm4 = vweird.f32 %v7518_v26  ;;  %v2955_v31 = vmul.f32 %v6622_v55, %v8489_v45  ;;  %v3148_v53 = vsel %vm468_vm0, %v2951_v17, 0.0  ;;  %v8497_v17 = vld [vmem:[#allocation91_spill] sm:$0xff]  ;;  %v8500_v45 = vld [vmem:[#allocation72_spill] sm:$0xff] }
 0x456   : > { %v3150_v58 = vsel %vm468_vm0, %v2953_v46, 0.0  ;;  %v7590_v43 = vadd.f32 %v7518_v26, %v2802_v16  ;;  %v2736_v3 = vmul.f32 %v8490_v25, %v7113_v29  ;;  %v2966_v9 = vmul.f32 %v8362_v52, %v2734_v0  ;;  %v8498_v16 = vld [vmem:[#allocation93_spill] sm:$0xff]  ;;  %vm7624_vm5 = vmor %vm2804_vm3, %vm2805_vm4 }
 0x457   : > { %v2731_v23 = vmul.f32 %v8492_v18, %v8491_v10  ;;  %v3149_v11 = vadd.f32 %v3148_v53, %v3147_v41  ;;  %v3161_v57 = vsel %vm468_vm0, %v2964_v24, 0.0  ;;  %v2770_v5 = vmul.f32 %v8493_v38, %v8487_v50  ;;  %v8499_v24 = vld [vmem:[#allocation37_spill] sm:$0xff] }
 0x458   : > { %v2772_v20 = vmul.f32 %v8494_v27, %v8487_v50  ;;  %v3162_v40 = vadd.f32 %v3161_v57, %v3160_v15  ;;  %v2774_v28 = vmul.f32 %v8495_v54, %v8487_v50  ;;  %v2776_v30 = vmul.f32 %v8496_v36, %v8487_v50  ;;  %v8503_v27 = vld [vmem:[#allocation77_spill] sm:$0xff]  ;;  %v8504_v36 = vld [vmem:[#allocation64_spill] sm:$0xff] }
 0x459   : > { %v2778_v46 = vmul.f32 %v8497_v17, %v8487_v50  ;;  %v2780_v8 = vmul.f32 %v8498_v16, %v8487_v50  ;;  %v2972_v61 = vmul.f32 %v8343_v21, %v2754_v39  ;;  %v2974_v0 = vmul.f32 %v8345_v48, %v2770_v5  ;;  %v8505_v17 = vld [vmem:[#allocation107_spill] sm:$0xff] }
 0x45a   : > { %v2976_v41 = vmul.f32 %v8350_v13, %v2772_v20  ;;  %v3152_v15 = vsel %vm468_vm0, %v2955_v31, 0.0  ;;  %v2738_v4 = vmul.f32 %v8499_v24, %v7113_v29  ;;  %v2733_v53 = vmul.f32 %v8500_v45, %v8491_v10 }
 0x45b   : > { %3683 = vmatmul.msk.f32.gmra.mxu2 %vm468_vm0, %v3138_v42  ;;  %v2963_v25 = vmul.f32 %v8379_v44, %v2731_v23  ;;  %v3151_v39 = vadd.f32 %v3150_v58, %v3149_v11  ;;  %v2978_v42 = vmul.f32 %v6340_v37, %v2774_v28  ;;  %v3184_v31 = vsel %vm468_vm0, %v2972_v61, 0.0 }
 0x45c   : > { %v3185_v29 = vsel %vm468_vm0, %v2974_v0, 0.0  ;;  %v2807_v18 = vsel %vm7624_vm5, %v7518_v26, %v7590_v43  ;;  %v2968_v23 = vmul.f32 %v8364_v59, %v2736_v3  ;;  %v3163_v57 = vsel %vm468_vm0, %v2966_v9, 0.0  ;;  %v8506_v26 = vld [vmem:[#allocation108_spill] sm:$0xff] }
 0x45d   : > { %v3186_v38 = vadd.f32 %v3185_v29, %v3184_v31  ;;  %v3164_v5 = vadd.f32 %v3163_v57, %v3162_v40  ;;  %v2735_v58 = vmul.f32 %v8503_v27, %v8491_v10  ;;  %v2980_v11 = vmul.f32 %v8361_v14, %v2776_v30  ;;  %v8508_v29 = vld [vmem:[#allocation102_spill] sm:$0xff]  ;;  %v8509_v57 = vld [vmem:[#allocation59_spill] sm:$0xff] }
 0x45e   : > { %v3187_v20 = vsel %vm468_vm0, %v2976_v41, 0.0  ;;  %v2965_v54 = vmul.f32 %v8382_v34, %v2733_v53  ;;  %v2769_v16 = vmul.f32 %v8505_v17, %v8504_v36  ;;  %v2771_v43 = vmul.f32 %v8506_v26, %v8504_v36  ;;  %v8510_v26 = vld [vmem:[#allocation23_spill] sm:$0xff] }
 0x45f   : > { %v3188_v28 = vadd.f32 %v3187_v20, %v3186_v38  ;;  %v3153_v3 = vadd.f32 %v3152_v15, %v3151_v39  ;;  %v3174_v9 = vsel %vm468_vm0, %v2963_v25, 0.0  ;;  %v2982_v40 = vmul.f32 %v8362_v52, %v2778_v46  ;;  %v8507_v25 = vld [vmem:[#allocation19_spill] sm:$0xff] }
 0x460   : > { %v3189_v61 = vsel %vm468_vm0, %v2978_v42, 0.0  ;;  %v3175_v30 = vadd.f32 %v3174_v9, %v7277_v49  ;;  %v2984_v0 = vmul.f32 %v8364_v59, %v2780_v8  ;;  %v2973_v24 = vmul.f32 %v6098_v35, %v2769_v16  ;;  %v3323_v42 = vpop.f32.mrf.mxu2 }
 0x461   : > { %v3190_v41 = vadd.f32 %v3189_v61, %v3188_v28  ;;  %v2970_v45 = vmul.f32 %v8463_v6, %v2738_v4  ;;  %v3165_v53 = vsel %vm468_vm0, %v2968_v23, 0.0  ;;  %v3191_v50 = vsel %vm468_vm0, %v2980_v11, 0.0 }
 0x462   : > { %v2975_v15 = vmul.f32 %v6405_v19, %v2771_v43  ;;  %v3166_v46 = vadd.f32 %v3165_v53, %v3164_v5  ;;  %v2737_v39 = vmul.f32 %v8507_v25, %v8491_v10  ;;  %v2967_v49 = vmul.f32 %v8386_v33, %v2735_v58  ;;  %v8512_v25 = vld [vmem:[#allocation73_spill] sm:$0xff] }
 0x463   : > { %3684 = vmatmul.msk.f32.gmra.mxu2 %vm468_vm0, %v3153_v3  ;;  %v3192_v8 = vadd.f32 %v3191_v50, %v3190_v41  ;;  %v3176_v31 = vsel %vm468_vm0, %v2965_v54, 0.0  ;;  %v2986_v4 = vmul.f32 %v8463_v6, %v8508_v29  ;;  %v3193_v23 = vsel %vm468_vm0, %v2982_v40, 0.0 }
 0x464   : > { %v2773_v38 = vmul.f32 %v8509_v57, %v8504_v36  ;;  %v3177_v27 = vadd.f32 %v3176_v31, %v3175_v30  ;;  %v3195_v11 = vsel %vm468_vm0, %v2984_v0, 0.0  ;;  %v3199_v20 = vsel %vm468_vm0, %v2973_v24, 0.0  ;;  %v8511_v30 = vld [vmem:[#allocation65_spill] sm:$0xff]  ;;  %v8513_v31 = vld [vmem:[#allocation114_spill] sm:$0xff] }
 0x465   : > { %v3194_v5 = vadd.f32 %v3193_v23, %v3192_v8  ;;  %v3200_v58 = vsel %vm468_vm0, %v2975_v15, 0.0  ;;  %v3324_v28 = vadd.f32 %v7430_v22, %v3323_v42  ;;  %v2798_v54 = vmul.f32 %v7274_v7, %v7575_v1  ;;  %v8514_v57 = vld [vmem:[#allocation54_spill] sm:$0xff] }
 0x466   : > { %v2814_v17 = vmul.f32 %v7286_v32, %v7575_v1  ;;  %v3167_v16 = vsel %vm468_vm0, %v2970_v45, 0.0  ;;  %v2739_v43 = vmul.f32 %v8510_v26, %v8491_v10  ;;  %v2969_v3 = vmul.f32 %v8389_v12, %v2737_v39 }
 0x467   : > { %v3196_v9 = vadd.f32 %v3195_v11, %v3194_v5  ;;  %v3178_v40 = vsel %vm468_vm0, %v2967_v49, 0.0  ;;  %v3197_v61 = vsel %vm468_vm0, %v2986_v4, 0.0  ;;  %v2775_v0 = vmul.f32 %v8511_v30, %v8504_v36  ;;  %3367 = vst.msk [vmem:[%s7468_s27 + $0x10] sm:$0xff] %vm468_vm0, %v3324_v28 }
 0x468   : > { %v2977_v7 = vmul.f32 %v6168_v2, %v2773_v38  ;;  %v3168_v32 = vadd.f32 %v3167_v16, %v3166_v46  ;;  %v3179_v41 = vadd.f32 %v3178_v40, %v3177_v27  ;;  %v3201_v45 = vadd.f32 %v3200_v58, %v3199_v20  ;;  %v8515_v58 = vld [vmem:[#allocation22_spill] sm:$0xff] }
 0x469   : > { %v3198_v24 = vadd.f32 %v3197_v61, %v3196_v9  ;;  %vm2809_vm6 = vcmp.eq.f32.partialorder %v2808_v63, 8.507059e+37  ;;  %v2988_v10 = vmul.f32 %v8343_v21, %v2798_v54  ;;  %v2990_v53 = vmul.f32 %v8345_v48, %v2814_v17  ;;  %v8516_v16 = vld [vmem:[#allocation118_spill] sm:$0xff] }
 0x46a   : > { %v7690_v50 = vsel %vm2809_vm6, %v7580_v51, %v2807_v18  ;;  %v2971_v15 = vmul.f32 %v6622_v55, %v2739_v43  ;;  %v2777_v46 = vmul.f32 %v8512_v25, %v8504_v36  ;;  %v3180_v39 = vsel %vm468_vm0, %v2969_v3, 0.0  ;;  %v8520_v25 = vld [vmem:[#allocation45_spill] sm:$0xff] }
 0x46b   : > { %3685 = vmatmul.msk.f32.gmra.mxu2 %vm468_vm0, %v3168_v32  ;;  %v2979_v49 = vmul.f32 %v8379_v44, %v2775_v0  ;;  %v3202_v56 = vsel %vm468_vm0, %v2977_v7, 0.0  ;;  %v2816_v21 = vmul.f32 %v7296_v47, %v7575_v1  ;;  %v3181_v48 = vadd.f32 %v3180_v39, %v3179_v41  ;;  %v8518_v7 = vld [vmem:[#allocation26_spill] sm:$0xff] }
 0x46c   : > { %v3203_v63 = vadd.f32 %v3202_v56, %v3201_v45  ;;  %v3214_v51 = vsel %vm468_vm0, %v2988_v10, 0.0  ;;  %v3215_v18 = vsel %vm468_vm0, %v2990_v53, 0.0  ;;  %v2813_v8 = vmul.f32 %v7371_v62, %v7690_v50  ;;  %v8519_v45 = vld [vmem:[#allocation71_spill] sm:$0xff] }
 0x46d   : > { %v2815_v42 = vmul.f32 %v7377_v60, %v7690_v50  ;;  %v2779_v29 = vmul.f32 %v8513_v31, %v8504_v36  ;;  %v2981_v4 = vmul.f32 %v8382_v34, %v2777_v46  ;;  %v3182_v23 = vsel %vm468_vm0, %v2971_v15, 0.0 }
 0x46e   : > { %v3204_v47 = vsel %vm468_vm0, %v2979_v49, 0.0  ;;  %v2818_v38 = vmul.f32 %v8514_v57, %v7575_v1  ;;  %v2992_v27 = vmul.f32 %v8350_v13, %v2816_v21  ;;  %v3183_v5 = vadd.f32 %v3182_v23, %v3181_v48  ;;  %v8523_v23 = vld [vmem:[#allocation76_spill] sm:$0xff] }
 0x46f   : > { %v3205_v11 = vadd.f32 %v3204_v47, %v3203_v63  ;;  %v3216_v62 = vadd.f32 %v3215_v18, %v3214_v51  ;;  %v2989_v20 = vmul.f32 %v6098_v35, %v2813_v8  ;;  %v2991_v60 = vmul.f32 %v6405_v19, %v2815_v42  ;;  %v8517_v35 = vld [vmem:[#allocation24_spill] sm:$0xff]  ;;  %v8522_v8 = vld [vmem:[#allocation111_spill] sm:$0xff] }
 0x470   : > { %v2781_v28 = vmul.f32 %v8515_v58, %v8504_v36  ;;  %v2983_v54 = vmul.f32 %v8386_v33, %v2779_v29  ;;  %v3206_v17 = vsel %vm468_vm0, %v2981_v4, 0.0  ;;  %v2820_v26 = vmul.f32 %v8516_v16, %v7575_v1 }
 0x471   : > { %v2994_v13 = vmul.f32 %v6340_v37, %v2818_v38  ;;  %v3217_v43 = vsel %vm468_vm0, %v2992_v27, 0.0  ;;  %v2817_v19 = vmul.f32 %v8517_v35, %v7690_v50  ;;  %v3207_v3 = vadd.f32 %v3206_v17, %v3205_v11  ;;  %v8524_v27 = vld [vmem:[#allocation75_spill] sm:$0xff] }
 0x472   : > { %v3218_v9 = vadd.f32 %v3217_v43, %v3216_v62  ;;  %v3229_v30 = vsel %vm468_vm0, %v2989_v20, 0.0  ;;  %v3230_v0 = vsel %vm468_vm0, %v2991_v60, 0.0  ;;  %v2783_v32 = vmul.f32 %v8518_v7, %v8504_v36 }
 0x473   : > { %3686 = vmatmul.msk.f32.gmra.mxu2 %vm468_vm0, %v3183_v5  ;;  %v2985_v41 = vmul.f32 %v8389_v12, %v2781_v28  ;;  %v3208_v37 = vsel %vm468_vm0, %v2983_v54, 0.0  ;;  %v2822_v10 = vmul.f32 %v8519_v45, %v7575_v1  ;;  %v2996_v53 = vmul.f32 %v8361_v14, %v2820_v26  ;;  %v8521_v14 = vld [vmem:[#allocation32_spill] sm:$0xff] }
 0x474   : > { %v3326_v40 = vpop.f32.mrf.mxu2  ;;  %v3219_v15 = vsel %vm468_vm0, %v2994_v13, 0.0  ;;  %v2819_v46 = vmul.f32 %v8520_v25, %v7690_v50  ;;  %v2993_v39 = vmul.f32 %v6168_v2, %v2817_v19  ;;  %v3209_v49 = vadd.f32 %v3208_v37, %v3207_v3  ;;  %v8526_v26 = vld [vmem:[#allocation120_spill] sm:$0xff] }
 0x475   : > { %v3327_v61 = vadd.f32 %v7430_v22, %v3326_v40  ;;  %v3220_v36 = vadd.f32 %v3219_v15, %v3218_v9  ;;  %v3231_v56 = vadd.f32 %v3230_v0, %v3229_v30  ;;  %v2987_v21 = vmul.f32 %v6622_v55, %v2783_v32 }
 0x476   : > { %v3210_v48 = vsel %vm468_vm0, %v2985_v41, 0.0  ;;  %v2824_v63 = vmul.f32 %v8521_v14, %v7575_v1  ;;  %v2998_v51 = vmul.f32 %v8362_v52, %v2822_v10  ;;  %v3221_v18 = vsel %vm468_vm0, %v2996_v53, 0.0 }
 0x477   : > { %3368 = vst.msk [vmem:[%s7468_s27 + $0x18] sm:$0xff] %vm468_vm0, %v3327_v61  ;;  %v2821_v42 = vmul.f32 %v8522_v8, %v7690_v50  ;;  %v2995_v2 = vmul.f32 %v8379_v44, %v2819_v46  ;;  %v3232_v31 = vsel %vm468_vm0, %v2993_v39, 0.0  ;;  %v3211_v29 = vadd.f32 %v3210_v48, %v3209_v49 }
 0x478   : > { %v3233_v4 = vadd.f32 %v3232_v31, %v3231_v56  ;;  %v2826_v47 = vmul.f32 %v8523_v23, %v7575_v1  ;;  %v3212_v57 = vsel %vm468_vm0, %v2987_v21, 0.0  ;;  %v3000_v38 = vmul.f32 %v8364_v59, %v2824_v63  ;;  %v8525_v59 = vld [vmem:[#allocation52_spill] sm:$0xff] }
 0x479   : > { %v3223_v52 = vsel %vm468_vm0, %v2998_v51, 0.0  ;;  %v2823_v5 = vmul.f32 %v8524_v27, %v7690_v50  ;;  %v2997_v11 = vmul.f32 %v8382_v34, %v2821_v42  ;;  %v3234_v44 = vsel %vm468_vm0, %v2995_v2, 0.0 }
 0x47a   : > { %v3213_v62 = vadd.f32 %v3212_v57, %v3211_v29  ;;  %v3235_v60 = vadd.f32 %v3234_v44, %v3233_v4  ;;  %v3002_v1 = vmul.f32 %v8463_v6, %v2826_v47  ;;  %v3225_v58 = vsel %vm468_vm0, %v3000_v38, 0.0 }
 0x47b   : > { %3687 = vmatmul.msk.f32.gmra.mxu2 %vm468_vm0, %v3198_v24  ;;  %v3222_v24 = vadd.f32 %v3221_v18, %v3220_v36  ;;  %v2825_v28 = vmul.f32 %v8525_v59, %v7690_v50  ;;  %v2999_v54 = vmul.f32 %v8386_v33, %v2823_v5  ;;  %v3236_v17 = vsel %vm468_vm0, %v2997_v11, 0.0 }
 0x47c   : > { %v3237_v34 = vadd.f32 %v3236_v17, %v3235_v60  ;;  %v2827_v13 = vmul.f32 %v8526_v26, %v7690_v50  ;;  %v3227_v43 = vsel %vm468_vm0, %v3002_v1, 0.0 }
 0x47d   : > { %v3224_v20 = vadd.f32 %v3223_v52, %v3222_v24  ;;  %v3001_v35 = vmul.f32 %v8389_v12, %v2825_v28  ;;  %v3238_v6 = vsel %vm468_vm0, %v2999_v54, 0.0 }
 0x47e   : > { %v3239_v3 = vadd.f32 %v3238_v6, %v3237_v34  ;;  %v3003_v33 = vmul.f32 %v6622_v55, %v2827_v13 }
 0x47f   : > { %v3226_v16 = vadd.f32 %v3225_v58, %v3224_v20  ;;  %v3240_v9 = vsel %vm468_vm0, %v3001_v35, 0.0 }
 0x480   : > { %v3241_v40 = vadd.f32 %v3240_v9, %v3239_v3  ;;  %v3242_v50 = vsel %vm468_vm0, %v3003_v33, 0.0 }
 0x481   : > { %v3228_v19 = vadd.f32 %v3227_v43, %v3226_v16 }
 0x482   : > { %v3243_v61 = vadd.f32 %v3242_v50, %v3241_v40 }
 0x483   : > { %3688 = vmatmul.msk.f32.gmra.mxu2 %vm468_vm0, %v3213_v62 }
 0x48b   : > { %3689 = vmatmul.msk.f32.gmra.mxu2 %vm468_vm0, %v3228_v19 }
 0x493   : > { %3690 = vmatmul.msk.f32.gmra.mxu2 %vm468_vm0, %v3243_v61  ;;  %v3329_v12 = vpop.f32.mrf.mxu2 }
 0x494   : > { %v3330_v30 = vadd.f32 %v7430_v22, %v3329_v12 }
 0x496   : > { %3369 = vst.msk [vmem:[%s7468_s27 + $0x20] sm:$0xff] %vm468_vm0, %v3330_v30 }
 0x4a1   : > { %v3332_v0 = vpop.f32.mrf.mxu2 }
 0x4a2   : > { %v3333_v7 = vadd.f32 %v7430_v22, %v3332_v0 }
 0x4a4   : > { %3370 = vst.msk [vmem:[%s7468_s27 + $0x28] sm:$0xff] %vm468_vm0, %v3333_v7 }
 0x4cc   : > { %v3335_v55 = vpop.f32.mrf.mxu2 }
 0x4cd   : > { %v3336_v32 = vadd.f32 %v7430_v22, %v3335_v55 }
 0x4cf   : > { %3371 = vst.msk [vmem:[%s7468_s27 + $0x30] sm:$0xff] %vm468_vm0, %v3336_v32 }
 0x4d6   : > { %v3338_v41 = vpop.f32.mrf.mxu2 }
 0x4d7   : > { %v3339_v37 = vadd.f32 %v7430_v22, %v3338_v41 }
 0x4d9   : > { %3372 = vst.msk [vmem:[%s7468_s27 + $0x38] sm:$0xff] %vm468_vm0, %v3339_v37 }
 0x4de   : > { %v3341_v45 = vpop.f32.mrf.mxu2 }
 0x4df   : > { %v3342_v10 = vadd.f32 %v7430_v22, %v3341_v45 }
 0x4e1   : > { %3373 = vst.msk [vmem:[%s7468_s27 + $0x40] sm:$0xff] %vm468_vm0, %v3342_v10 }
 0x4e6   : > { %v3344_v53 = vpop.f32.mrf.mxu2 }
 0x4e7   : > { %v3345_v15 = vadd.f32 %v7430_v22, %v3344_v53 }
 0x4e9   : > { %3374 = vst.msk [vmem:[%s7468_s27 + $0x48] sm:$0xff] %vm468_vm0, %v3345_v15 }
 0x4ee   : > { %v3347_v25 = vpop.f32.mrf.mxu2 }
 0x4ef   : > { %v3348_v46 = vadd.f32 %v7430_v22, %v3347_v25 }
 0x4f1   : > { %3375 = vst.msk [vmem:[%s7468_s27 + $0x50] sm:$0xff] %vm468_vm0, %v3348_v46 }
 0x4f6   : > { %v3350_v39 = vpop.f32.mrf.mxu2 }
 0x4f7   : > { %v3351_v49 = vadd.f32 %v7430_v22, %v3350_v39 }
 0x4f9   : > { %3376 = vst.msk [vmem:[%s7468_s27 + $0x58] sm:$0xff] %vm468_vm0, %v3351_v49 }
 0x4fe   : > { %v3353_v36 = vpop.f32.mrf.mxu2 }
 0x4ff   : > { %v3354_v56 = vadd.f32 %v7430_v22, %v3353_v36 }
 0x501   : > { %3377 = vst.msk [vmem:[%s7468_s27 + $0x60] sm:$0xff] %vm468_vm0, %v3354_v56 }
 0x506   : > { %v3356_v21 = vpop.f32.mrf.mxu2 }
 0x507   : > { %v3357_v48 = vadd.f32 %v7430_v22, %v3356_v21 }
 0x509   : > { %3378 = vst.msk [vmem:[%s7468_s27 + $0x68] sm:$0xff] %vm468_vm0, %v3357_v48 }
 0x50e   : > { %v3359_v14 = vpop.f32.mrf.mxu2 }
 0x50f   : > { %v3360_v63 = vadd.f32 %v7430_v22, %v3359_v14 }
 0x511   : > { %3379 = vst.msk [vmem:[%s7468_s27 + $0x70] sm:$0xff] %vm468_vm0, %v3360_v63 }
 0x516   : > { %v3362_v51 = vpop.f32.mrf.mxu2 }
 0x517   : > { %v3363_v18 = vadd.f32 %v7430_v22, %v3362_v51 }
 0x519   : > { %3380 = vst.msk [vmem:[%s7468_s27 + $0x78] sm:$0xff] %vm468_vm0, %v3363_v18 }
 0x51a   : > { %4248 = shalt.err (!%p4245_p0)
}
 0x51b   : > { %s4322_s14 = smov 128   ;;  %s4323_s7 = smov 8  }
 0x51c   : > { %3724 = dma.vmem_to_hbm [thread:$0]  (%p4463_p5), %s3397_s17, 2048, %s3399_s30, %s3382_s24, %s4322_s14, %s4322_s14, %s4323_s7  }
 0x51d PF: > { %s3413_s12 = sand.u32 1, %s4291_s21   ;;  %p3741_p3 = pnand %p3521_p11, %p4408_p6 }
 0x51e   : > { %s3414_s11 = scalar_lea.sflag [#allocation4], %s3413_s12 }
 0x51f   : > { %p3742_p7 = pneg %p3741_p3 }
 0x521   : > { %4286 = dma.done.wait (%p3742_p7), %s3414_s11, 2048  }
 0x522   : > { %4288 = vsyncadd (%p3742_p7), %s3414_s11, 4294965248  ;;  %s24_s26 = sadd.s32 1, %s4311_s26   ;;  %s8527_s15 = sld [smem:[#allocation15_spill]] }
 0x523   : > { %p21_p9 = scmp.ge.s32.totalorder %s24_s26, 4   ;;  %s8528_s21 = smov %s4295_s22 }
 0x524   : > { %s8529_s22 = smov %s4299_s23  ;;  %s8530_s23 = smov %s4472_s10 }
 0x525   : > { %s8531_s24 = smov %s4307_s25  ;;  %23 = sbr.rel (!%p21_p9) target bundleno = 12 (0xc), region = 101 }
 0x528   : > { %s8532_s25 = smov %s8527_s15 }
 0x52a   :  { %3420 = vsyncpa [#allocation3], 1 }
 0x52b   :  { %3422 = vsyncpa [#allocation3 + $0x1], 1 }
 0x52c   :  { %3423 = vsyncpa [#allocation6], 1 }
 0x52d   :  { %3424 = vsyncpa [#allocation9], 1 }
 0x52e   :  { %3425 = vsyncpa [#allocation4], 1 }
 0x52f   :  { %3427 = vsyncpa [#allocation4 + $0x1], 1 }

</bundles_post_ra>
